<compile_context>
chip_gen: v7x
topology: tpu7x:2x2x1
jax: 0.10.0
libtpu: 0.0.40
codegen_flags: <defaults>
</compile_context>

<pallas_src>
import jax
import jax.numpy as jnp
import numpy as np
from jax.experimental import pallas as pl
from jax.experimental.pallas import tpu as pltpu


def _make_siren_kernel(num_hidden_layers, in_features, outermost_linear):
    """Fused feature-major Siren forward kernel for a fixed layer config."""

    def kernel(*refs):
        # refs = [x, W0, b0, (Wh_stack, bh_stack,) W_last, b_last, out]
        # x:        (in_features, tile_m)
        # W0:       (hidden, in_features)   b0:      (hidden, 1)   (omega folded)
        # Wh_stack: (L, hidden, hidden)     bh_stack:(L, hidden, 1) (omega folded)
        # W_last:   (out_features, hidden)  b_last:  (out_features, 1)
        # out:      (out_features, tile_m)
        x_ref = refs[0]
        out_ref = refs[-1]
        w0_ref, b0_ref = refs[1], refs[2]
        if num_hidden_layers > 0:
            wh_ref, bh_ref = refs[3], refs[4]
            wl_ref, bl_ref = refs[5], refs[6]
        else:
            wl_ref, bl_ref = refs[3], refs[4]

        x = x_ref[...]                                    # (in, tile_m)

        # ---- first sine layer: K = in_features is tiny -> VPU outer-product
        # MACs (lane-dense along tile_m), skip the MXU entirely.
        w0 = w0_ref[...]                                  # (hidden, in)
        b0 = b0_ref[...]                                  # (hidden, 1)
        acc = b0 + w0[:, 0:1] * x[0:1, :]                 # (hidden, tile_m)
        for k in range(1, in_features):
            acc = acc + w0[:, k:k + 1] * x[k:k + 1, :]
        h = jnp.sin(acc)                                  # (hidden, tile_m)

        # ---- hidden sine layers: (H,H) @ (H,tile_m) on the MXU, lane-dense
        # sin/bias on the VPU.  omega already folded, weights already (out,in).
        for li in range(num_hidden_layers):
            w = wh_ref[li]                                # (hidden, hidden)
            b = bh_ref[li]                                # (hidden, 1)
            h = jnp.sin(jnp.dot(w, h, preferred_element_type=jnp.float32) + b)

        # ---- final layer: (out, hidden) @ (hidden, tile_m) -> lane-dense out
        y = jnp.dot(wl_ref[...], h, preferred_element_type=jnp.float32) \
            + bl_ref[...]
        if not outermost_linear:
            y = jnp.sin(y)                                # omega already folded

        out_ref[...] = y.astype(out_ref.dtype)

    return kernel


def prepare_siren_params(params, *, first_omega_0, hidden_omega_0,
                         outermost_linear):
    """One-time param prep: keep PyTorch (out, in) layout, fold omega, stack
    the hidden layers.

    `params` is a list of (W, b) with PyTorch layout W: (out, in), b: (out,).
    Returns a flat list: [W0, b0, (Wh_stack, bh_stack,) W_last, b_last].
    """
    n = len(params)

    def prep(idx, w, b):
        w = jnp.asarray(w, jnp.float32)                   # (out, in)
        b = jnp.asarray(b, jnp.float32).reshape(-1, 1)    # (out, 1)
        is_last = idx == n - 1
        if is_last and outermost_linear:
            omega = None
        elif idx == 0:
            omega = first_omega_0
        else:
            omega = hidden_omega_0
        if omega is not None:
            w = w * jnp.float32(omega)
            b = b * jnp.float32(omega)
        return w, b

    w0, b0 = prep(0, *params[0])
    hidden = [prep(i, *params[i]) for i in range(1, n - 1)]
    wl, bl = prep(n - 1, *params[-1])

    if hidden:
        wh = jnp.stack([w for w, _ in hidden])            # (L, H, H)
        bh = jnp.stack([b for _, b in hidden])            # (L, H, 1)
        return [w0, b0, wh, bh, wl, bl]
    return [w0, b0, wl, bl]


def siren_forward(coords, flat_params, *, outermost_linear, tile_m=1024):
    """coords: (N, in_features) f32. flat_params from prepare_siren_params.

    Returns (N, out_features) f32.
    """
    coords = jnp.asarray(coords, jnp.float32)
    N, in_features = coords.shape

    has_stack = len(flat_params) == 6
    num_hidden_layers = flat_params[2].shape[0] if has_stack else 0
    hidden = flat_params[0].shape[0]
    out_features = flat_params[-2].shape[0]

    # Pad batch to a multiple of tile_m (cdiv grid, no divisibility assert)
    # and go feature-major: x is (in_features, N_pad).
    n_tiles = pl.cdiv(N, tile_m)
    N_pad = n_tiles * tile_m
    if N_pad != N:
        coords = jnp.pad(coords, ((0, N_pad - N), (0, 0)))
    x_t = coords.T                                        # (in_features, N_pad)

    kernel = _make_siren_kernel(num_hidden_layers, in_features,
                                outermost_linear)

    x_spec = pl.BlockSpec((in_features, tile_m), lambda i: (0, i))
    out_spec = pl.BlockSpec((out_features, tile_m), lambda i: (0, i))

    param_specs = [
        pl.BlockSpec(flat_params[0].shape, lambda i: (0, 0)),        # W0
        pl.BlockSpec(flat_params[1].shape, lambda i: (0, 0)),        # b0
    ]
    if has_stack:
        param_specs += [
            pl.BlockSpec(flat_params[2].shape, lambda i: (0, 0, 0)),  # Wh
            pl.BlockSpec(flat_params[3].shape, lambda i: (0, 0, 0)),  # bh
        ]
    param_specs += [
        pl.BlockSpec(flat_params[-2].shape, lambda i: (0, 0)),       # W_last
        pl.BlockSpec(flat_params[-1].shape, lambda i: (0, 0)),       # b_last
    ]

    # Advisory cost estimate so XLA schedules the custom call sensibly.
    L = num_hidden_layers
    flops = 2 * N_pad * hidden * (in_features + hidden * L + out_features)
    transcendentals = N_pad * hidden * (L + 1)
    if not outermost_linear:
        transcendentals += N_pad * out_features
    param_bytes = int(sum(int(np.prod(p.shape)) * 4 for p in flat_params))
    bytes_accessed = 4 * N_pad * (in_features + out_features) + param_bytes
    cost = pl.CostEstimate(flops=int(flops),
                           transcendentals=int(transcendentals),
                           bytes_accessed=int(bytes_accessed))

    out_t = pl.pallas_call(
        kernel,
        out_shape=jax.ShapeDtypeStruct((out_features, N_pad), jnp.float32),
        grid_spec=pltpu.PrefetchScalarGridSpec(
            num_scalar_prefetch=0,
            grid=(n_tiles,),
            in_specs=[x_spec] + param_specs,
            out_specs=out_spec,
        ),
        compiler_params=pltpu.CompilerParams(
            dimension_semantics=("parallel",)),
        cost_estimate=cost,
    )(x_t, *flat_params)

    # Tiny (out_features, N) transpose back in the wrapper.
    return out_t[:, :N].T


def init_siren_params(key, in_features, hidden_features, hidden_layers,
                      out_features, *, first_omega_0=30.0, hidden_omega_0=30.0,
                      outermost_linear=True):
    """Deterministic init matching the PyTorch module shapes / ranges."""
    params = []

    def uniform(k, shape, lo, hi):
        return jax.random.uniform(k, shape, dtype=jnp.float32,
                                  minval=lo, maxval=hi)

    # first layer: W ~ U(-1/in, 1/in); bias keeps default nn.Linear init
    key, kw, kb = jax.random.split(key, 3)
    bw = 1.0 / in_features
    bb = 1.0 / np.sqrt(in_features)
    params.append((uniform(kw, (hidden_features, in_features), -bw, bw),
                   uniform(kb, (hidden_features,), -bb, bb)))

    # hidden sine layers
    for _ in range(hidden_layers):
        key, kw, kb = jax.random.split(key, 3)
        bw = np.sqrt(6.0 / hidden_features) / hidden_omega_0
        bb = 1.0 / np.sqrt(hidden_features)
        params.append((uniform(kw, (hidden_features, hidden_features), -bw, bw),
                       uniform(kb, (hidden_features,), -bb, bb)))

    # final layer
    key, kw, kb = jax.random.split(key, 3)
    bw = np.sqrt(6.0 / hidden_features) / hidden_omega_0
    bb = 1.0 / np.sqrt(hidden_features)
    params.append((uniform(kw, (out_features, hidden_features), -bw, bw),
                   uniform(kb, (out_features,), -bb, bb)))

    return params


def siren_reference(coords, params, *, first_omega_0, hidden_omega_0,
                    outermost_linear):
    """Pure-JAX reference with the original (un-folded) PyTorch semantics."""
    h = coords
    w, b = params[0]
    h = jnp.sin(first_omega_0 * (h @ w.T + b))
    for (w, b) in params[1:-1]:
        h = jnp.sin(hidden_omega_0 * (h @ w.T + b))
    w, b = params[-1]
    y = h @ w.T + b
    if not outermost_linear:
        y = jnp.sin(hidden_omega_0 * y)
    return y


if __name__ == "__main__":
    # Shapes consistent with the Lotka-Volterra meta usage of Siren:
    # coords (N, in_features) -> output (N, out_features)
    in_features = 2
    hidden_features = 32
    hidden_layers = 2
    out_features = 3
    first_omega_0 = 30.0
    hidden_omega_0 = 30.0
    outermost_linear = True
    N = 1000          # not a multiple of tile_m (exercises cdiv + padding)
    tile_m = 256      # grid = 4 steps -> pipeline has work even at toy N;
                      # raise tile_m for production N (1e5+ coords)

    key = jax.random.PRNGKey(0)
    key, kx = jax.random.split(key)
    coords = jax.random.uniform(kx, (N, in_features), dtype=jnp.float32,
                                minval=-1.0, maxval=1.0)

    params = init_siren_params(
        key, in_features, hidden_features, hidden_layers, out_features,
        first_omega_0=first_omega_0, hidden_omega_0=hidden_omega_0,
        outermost_linear=outermost_linear)

    # One-time param preparation (omega fold + hidden-layer stacking).
    flat_params = prepare_siren_params(
        params, first_omega_0=first_omega_0, hidden_omega_0=hidden_omega_0,
        outermost_linear=outermost_linear)

    out = siren_forward(coords, flat_params,
                        outermost_linear=outermost_linear, tile_m=tile_m)
    out = jax.block_until_ready(out)

    ref = siren_reference(coords, params,
                          first_omega_0=first_omega_0,
                          hidden_omega_0=hidden_omega_0,
                          outermost_linear=outermost_linear)
    ref = jax.block_until_ready(ref)

    # Relaxed tolerance: folding omega into the weights changes the sin()
    # argument at ULP level, which SIREN layers amplify a little.
    np.testing.assert_allclose(np.asarray(out), np.asarray(ref),
                               rtol=2e-3, atol=2e-3)
    assert out.shape == (N, out_features)
    print("KERNEL_OK")
</pallas_src>

<mosaic_0001>
module attributes {stable_mosaic.version = 11 : i64} {
  func.func @kernel(%arg0: i32, %arg1: memref<2x256xf32, #tpu.memory_space<vmem>>, %arg2: memref<32x2xf32, #tpu.memory_space<vmem>>, %arg3: memref<32x1xf32, #tpu.memory_space<vmem>>, %arg4: memref<2x32x32xf32, #tpu.memory_space<vmem>>, %arg5: memref<2x32x1xf32, #tpu.memory_space<vmem>>, %arg6: memref<3x32xf32, #tpu.memory_space<vmem>>, %arg7: memref<3x1xf32, #tpu.memory_space<vmem>>, %arg8: memref<3x256xf32, #tpu.memory_space<vmem>>) attributes {dimension_semantics = [#tpu.dimension_semantics<parallel>], iteration_bounds = array<i64: 4>, scalar_prefetch = 0 : i64, scratch_operands = 0 : i64, tpu.core_type = #tpu.core_type<tc>, window_params = [{transform_indices = @transform_0, window_bounds = array<i64: 2, 256>}, {pipeline_mode = #tpu.pipeline_mode<synchronous>, transform_indices = @transform_1, window_bounds = array<i64: 32, 2>}, {pipeline_mode = #tpu.pipeline_mode<synchronous>, transform_indices = @transform_2, window_bounds = array<i64: 32, 1>}, {pipeline_mode = #tpu.pipeline_mode<synchronous>, transform_indices = @transform_3, window_bounds = array<i64: 2, 32, 32>}, {pipeline_mode = #tpu.pipeline_mode<synchronous>, transform_indices = @transform_4, window_bounds = array<i64: 2, 32, 1>}, {pipeline_mode = #tpu.pipeline_mode<synchronous>, transform_indices = @transform_5, window_bounds = array<i64: 3, 32>}, {pipeline_mode = #tpu.pipeline_mode<synchronous>, transform_indices = @transform_6, window_bounds = array<i64: 3, 1>}, {transform_indices = @transform_7, window_bounds = array<i64: 3, 256>}]} {
    %c0 = arith.constant 0 : index
    %c0_0 = arith.constant 0 : index
    %0 = vector.load %arg1[%c0, %c0_0] : memref<2x256xf32, #tpu.memory_space<vmem>>, vector<2x256xf32>
    %c0_1 = arith.constant 0 : index
    %c0_2 = arith.constant 0 : index
    %1 = vector.load %arg2[%c0_1, %c0_2] : memref<32x2xf32, #tpu.memory_space<vmem>>, vector<32x2xf32>
    %c0_3 = arith.constant 0 : index
    %c0_4 = arith.constant 0 : index
    %2 = vector.load %arg3[%c0_3, %c0_4] : memref<32x1xf32, #tpu.memory_space<vmem>>, vector<32x1xf32>
    %3 = vector.extract_strided_slice %1 {offsets = [0, 0], sizes = [32, 1], strides = [1, 1]} : vector<32x2xf32> to vector<32x1xf32>
    %4 = vector.extract_strided_slice %0 {offsets = [0, 0], sizes = [1, 256], strides = [1, 1]} : vector<2x256xf32> to vector<1x256xf32>
    %5 = vector.broadcast %3 : vector<32x1xf32> to vector<32x256xf32>
    %6 = vector.broadcast %4 : vector<1x256xf32> to vector<32x256xf32>
    %7 = arith.mulf %5, %6 : vector<32x256xf32>
    %8 = vector.broadcast %2 : vector<32x1xf32> to vector<32x256xf32>
    %9 = arith.addf %8, %7 : vector<32x256xf32>
    %10 = vector.extract_strided_slice %1 {offsets = [0, 1], sizes = [32, 1], strides = [1, 1]} : vector<32x2xf32> to vector<32x1xf32>
    %11 = vector.extract_strided_slice %0 {offsets = [1, 0], sizes = [1, 256], strides = [1, 1]} : vector<2x256xf32> to vector<1x256xf32>
    %12 = vector.broadcast %10 : vector<32x1xf32> to vector<32x256xf32>
    %13 = vector.broadcast %11 : vector<1x256xf32> to vector<32x256xf32>
    %14 = arith.mulf %12, %13 : vector<32x256xf32>
    %15 = arith.addf %9, %14 : vector<32x256xf32>
    %16 = math.sin %15 : vector<32x256xf32>
    %c0_5 = arith.constant 0 : index
    %c0_6 = arith.constant 0 : index
    %c0_7 = arith.constant 0 : index
    %17 = vector.load %arg4[%c0_5, %c0_6, %c0_7] : memref<2x32x32xf32, #tpu.memory_space<vmem>>, vector<1x32x32xf32>
    %18 = vector.shape_cast %17 : vector<1x32x32xf32> to vector<32x32xf32>
    %c0_8 = arith.constant 0 : index
    %c0_9 = arith.constant 0 : index
    %c0_10 = arith.constant 0 : index
    %19 = vector.load %arg5[%c0_8, %c0_9, %c0_10] : memref<2x32x1xf32, #tpu.memory_space<vmem>>, vector<1x32x1xf32>
    %20 = vector.shape_cast %19 : vector<1x32x1xf32> to vector<32x1xf32>
    %cst = arith.constant dense<0.000000e+00> : vector<32x256xf32>
    %21 = tpu.matmul %18, %16, %cst {dimension_numbers = #tpu.dot_dimension_numbers<[1], [0], [0], [1], [0, 0, 1, 1], [], []>} : vector<32x32xf32>, vector<32x256xf32>, vector<32x256xf32> -> vector<32x256xf32>
    %22 = vector.broadcast %20 : vector<32x1xf32> to vector<32x256xf32>
    %23 = arith.addf %21, %22 : vector<32x256xf32>
    %24 = math.sin %23 : vector<32x256xf32>
    %c1 = arith.constant 1 : index
    %c0_11 = arith.constant 0 : index
    %c0_12 = arith.constant 0 : index
    %25 = vector.load %arg4[%c1, %c0_11, %c0_12] : memref<2x32x32xf32, #tpu.memory_space<vmem>>, vector<1x32x32xf32>
    %26 = vector.shape_cast %25 : vector<1x32x32xf32> to vector<32x32xf32>
    %c1_13 = arith.constant 1 : index
    %c0_14 = arith.constant 0 : index
    %c0_15 = arith.constant 0 : index
    %27 = vector.load %arg5[%c1_13, %c0_14, %c0_15] : memref<2x32x1xf32, #tpu.memory_space<vmem>>, vector<1x32x1xf32>
    %28 = vector.shape_cast %27 : vector<1x32x1xf32> to vector<32x1xf32>
    %cst_16 = arith.constant dense<0.000000e+00> : vector<32x256xf32>
    %29 = tpu.matmul %26, %24, %cst_16 {dimension_numbers = #tpu.dot_dimension_numbers<[1], [0], [0], [1], [0, 0, 1, 1], [], []>} : vector<32x32xf32>, vector<32x256xf32>, vector<32x256xf32> -> vector<32x256xf32>
    %30 = vector.broadcast %28 : vector<32x1xf32> to vector<32x256xf32>
    %31 = arith.addf %29, %30 : vector<32x256xf32>
    %32 = math.sin %31 : vector<32x256xf32>
    %c0_17 = arith.constant 0 : index
    %c0_18 = arith.constant 0 : index
    %33 = vector.load %arg6[%c0_17, %c0_18] : memref<3x32xf32, #tpu.memory_space<vmem>>, vector<3x32xf32>
    %cst_19 = arith.constant dense<0.000000e+00> : vector<3x256xf32>
    %34 = tpu.matmul %33, %32, %cst_19 {dimension_numbers = #tpu.dot_dimension_numbers<[1], [0], [0], [1], [0, 0, 1, 1], [], []>} : vector<3x32xf32>, vector<32x256xf32>, vector<3x256xf32> -> vector<3x256xf32>
    %c0_20 = arith.constant 0 : index
    %c0_21 = arith.constant 0 : index
    %35 = vector.load %arg7[%c0_20, %c0_21] : memref<3x1xf32, #tpu.memory_space<vmem>>, vector<3x1xf32>
    %36 = vector.broadcast %35 : vector<3x1xf32> to vector<3x256xf32>
    %37 = arith.addf %34, %36 : vector<3x256xf32>
    %c0_22 = arith.constant 0 : index
    %c0_23 = arith.constant 0 : index
    %38 = vector.load %arg8[%c0_22, %c0_23] : memref<3x256xf32, #tpu.memory_space<vmem>>, vector<3x256xf32>
    tpu.vector_store %arg8[%c0_22, %c0_23], %37 {strides = array<i32>} : memref<3x256xf32, #tpu.memory_space<vmem>>, vector<3x256xf32>,
    return
  }
  func.func @transform_0(%arg0: i32) -> (i32, i32) {
    %c0_i32 = arith.constant 0 : i32
    %c0_i32_0 = arith.constant 0 : i32
    return %c0_i32, %arg0 : i32, i32
  }
  func.func @transform_1(%arg0: i32) -> (i32, i32) {
    %c0_i32 = arith.constant 0 : i32
    %c0_i32_0 = arith.constant 0 : i32
    %c0_i32_1 = arith.constant 0 : i32
    return %c0_i32, %c0_i32_0 : i32, i32
  }
  func.func @transform_2(%arg0: i32) -> (i32, i32) {
    %c0_i32 = arith.constant 0 : i32
    %c0_i32_0 = arith.constant 0 : i32
    %c0_i32_1 = arith.constant 0 : i32
    return %c0_i32, %c0_i32_0 : i32, i32
  }
  func.func @transform_3(%arg0: i32) -> (i32, i32, i32) {
    %c0_i32 = arith.constant 0 : i32
    %c0_i32_0 = arith.constant 0 : i32
    %c0_i32_1 = arith.constant 0 : i32
    %c0_i32_2 = arith.constant 0 : i32
    return %c0_i32, %c0_i32_0, %c0_i32_1 : i32, i32, i32
  }
  func.func @transform_4(%arg0: i32) -> (i32, i32, i32) {
    %c0_i32 = arith.constant 0 : i32
    %c0_i32_0 = arith.constant 0 : i32
    %c0_i32_1 = arith.constant 0 : i32
    %c0_i32_2 = arith.constant 0 : i32
    return %c0_i32, %c0_i32_0, %c0_i32_1 : i32, i32, i32
  }
  func.func @transform_5(%arg0: i32) -> (i32, i32) {
    %c0_i32 = arith.constant 0 : i32
    %c0_i32_0 = arith.constant 0 : i32
    %c0_i32_1 = arith.constant 0 : i32
    return %c0_i32, %c0_i32_0 : i32, i32
  }
  func.func @transform_6(%arg0: i32) -> (i32, i32) {
    %c0_i32 = arith.constant 0 : i32
    %c0_i32_0 = arith.constant 0 : i32
    %c0_i32_1 = arith.constant 0 : i32
    return %c0_i32, %c0_i32_0 : i32, i32
  }
  func.func @transform_7(%arg0: i32) -> (i32, i32) {
    %c0_i32 = arith.constant 0 : i32
    %c0_i32_0 = arith.constant 0 : i32
    return %c0_i32, %arg0 : i32, i32
  }
}

</mosaic_0001>

<bundles_post_ra>
// kernel: tpu_custom_call.1
= control target key start
LH: loop header
LB: loop body
LE: loop exit
PB: predicated region body
PF: predicated region fallthrough
CT: control target
= control target key end

     0   :  { %12 = vsyncpa [#allocation3], 0  ;;  %s6372_s0 = inlined_call_operand.vmem [shape: f32[2,1024], index: 0, kind: input, shape index: {}]   ;;  %s6373_s1 = inlined_call_operand.vmem [shape: f32[32,2], index: 1, kind: input, shape index: {}]   ;;  %s6374_s2 = inlined_call_operand.vmem [shape: f32[32,1], index: 2, kind: input, shape index: {}]   ;;  %s6375_s3 = inlined_call_operand.vmem [shape: f32[2,32,32], index: 3, kind: input, shape index: {}]   ;;  %s6376_s4 = inlined_call_operand.vmem [shape: f32[2,32,1], index: 4, kind: input, shape index: {}]   ;;  %s6377_s5 = inlined_call_operand.vmem [shape: f32[3,32], index: 5, kind: input, shape index: {}]   ;;  %s6378_s6 = inlined_call_operand.vmem [shape: f32[3,1], index: 6, kind: input, shape index: {}]   ;;  %s6379_s7 = inlined_call_operand.hbm [shape: f32[3,1024], index: 7, kind: output, shape index: {}]  }
   0x1   :  { %14 = vsyncpa [#allocation3 + $0x1], 0  ;;  %s3843_s24 = smov 0   ;;  %s3845_s25 = smov 0  }
   0x2   :  { %s3847_s26 = smov 0   ;;  %s3849_s27 = smov 0  }
   0x3 LB: > { %s3864_s28 = sadd.s32 4294967295, %s3791_s27   ;;  %s3331_s29 = sadd.s32 4294967294, %s3791_s27   ;;  %s3791_s27 = sphi %s3849_s27, %s6578_s27   ;;  %s3787_s26 = sphi %s3847_s26, %s6577_s26   ;;  %s3783_s25 = sphi %s3845_s25, %s6576_s25   ;;  %s3779_s24 = sphi %s3843_s24, %s6575_s24  }
   0x4   : > { %s3868_s30 = sadd.s32 1, %s3791_s27   ;;  %s179_s8 = sadd.s32 1, %s3787_s26 }
   0x5   : > { %s176_s9 = ssub.s32 %s3791_s27, %s3868_s30  ;;  %p189_p0 = scmp.ne.s32.totalorder %s3787_s26, %s3783_s25 }
   0x6   : > { %p177_p1 = scmp.eq.s32.totalorder %s176_s9, 0  ;;  %p190_p2 = scmp.eq.s32.totalorder %s3864_s28, 3 }
   0x7   : > { %p195_p3 = scmp.ne.s32.totalorder %s3783_s25, %s3779_s24  ;;  %p196_p4 = scmp.eq.s32.totalorder %s3331_s29, 3 }
   0x8   : > { %s3879_s10 = scalar_select %p177_p1, %s3787_s26, %s179_s8  }
   0x9   : > { %p3881_p5 = por %p190_p2, %p189_p0  ;;  %p3885_p6 = por %p196_p4, %p195_p3 }
   0xa   : > { %p3334_p7 = scmp.ge.s32.totalorder %s3791_s27, 1  ;;  %p241_p8 = scmp.lt.s32.totalorder %s3791_s27, 5 }
   0xc   : > { %p242_p9 = pnand %p3334_p7, %p241_p8 }
   0xe   : > { %245 = sbr.rel (%p242_p9) target bundleno = 1487 (0x5cf), region = 48 }
  0x15   : > { %v285_v0 = vld [vmem:[%s6374_s2] sm:$0xff]  ;;  %v3793_v2 = vmov 0   ;;  %v286_v3 = vld [vmem:[%s6374_s2 + $0x8] sm:$0xff]  ;;  %v284_v5 = vld [vmem:[%s6373_s1 + $0x18] sm:$0xff]  ;;  %v3794_v6 = vmov 1   ;;  %s3336_s15 = sshll.u32 %s3864_s28, 1  ;;  %v310_v10 = vlaneseq }
  0x16   : > { %v281_v1 = vld [vmem:[%s6373_s1] sm:$0xff]  ;;  %3626 = vset.pattern.permute.xlu1 %v3793_v2  ;;  %3625 = vset.pattern.permute.xlu0 %v3793_v2  ;;  %v282_v4 = vld [vmem:[%s6373_s1 + $0x8] sm:$0xff]  ;;  %v283_v7 = vld [vmem:[%s6373_s1 + $0x10] sm:$0xff]  ;;  %p274_p10 = scmp.lt.s32.totalorder %s3336_s15, 7  ;;  %s270_s14 = sand.u32 1, %s3783_s25  }
  0x17   : > { %338 = vperm.xlu1 %3626, %v285_v0   ;;  %291 = vperm.xlu0 %3625, %v281_v1   ;;  %v287_v8 = vld [vmem:[%s6374_s2 + $0x10] sm:$0xff]  ;;  %v288_v9 = vld [vmem:[%s6374_s2 + $0x18] sm:$0xff]  ;;  %v311_v13 = vshrl.u32 %v310_v10, 7  ;;  %s3258_s22 = scalar_lea.sflag [#allocation3], %s270_s14 }
  0x18   : > { %s6580_s15 = smov (!%p274_p10, %s3336_s15), 7 }
  0x19   : > { %s3337_s16 = sshll.u32 %s6580_s15, 1  ;;  %v312_v16 = vsub.s32 0, %v311_v13  ;;  %v316_v17 = vsub.s32 2, %v311_v13  ;;  %v382_v20 = vsub.s32 1, %v311_v13  ;;  %v386_v22 = vsub.s32 3, %v311_v13  ;;  %s3335_s15 = sshll.u32 %s270_s14, 3 }
  0x1a   : > { %s277_s19 = scalar_lea.vmem %s6372_s0, %s3337_s16  ;;  %s3456_s16 = sshll.u32 %s3864_s28, 7 }
  0x1b   : > { %343 = vperm.xlu1 %3626, %v286_v3   ;;  %296 = vperm.xlu0 %3625, %v282_v4   ;;  %v280_v18 = vld [vmem:[%s277_s19] sm:$0xf]  ;;  %s272_s17 = scalar_lea.vmem [#allocation2], %s3335_s15  ;;  %s6330_s21 = scalar_lea.hbm %s6379_s7, %s3456_s16 }
  0x1c   : > { %v313_v23 = vrot.slane %v280_v18, %v312_v16  ;;  %v317_v24 = vrot.slane %v280_v18, %v316_v17  ;;  %v383_v25 = vrot.slane %v280_v18, %v382_v20  ;;  %v387_v27 = vrot.slane %v280_v18, %v386_v22  ;;  %s3272_s18 = sshll.u32 %s272_s17, 4  ;;  %s3802_s28 = smov [#allocation2]   ;;  %s6332_s18 = int_to_ptr.vmem [resolvable:$true] %s3272_s18 }
  0x1d   : > { %s3729_s23 = scalar_lea.vmem %s6332_s18, 128  ;;  %s3733_s29 = sshll.u32 %s3802_s28, 4  ;;  %s3734_s29 = int_to_ptr.vmem [resolvable:$false] %s3733_s29 }
  0x1e   : > { %v323_v29 = vrot.slane %v313_v23, %v312_v16  ;;  %v327_v30 = vrot.slane %v317_v24, %v312_v16  ;;  %v393_v31 = vrot.slane %v383_v25, %v382_v20  ;;  %v3923_v34 = vrot.slane %v387_v27, %v382_v20  ;;  %p3730_p11 = scmp.ne.s32.totalorder %s6332_s18, %s3729_s23  ;;  %s3735_s8 = scalar_lea.vmem %s3734_s29, 256 }
  0x1f   : > { %3627 = vset.pattern.permute.xlu1 %v3794_v6  ;;  %306 = vperm.xlu0 %3625, %v284_v5   ;;  %v6392_v23 = vmov 683565275   ;;  %v6390_v25 = vmov 2475754826   ;;  %p3736_p0 = scmp.lt.s32.totalorder %s6332_s18, %s3734_s29  ;;  %p3737_p1 = scmp.lt.s32.totalorder %s3735_s8, %s3729_s23 }
  0x20   : > { %369 = vperm.xlu1 %3627, %v282_v4   ;;  %p3731_p12 = pnand %p3730_p11, %p3881_p5 }
  0x21   : > { %p3738_p2 = por %p3737_p1, %p3736_p0 }
  0x22   : > { %p3732_p13 = pneg %p3731_p12 }
  0x23   : > { %3629 = vset.pattern.permute.xlu0 %v3794_v6 }
  0x24   : > { %3628 = vset.pattern.permute.xlu1 %v3793_v2  ;;  %365 = vperm.xlu0 %3629, %v281_v1   ;;  %p3739_p3 = pnand %p3738_p2, %p3732_p13 }
  0x25   : > { %301 = vperm.xlu1 %3628, %v283_v7  }
  0x28   : > { %373 = vperm.xlu0 %3629, %v283_v7  }
  0x29   : > { %348 = vperm.xlu1 %3628, %v287_v8  }
  0x2c   : > { %3632 = vset.pattern.permute.xlu0 %v3793_v2 }
  0x2d   : > { %353 = vperm.xlu1 %3628, %v288_v9  }
  0x31   : > { %3630 = vset.pattern.permute.xlu1 %v3794_v6 }
  0x32   : > { %377 = vperm.xlu1 %3630, %v284_v5  }
  0x36   : > { %3631 = vset.pattern.permute.xlu1 %v3793_v2 }
  0x96   : > { %v3916_v11 = vpop.permute.xlu1 %338  ;;  %v3918_v12 = vpop.permute.xlu0 %291 }
  0x97   : > { %v329_v42 = vmul.f32 %v327_v30, %v3918_v12  ;;  %v3953_v8 = vmul.f32 %v323_v29, %v3918_v12 }
  0x99   : > { %v357_v48 = vadd.f32 %v3916_v11, %v329_v42 }
  0x9a   : > { %v344_v14 = vpop.permute.xlu1 %343  ;;  %v297_v15 = vpop.permute.xlu0 %296 }
  0x9b   : > { %v330_v49 = vmul.f32 %v323_v29, %v297_v15  ;;  %v331_v50 = vmul.f32 %v327_v30, %v297_v15 }
  0x9d   : > { %v358_v59 = vadd.f32 %v344_v14, %v330_v49  ;;  %v359_v60 = vadd.f32 %v344_v14, %v331_v50 }
  0x9e   : > { %v307_v19 = vpop.permute.xlu0 %306 }
  0x9f   : > { %v370_v21 = vpop.permute.xlu1 %369  ;;  %v334_v62 = vmul.f32 %v323_v29, %v307_v19  ;;  %v3955_v10 = vmul.f32 %v327_v30, %v307_v19 }
  0xa0   : > { %v400_v53 = vmul.f32 %v393_v31, %v370_v21  ;;  %v401_v54 = vmul.f32 %v3923_v34, %v370_v21 }
  0xa2   : > { %v3945_v1 = vadd.f32 %v400_v53, %v358_v59  ;;  %v3947_v2 = vadd.f32 %v401_v54, %v359_v60 }
  0xa3   : > { %v366_v26 = vpop.permute.xlu0 %365 }
  0xa4   : > { %v302_v28 = vpop.permute.xlu1 %301  ;;  %v399_v44 = vmul.f32 %v3923_v34, %v366_v26  ;;  %v625_v15 = vand.u32 2139095040, %v3945_v1  ;;  %v729_v16 = vand.u32 2139095040, %v3947_v2  ;;  %v3960_v17 = vmul.f32 %v393_v31, %v366_v26 }
  0xa5   : > { %v332_v32 = vmul.f32 %v323_v29, %v302_v28  ;;  %v333_v35 = vmul.f32 %v327_v30, %v302_v28  ;;  %v6398_v29 = vmov 2131351028  }
  0xa6   : > { %v3939_v55 = vadd.f32 %v399_v44, %v357_v48 }
  0xa7   : > { %v374_v33 = vpop.permute.xlu0 %373 }
  0xa8   : > { %v349_v36 = vpop.permute.xlu1 %348  ;;  %v402_v38 = vmul.f32 %v393_v31, %v374_v33  ;;  %v403_v40 = vmul.f32 %v3923_v34, %v374_v33  ;;  %v521_v3 = vand.u32 2139095040, %v3939_v55 }
  0xa9   : > { %v360_v37 = vadd.f32 %v349_v36, %v332_v32  ;;  %v361_v39 = vadd.f32 %v349_v36, %v333_v35  ;;  %v6388_v32 = vmov 2102212464   ;;  %v6395_v36 = vmov 920167782  }
  0xaa   : > { %v3962_v18 = vshrl.u32 %v521_v3, 23 }
  0xab   : > { %v3926_v41 = vadd.f32 %v402_v38, %v360_v37  ;;  %v3929_v43 = vadd.f32 %v403_v40, %v361_v39  ;;  %v6386_v39 = vmov 1326507024  }
  0xac   : > { %v3933_v46 = vpop.permute.xlu1 %353 }
  0xad   : > { %v833_v45 = vand.u32 2139095040, %v3926_v41  ;;  %v6380_v47 = vand.u32 2147483647, %v3926_v41  ;;  %v937_v52 = vand.u32 2139095040, %v3929_v43  ;;  %v6383_v4 = vand.u32 2147483647, %v3929_v43 }
  0xae   : > { %v362_v14 = vadd.f32 %v3933_v46, %v334_v62 }
  0xaf   : > { %v834_v51 = vshrl.u32 %v833_v45, 23  ;;  %v837_v57 = vand.u32 8388607, %v6380_v47  ;;  %v938_v58 = vshrl.u32 %v937_v52, 23  ;;  %v3968_v12 = vand.u32 8388607, %v6383_v4 }
  0xb1   : > { %v3354_v56 = vadd.s32 4294967169, %v834_v51  ;;  %v3943_v61 = vpop.permute.xlu1 %377  ;;  %v3358_v0 = vadd.s32 4294967169, %v938_v58  ;;  %v838_v5 = vor.u32 8388608, %v837_v57  ;;  %v942_v48 = vor.u32 8388608, %v3968_v12 }
  0xb2   : > { %v404_v7 = vmul.f32 %v393_v31, %v3943_v61 }
  0xb3   : > { %v840_v63 = vadd.s32 1, %v3354_v56  ;;  %v944_v6 = vadd.s32 1, %v3358_v0  ;;  %v3964_v21 = vshll.u32 %v838_v5, 8 }
  0xb4   : > { %v3970_v19 = vadd.f32 %v404_v7, %v362_v14 }
  0xb5   : > { %vm841_vm0 = vcmp.gt.s32.totalorder %v840_v63, 0  ;;  %vm945_vm1 = vcmp.gt.s32.totalorder %v944_v6, 0 }
  0xb6   : > { %v842_v9 = vsel %vm841_vm0, %v840_v63, 0  ;;  %v946_v27 = vsel %vm945_vm1, %v944_v6, 0  ;;  %v1041_v54 = vand.u32 2139095040, %v3970_v19 }
  0xb7   : > { %v844_v13 = vand.u32 31, %v842_v9  ;;  %v3972_v22 = vshrl.u32 %v842_v9, 5  ;;  %v948_v51 = vand.u32 31, %v946_v27  ;;  %v4003_v5 = vshrl.u32 %v946_v27, 5 }
  0xb9   : > { %v845_v20 = vsub.s32 32, %v844_v13  ;;  %v847_v24 = vshll.u32 %v6392_v23, %v844_v13  ;;  %v850_v26 = vshll.u32 %v6390_v25, %v844_v13  ;;  %v853_v31 = vshll.u32 %v6398_v29, %v844_v13 }
  0xba   : > { %v856_v35 = vshll.u32 %v6388_v32, %v844_v13  ;;  %v859_v38 = vshll.u32 %v6395_v36, %v844_v13  ;;  %vm862_vm2 = vcmp.lt.s32.totalorder %v3972_v22, 1  ;;  %vm865_vm3 = vcmp.lt.s32.totalorder %v3972_v22, 4 }
  0xbb   : > { %v848_v28 = vshrl.u32 %v6390_v25, %v845_v20  ;;  %v851_v30 = vshrl.u32 %v6398_v29, %v845_v20  ;;  %v854_v33 = vshrl.u32 %v6388_v32, %v845_v20  ;;  %v857_v37 = vshrl.u32 %v6395_v36, %v845_v20 }
  0xbc   : > { %v860_v40 = vshrl.u32 %v6386_v39, %v845_v20  ;;  %vm864_vm4 = vcmp.lt.s32.totalorder %v3972_v22, 3  ;;  %v949_v58 = vsub.s32 32, %v948_v51  ;;  %v846_v59 = vshrl.u32 %v6392_v23, %v845_v20 }
  0xbd   : > { %v849_v42 = vor.u32 %v848_v28, %v847_v24  ;;  %v852_v44 = vor.u32 %v851_v30, %v850_v26  ;;  %v855_v45 = vor.u32 %v854_v33, %v853_v31  ;;  %v858_v49 = vor.u32 %v857_v37, %v856_v35 }
  0xbe   : > { %v861_v50 = vor.u32 %v860_v40, %v859_v38  ;;  %vm863_vm5 = vcmp.lt.s32.totalorder %v3972_v22, 2  ;;  %v951_v14 = vshll.u32 %v6392_v23, %v948_v51  ;;  %v952_v20 = vshrl.u32 %v6390_v25, %v949_v58 }
  0xbf   : > { %v870_v52 = vsel %vm862_vm2, %v849_v42, %v852_v44  ;;  %v874_v53 = vsel %vm862_vm2, %v852_v44, %v855_v45  ;;  %v871_v56 = vsel %vm865_vm3, %v858_v49, 920167782  ;;  %v867_v63 = vsel %vm865_vm3, %v855_v45, 2102212464 }
  0xc0   : > { %v875_v57 = vsel %vm865_vm3, %v861_v50, 1326507024  ;;  %v872_v60 = vsel %vm864_vm4, %v855_v45, %v871_v56  ;;  %v954_v12 = vshll.u32 %v6390_v25, %v948_v51  ;;  %v955_v24 = vshrl.u32 %v6398_v29, %v949_v58 }
  0xc1   : > { %v876_v62 = vsel %vm864_vm4, %v858_v49, %v875_v57  ;;  %v873_v0 = vsel %vm863_vm5, %v870_v52, %v872_v60  ;;  %v957_v26 = vshll.u32 %v6398_v29, %v948_v51  ;;  %v958_v27 = vshrl.u32 %v6388_v32, %v949_v58 }
  0xc2   : > { %v877_v3 = vsel %vm863_vm5, %v874_v53, %v876_v62  ;;  %v4010_v9 = vmul.u32.u64.low %v3964_v21, %v873_v0  ;;  %v4011_v13 = vmul.u32.u64.high %v3964_v21, %v873_v0, %v4010_v9  ;;  %v960_v28 = vshll.u32 %v6388_v32, %v948_v51 }
  0xc3   : > { %v4006_v6 = vmul.u32.u64.low %v3964_v21, %v877_v3  ;;  %v4007_v7 = vmul.u32.u64.high %v3964_v21, %v877_v3, %v4006_v6  ;;  %v961_v30 = vshrl.u32 %v6395_v36, %v949_v58  ;;  %v953_v31 = vor.u32 %v952_v20, %v951_v14 }
  0xc4   : > { %v956_v33 = vor.u32 %v955_v24, %v954_v12  ;;  %v963_v35 = vshll.u32 %v6395_v36, %v948_v51  ;;  %v964_v37 = vshrl.u32 %v6386_v39, %v949_v58  ;;  %v959_v38 = vor.u32 %v958_v27, %v957_v26 }
  0xc5   : > { %v363_v40 = vadd.f32 %v3933_v46, %v3955_v10  ;;  %v405_v45 = vmul.f32 %v3923_v34, %v3943_v61  ;;  %v1042_v49 = vshrl.u32 %v1041_v54, 23  ;;  %v866_v50 = vsel %vm862_vm2, %v846_v59, %v849_v42 }
  0xc6   : > { %v962_v52 = vor.u32 %v961_v30, %v960_v28  ;;  %v965_v53 = vor.u32 %v964_v37, %v963_v35  ;;  %vm966_vm6 = vcmp.lt.s32.totalorder %v4003_v5, 1  ;;  %v868_v51 = vsel %vm864_vm4, %v852_v44, %v867_v63 }
  0xc7   : > { %v888_v56 = vadd.s32 1, %v4011_v13  ;;  %vm969_vm7 = vcmp.lt.s32.totalorder %v4003_v5, 4  ;;  %v974_v46 = vsel %vm966_vm6, %v953_v31, %v956_v33  ;;  %vm887_vm8 = vc.u32 %v4007_v7, %v4010_v9 }
  0xc8   : > { %vm968_vm9 = vcmp.lt.s32.totalorder %v4003_v5, 3  ;;  %v975_v34 = vsel %vm969_vm7, %v962_v52, 920167782  ;;  %v978_v61 = vsel %vm966_vm6, %v956_v33, %v959_v38  ;;  %vm967_vm10 = vcmp.lt.s32.totalorder %v4003_v5, 2 }
  0xc9   : > { %v976_v10 = vsel %vm968_vm9, %v959_v38, %v975_v34  ;;  %v979_v42 = vsel %vm969_vm7, %v965_v53, 1326507024  ;;  %v3362_v44 = vadd.s32 4294967169, %v1042_v49  ;;  %v869_v54 = vsel %vm863_vm5, %v866_v50, %v868_v51 }
  0xca   : > { %v977_v57 = vsel %vm967_vm10, %v974_v46, %v976_v10  ;;  %v980_v59 = vsel %vm968_vm9, %v962_v52, %v979_v42  ;;  %v4055_v60 = vshll.u32 %v942_v48, 8  ;;  %v356_v62 = vadd.f32 %v3916_v11, %v3953_v8 }
  0xcb   : > { %v889_v63 = vsel %vm887_vm8, %v888_v56, %v4011_v13  ;;  %v981_v0 = vsel %vm967_vm10, %v978_v61, %v980_v59  ;;  %v4062_v3 = vadd.f32 %v405_v45, %v363_v40  ;;  %v626_v48 = vshrl.u32 %v625_v15, 23 }
  0xcc   : > { %v4065_v22 = vmul.u32.u64.low %v4055_v60, %v981_v0  ;;  %v4066_v6 = vmul.u32.u64.high %v4055_v60, %v981_v0, %v4065_v22  ;;  %v4069_v14 = vmul.u32.u64.low %v4055_v60, %v977_v57  ;;  %v4070_v20 = vmul.u32.u64.high %v4055_v60, %v977_v57, %v4069_v14 }
  0xcd   : > { %v885_v11 = vmul.u32 %v3964_v21, %v869_v54  ;;  %v971_v8 = vsel %vm969_vm7, %v959_v38, 2102212464  ;;  %v1048_v13 = vadd.s32 1, %v3362_v44  ;;  %v730_v12 = vshrl.u32 %v729_v16, 23 }
  0xce   : > { %v4081_v24 = vadd.f32 %v3960_v17, %v356_v62  ;;  %v3342_v26 = vadd.s32 4294967169, %v3962_v18  ;;  %v950_v27 = vshrl.u32 %v6392_v23, %v949_v58  ;;  %v6381_v15 = vand.u32 2147483647, %v3970_v19 }
  0xcf   : > { %v4085_v28 = vadd.s32 %v889_v63, %v885_v11  ;;  %vm1049_vm11 = vcmp.gt.s32.totalorder %v1048_v13, 0  ;;  %v972_v30 = vsel %vm968_vm9, %v956_v33, %v971_v8  ;;  %v1145_v16 = vand.u32 2139095040, %v4062_v3 }
  0xd0   : > { %v970_v21 = vsel %vm966_vm6, %v950_v27, %v953_v31  ;;  %v1050_v35 = vsel %vm1049_vm11, %v1048_v13, 0  ;;  %v6384_v37 = vand.u32 2147483647, %v3947_v2  ;;  %v3346_v18 = vadd.s32 4294967169, %v626_v48 }
  0xd1   : > { %v1052_v17 = vand.u32 31, %v1050_v35  ;;  %v3350_v38 = vadd.s32 4294967169, %v730_v12  ;;  %v417_v58 = vand.u32 2139095040, %v4081_v24  ;;  %v528_v40 = vadd.s32 1, %v3342_v26 }
  0xd2   : > { %v891_v45 = vadd.s32 536870912, %v4085_v28  ;;  %v973_v49 = vsel %vm967_vm10, %v970_v21, %v972_v30  ;;  %v1045_v31 = vand.u32 8388607, %v6381_v15  ;;  %vm991_vm12 = vc.u32 %v4066_v6, %v4069_v14 }
  0xd3   : > { %v1053_v33 = vsub.s32 32, %v1052_v17  ;;  %v992_v50 = vadd.s32 1, %v4070_v20  ;;  %v1055_v52 = vshll.u32 %v6392_v23, %v1052_v17  ;;  %v1146_v53 = vshrl.u32 %v1145_v16, 23 }
  0xd4   : > { %v1058_v56 = vshll.u32 %v6390_v25, %v1052_v17  ;;  %v4108_v34 = vshrl.u32 %v1050_v35, 5  ;;  %v1064_v61 = vshll.u32 %v6388_v32, %v1052_v17  ;;  %v1061_v57 = vshll.u32 %v6398_v29, %v1052_v17 }
  0xd5   : > { %v1056_v51 = vshrl.u32 %v6390_v25, %v1053_v33  ;;  %v1059_v46 = vshrl.u32 %v6398_v29, %v1053_v33  ;;  %v1062_v5 = vshrl.u32 %v6388_v32, %v1053_v33  ;;  %v1065_v10 = vshrl.u32 %v6395_v36, %v1053_v33 }
  0xd6   : > { %v1068_v42 = vshrl.u32 %v6386_v39, %v1053_v33  ;;  %v1067_v59 = vshll.u32 %v6395_v36, %v1052_v17  ;;  %v632_v62 = vadd.s32 1, %v3346_v18  ;;  %vm529_vm13 = vcmp.gt.s32.totalorder %v528_v40, 0 }
  0xd7   : > { %v1057_v44 = vor.u32 %v1056_v51, %v1055_v52  ;;  %v1060_v54 = vor.u32 %v1059_v46, %v1058_v56  ;;  %v1046_v63 = vor.u32 8388608, %v1045_v31  ;;  %v1066_v0 = vor.u32 %v1065_v10, %v1064_v61 }
  0xd8   : > { %v993_v22 = vsel %vm991_vm12, %v992_v50, %v4070_v20  ;;  %v1063_v48 = vor.u32 %v1062_v5, %v1061_v57  ;;  %v1069_v11 = vor.u32 %v1068_v42, %v1067_v59  ;;  %v3366_v8 = vadd.s32 4294967169, %v1146_v53 }
  0xd9   : > { %v736_v13 = vadd.s32 1, %v3350_v38  ;;  %v989_v12 = vmul.u32 %v4055_v60, %v973_v49  ;;  %vm1070_vm14 = vcmp.lt.s32.totalorder %v4108_v34, 1  ;;  %vm1073_vm15 = vcmp.lt.s32.totalorder %v4108_v34, 4 }
  0xda   : > { %v530_v26 = vsel %vm529_vm13, %v528_v40, 0  ;;  %v4122_v27 = vshrl.u32 %v891_v45, 30  ;;  %v1078_v21 = vsel %vm1070_vm14, %v1057_v44, %v1060_v54  ;;  %v1079_v30 = vsel %vm1073_vm15, %v1066_v0, 920167782 }
  0xdb   : > { %v4128_v20 = vadd.s32 %v993_v22, %v989_v12  ;;  %vm1071_vm0 = vcmp.lt.s32.totalorder %v4108_v34, 2  ;;  %vm1072_vm1 = vcmp.lt.s32.totalorder %v4108_v34, 3  ;;  %v1086_v60 = vshll.u32 %v1046_v63, 8 }
  0xdc   : > { %v1080_v35 = vsel %vm1072_vm1, %v1063_v48, %v1079_v30  ;;  %v1082_v16 = vsel %vm1070_vm14, %v1060_v54, %v1063_v48  ;;  %v1083_v17 = vsel %vm1073_vm15, %v1069_v11, 1326507024  ;;  %v1152_v18 = vadd.s32 1, %v3366_v8 }
  0xdd   : > { %vm633_vm2 = vcmp.gt.s32.totalorder %v632_v62, 0  ;;  %vm737_vm3 = vcmp.gt.s32.totalorder %v736_v13, 0  ;;  %v418_v38 = vshrl.u32 %v417_v58, 23  ;;  %v1081_v40 = vsel %vm1071_vm0, %v1078_v21, %v1080_v35 }
  0xde   : > { %v4140_v45 = vand.u32 31, %v530_v26  ;;  %v1084_v49 = vsel %vm1072_vm1, %v1066_v0, %v1083_v17  ;;  %v4144_v31 = vmul.u32.u64.low %v1086_v60, %v1081_v40  ;;  %v4145_v50 = vmul.u32.u64.high %v1086_v60, %v1081_v40, %v4144_v31 }
  0xdf   : > { %v893_v52 = vshll.u32 %v4122_v27, 30  ;;  %v995_v53 = vadd.s32 536870912, %v4128_v20  ;;  %v1085_v51 = vsel %vm1071_vm0, %v1082_v16, %v1084_v49  ;;  %v6382_v58 = vand.u32 2147483647, %v4062_v3 }
  0xe0   : > { %v1075_v56 = vsel %vm1073_vm15, %v1063_v48, 2102212464  ;;  %v4155_v46 = vmul.u32.u64.low %v1086_v60, %v1085_v51  ;;  %v4156_v5 = vmul.u32.u64.high %v1086_v60, %v1085_v51, %v4155_v46  ;;  %vm1153_vm4 = vcmp.gt.s32.totalorder %v1152_v18, 0 }
  0xe1   : > { %v4158_v61 = vsel %vm633_vm2, %v632_v62, 0  ;;  %v3338_v10 = vadd.s32 4294967169, %v418_v38  ;;  %v1054_v42 = vshrl.u32 %v6392_v23, %v1053_v33  ;;  %v1154_v57 = vsel %vm1153_vm4, %v1152_v18, 0 }
  0xe2   : > { %v4162_v59 = vsel %vm737_vm3, %v736_v13, 0  ;;  %v4165_v63 = vsub.s32 32, %v4140_v45  ;;  %v1156_v0 = vand.u32 31, %v1154_v57  ;;  %v6385_v22 = vand.u32 2147483647, %v3939_v55 }
  0xe3   : > { %v4169_v48 = vsub.s32 %v4085_v28, %v893_v52  ;;  %v1074_v62 = vsel %vm1070_vm14, %v1054_v42, %v1057_v44  ;;  %v1076_v11 = vsel %vm1072_vm1, %v1060_v54, %v1075_v56  ;;  %v1149_v33 = vand.u32 8388607, %v6382_v58 }
  0xe4   : > { %v4178_v8 = vand.u32 31, %v4158_v61  ;;  %v4180_v13 = vshrl.u32 %v995_v53, 30  ;;  %v1096_v12 = vadd.s32 1, %v4145_v50  ;;  %v1157_v21 = vsub.s32 32, %v1156_v0 }
  0xe5   : > { %v4184_v28 = vand.u32 31, %v4162_v59  ;;  %v4186_v30 = vadd.s32 1, %v3338_v10  ;;  %v4188_v44 = vshrl.u32 %v530_v26, 5  ;;  %vm1095_vm5 = vc.u32 %v4156_v5, %v4144_v31 }
  0xe6   : > { %v1077_v54 = vsel %vm1071_vm0, %v1074_v62, %v1076_v11  ;;  %v1160_v35 = vshrl.u32 %v6390_v25, %v1157_v21  ;;  %v4197_v16 = vand.u32 8388607, %v6385_v22  ;;  %v535_v17 = vshll.u32 %v6392_v23, %v4140_v45 }
  0xe7   : > { %v896_v18 = vsub.s32 0, %v4169_v48  ;;  %v1150_v38 = vor.u32 8388608, %v1149_v33  ;;  %v1159_v26 = vshll.u32 %v6392_v23, %v1156_v0  ;;  %v536_v40 = vshrl.u32 %v6390_v25, %v4165_v63 }
  0xe8   : > { %v997_v34 = vshll.u32 %v4180_v13, 30  ;;  %v1097_v49 = vsel %vm1095_vm5, %v1096_v12, %v4145_v50  ;;  %v1162_v52 = vshll.u32 %v6390_v25, %v1156_v0  ;;  %v1163_v53 = vshrl.u32 %v6398_v29, %v1157_v21 }
  0xe9   : > { %v1093_v51 = vmul.u32 %v1086_v60, %v1077_v54  ;;  %v1155_v56 = vshrl.u32 %v1154_v57, 5  ;;  %v1161_v46 = vor.u32 %v1160_v35, %v1159_v26  ;;  %v1165_v10 = vshll.u32 %v6398_v29, %v1156_v0 }
  0xea   : > { %v1164_v42 = vor.u32 %v1163_v53, %v1162_v52  ;;  %v1166_v62 = vshrl.u32 %v6388_v32, %v1157_v21  ;;  %v1168_v11 = vshll.u32 %v6388_v32, %v1156_v0  ;;  %v1169_v33 = vshrl.u32 %v6395_v36, %v1157_v21 }
  0xeb   : > { %v4213_v47 = vadd.s32 %v1097_v49, %v1093_v51  ;;  %v4215_v15 = vshll.u32 %v1150_v38, 8  ;;  %v4217_v50 = vor.u32 %v536_v40, %v535_v17  ;;  %v538_v60 = vshll.u32 %v6390_v25, %v4140_v45 }
  0xec   : > { %v1167_v57 = vor.u32 %v1166_v62, %v1165_v10  ;;  %v1170_v12 = vor.u32 %v1169_v33, %v1168_v11  ;;  %v1171_v54 = vshll.u32 %v6395_v36, %v1156_v0  ;;  %v1172_v35 = vshrl.u32 %v6386_v39, %v1157_v21 }
  0xed   : > { %v3355_v26 = vmin.u32 %v896_v18, %v4169_v48  ;;  %v4225_v52 = vsub.s32 %v4128_v20, %v997_v34  ;;  %vm1174_vm6 = vcmp.lt.s32.totalorder %v1155_v56, 1  ;;  %v539_v38 = vshrl.u32 %v6398_v29, %v4165_v63 }
  0xee   : > { %v1158_v17 = vshrl.u32 %v6392_v23, %v1157_v21  ;;  %v1173_v40 = vor.u32 %v1172_v35, %v1171_v54  ;;  %vm1177_vm7 = vcmp.lt.s32.totalorder %v1155_v56, 4  ;;  %v1182_v49 = vsel %vm1174_vm6, %v1161_v46, %v1164_v42 }
  0xef   : > { %v1099_v53 = vadd.s32 536870912, %v4213_v47  ;;  %vm1176_vm8 = vcmp.lt.s32.totalorder %v1155_v56, 3  ;;  %v1179_v0 = vsel %vm1177_vm7, %v1167_v57, 2102212464  ;;  %v1183_v51 = vsel %vm1177_vm7, %v1170_v12, 920167782 }
  0xf0   : > { %vm1175_vm9 = vcmp.lt.s32.totalorder %v1155_v56, 2  ;;  %v1184_v10 = vsel %vm1176_vm8, %v1167_v57, %v1183_v51  ;;  %v1186_v18 = vsel %vm1174_vm6, %v1164_v42, %v1167_v57  ;;  %v1187_v62 = vsel %vm1177_vm7, %v1173_v40, 1326507024 }
  0xf1   : > { %v1000_v20 = vsub.s32 0, %v4225_v52  ;;  %v1178_v34 = vsel %vm1174_vm6, %v1158_v17, %v1161_v46  ;;  %v1185_v11 = vsel %vm1175_vm9, %v1182_v49, %v1184_v10  ;;  %v542_v21 = vshrl.u32 %v6388_v32, %v4165_v63 }
  0xf2   : > { %v1180_v33 = vsel %vm1176_vm8, %v1164_v42, %v1179_v0  ;;  %v1188_v54 = vsel %vm1176_vm8, %v1170_v12, %v1187_v62  ;;  %v4236_v35 = vmul.u32.u64.low %v4215_v15, %v1185_v11  ;;  %v4237_v58 = vmul.u32.u64.high %v4215_v15, %v1185_v11, %v4236_v35 }
  0xf3   : > { %v4240_v4 = vshrl.u32 %v1099_v53, 30  ;;  %v1189_v57 = vsel %vm1175_vm9, %v1186_v18, %v1188_v54  ;;  %v540_v40 = vor.u32 %v539_v38, %v538_v60  ;;  %v541_v46 = vshll.u32 %v6398_v29, %v4140_v45 }
  0xf4   : > { %v4246_v17 = vmul.u32.u64.low %v4215_v15, %v1189_v57  ;;  %v4247_v49 = vmul.u32.u64.high %v4215_v15, %v1189_v57, %v4246_v17  ;;  %v544_v42 = vshll.u32 %v6388_v32, %v4140_v45  ;;  %v545_v12 = vshrl.u32 %v6395_v36, %v4165_v63 }
  0xf5   : > { %vm425_vm10 = vcmp.gt.s32.totalorder %v4186_v30, 0  ;;  %v3359_v53 = vmin.u32 %v1000_v20, %v4225_v52  ;;  %v1181_v0 = vsel %vm1175_vm9, %v1178_v34, %v1180_v33  ;;  %v548_v60 = vshrl.u32 %v6386_v39, %v4165_v63 }
  0xf6   : > { %v1200_v38 = vadd.s32 1, %v4237_v58  ;;  %v543_v51 = vor.u32 %v542_v21, %v541_v46  ;;  %v546_v10 = vor.u32 %v545_v12, %v544_v42  ;;  %v547_v18 = vshll.u32 %v6395_v36, %v4140_v45 }
  0xf7   : > { %v898_v62 = vclz %v3355_v26  ;;  %v1101_v11 = vshll.u32 %v4240_v4, 30  ;;  %v526_v54 = vor.u32 8388608, %v4197_v16  ;;  %vm550_vm11 = vcmp.lt.s32.totalorder %v4188_v44, 1 }
  0xf8   : > { %vm1199_vm12 = vc.u32 %v4247_v49, %v4236_v35  ;;  %v549_v56 = vor.u32 %v548_v60, %v547_v18  ;;  %vm553_vm13 = vcmp.lt.s32.totalorder %v4188_v44, 4  ;;  %v558_v20 = vsel %vm550_vm11, %v4217_v50, %v540_v40 }
  0xf9   : > { %v1197_v34 = vmul.u32 %v4215_v15, %v1181_v0  ;;  %v1201_v45 = vsel %vm1199_vm12, %v1200_v38, %v4237_v58  ;;  %vm552_vm14 = vcmp.lt.s32.totalorder %v4188_v44, 3  ;;  %v559_v16 = vsel %vm553_vm13, %v546_v10, 920167782 }
  0xfa   : > { %v1002_v26 = vclz %v3359_v53  ;;  %vm551_vm15 = vcmp.lt.s32.totalorder %v4188_v44, 2  ;;  %v555_v21 = vsel %vm553_vm13, %v543_v51, 2102212464  ;;  %v560_v33 = vsel %vm552_vm14, %v543_v51, %v559_v16 }
  0xfb   : > { %v426_v15 = vsel %vm425_vm10, %v4186_v30, 0  ;;  %v1202_v57 = vadd.s32 %v1201_v45, %v1197_v34  ;;  %v534_v58 = vshrl.u32 %v6392_v23, %v4165_v63  ;;  %v561_v46 = vsel %vm551_vm15, %v558_v20, %v560_v33 }
  0xfc   : > { %v3356_v17 = vadd.s32 4294967294, %v898_v62  ;;  %v562_v42 = vsel %vm550_vm11, %v540_v40, %v543_v51  ;;  %v563_v12 = vsel %vm553_vm13, %v549_v56, 1326507024  ;;  %v566_v53 = vshll.u32 %v526_v54, 8 }
  0xfd   : > { %v4292_v0 = vsub.s32 %v4213_v47, %v1101_v11  ;;  %v554_v30 = vsel %vm550_vm11, %v534_v58, %v4217_v50  ;;  %v556_v63 = vsel %vm552_vm14, %v540_v40, %v555_v21  ;;  %v564_v60 = vsel %vm552_vm14, %v546_v10, %v563_v12 }
  0xfe   : > { %v3360_v38 = vadd.s32 4294967294, %v1002_v26  ;;  %v565_v51 = vsel %vm551_vm15, %v562_v42, %v564_v60  ;;  %v4303_v18 = vmul.u32.u64.low %v566_v53, %v561_v46  ;;  %v4304_v62 = vmul.u32.u64.high %v566_v53, %v561_v46, %v4303_v18 }
  0xff   : > { %v1203_v47 = vadd.s32 536870912, %v1202_v57  ;;  %v4307_v11 = vmul.u32.u64.low %v566_v53, %v565_v51  ;;  %v4308_v54 = vmul.u32.u64.high %v566_v53, %v565_v51, %v4307_v11  ;;  %v4310_v56 = vand.u32 31, %v426_v15 }
 0x100   : > { %v557_v50 = vsel %vm551_vm15, %v554_v30, %v556_v63  ;;  %v4316_v40 = vand.u32 8388607, %v6384_v37  ;;  %v4319_v10 = vshrl.u32 %v4158_v61, 5  ;;  %v4322_v20 = vsub.s32 32, %v4184_v28 }
 0x101   : > { %vm3357_vm0 = vcmp.lt.s32.totalorder %v3356_v17, 0  ;;  %v1104_v34 = vsub.s32 0, %v4292_v0  ;;  %v4326_v45 = vsub.s32 32, %v4178_v8  ;;  %v4329_v16 = vshrl.u32 %v4162_v59, 5 }
 0x102   : > { %vm3361_vm1 = vcmp.lt.s32.totalorder %v3360_v38, 0  ;;  %v576_v44 = vadd.s32 1, %v4304_v62  ;;  %v4332_v26 = vshrl.u32 %v426_v15, 5  ;;  %v4334_v21 = vshrl.u32 %v1203_v47, 30 }
 0x103   : > { %v573_v61 = vmul.u32 %v566_v53, %v557_v50  ;;  %vm575_vm2 = vc.u32 %v4308_v54, %v4303_v18  ;;  %v4339_v33 = vsub.s32 32, %v4310_v56  ;;  %v4343_v58 = vadd.s32 %v4010_v9, %v4007_v7 }
 0x104   : > { %v4345_v59 = vsel %vm3357_vm0, 0, %v3356_v17  ;;  %v577_v46 = vsel %vm575_vm2, %v576_v44, %v4304_v62  ;;  %v4348_v42 = vsel %vm3361_vm1, 0, %v3360_v38  ;;  %v3363_v15 = vmin.u32 %v1104_v34, %v4292_v0 }
 0x105   : > { %v578_v12 = vadd.s32 %v577_v46, %v573_v61  ;;  %v744_v53 = vshrl.u32 %v6390_v25, %v4322_v20  ;;  %v747_v30 = vshrl.u32 %v6398_v29, %v4322_v20  ;;  %v750_v63 = vshrl.u32 %v6388_v32, %v4322_v20 }
 0x106   : > { %v752_v7 = vshll.u32 %v6388_v32, %v4184_v28  ;;  %v753_v9 = vshrl.u32 %v6395_v36, %v4322_v20  ;;  %v906_v17 = vsub.s32 4294967266, %v4345_v59  ;;  %v1205_v60 = vshll.u32 %v4334_v21, 30 }
 0x107   : > { %v579_v38 = vadd.s32 536870912, %v578_v12  ;;  %v756_v51 = vshrl.u32 %v6386_v39, %v4322_v20  ;;  %v743_v62 = vshll.u32 %v6392_v23, %v4184_v28  ;;  %v746_v47 = vshll.u32 %v6390_v25, %v4184_v28 }
 0x108   : > { %v749_v11 = vshll.u32 %v6398_v29, %v4184_v28  ;;  %v754_v50 = vor.u32 %v753_v9, %v752_v7  ;;  %v1010_v34 = vsub.s32 4294967266, %v4348_v42  ;;  %v1106_v44 = vclz %v3363_v15 }
 0x109   : > { %v4372_v61 = vshrl.u32 %v579_v38, 30  ;;  %v755_v46 = vshll.u32 %v6395_v36, %v4184_v28  ;;  %v745_v37 = vor.u32 %v744_v53, %v743_v62  ;;  %v748_v22 = vor.u32 %v747_v30, %v746_v47  ;;  %v1250_v47 = vld [vmem:[%s6376_s4] sm:$0xff] }
 0x10a   : > { %v751_v39 = vor.u32 %v750_v63, %v749_v11  ;;  %vm761_vm3 = vcmp.lt.s32.totalorder %v4329_v16, 4  ;;  %v4377_v32 = vsub.s32 %v1202_v57, %v1205_v60  ;;  %v902_v15 = vsub.s32 32, %v4345_v59  ;;  %1256 = vperm.xlu1 %3631, %v1250_v47  }
 0x10b   : > { %v581_v25 = vshll.u32 %v4372_v61, 30  ;;  %v757_v23 = vor.u32 %v756_v51, %v755_v46  ;;  %v767_v7 = vsel %vm761_vm3, %v754_v50, 920167782  ;;  %v4383_v9 = vadd.s32 127, %v906_v17 }
 0x10c   : > { %v990_v28 = vadd.s32 %v4069_v14, %v4066_v6  ;;  %v734_v53 = vor.u32 8388608, %v4316_v40  ;;  %v1006_v30 = vsub.s32 32, %v4348_v42  ;;  %vm758_vm4 = vcmp.lt.s32.totalorder %v4329_v16, 1 }
 0x10d   : > { %v4389_v63 = vsub.s32 %v578_v12, %v581_v25  ;;  %vm760_vm5 = vcmp.lt.s32.totalorder %v4329_v16, 3  ;;  %v1011_v57 = vadd.s32 127, %v1010_v34  ;;  %v766_v60 = vsel %vm758_vm4, %v745_v37, %v748_v22 }
 0x10e   : > { %v768_v17 = vsel %vm760_vm5, %v751_v39, %v767_v7  ;;  %v770_v6 = vsel %vm758_vm4, %v748_v22, %v751_v39  ;;  %v3364_v14 = vadd.s32 4294967294, %v1106_v44  ;;  %v1208_v40 = vsub.s32 0, %v4377_v32 }
 0x10f   : > { %v584_v25 = vsub.s32 0, %v4389_v63  ;;  %v771_v12 = vsel %vm761_vm3, %v757_v23, 1326507024  ;;  %vm759_vm6 = vcmp.lt.s32.totalorder %v4329_v16, 2  ;;  %v763_v38 = vsel %vm761_vm3, %v751_v39, 2102212464 }
 0x110   : > { %v772_v51 = vsel %vm760_vm5, %v754_v50, %v771_v12  ;;  %v774_v62 = vshll.u32 %v734_v53, 8  ;;  %v6445_v34 = vmov 683565275   ;;  %v769_v23 = vsel %vm759_vm6, %v766_v60, %v768_v17  ;;  %v1251_v39 = vld [vmem:[%s6376_s4 + $0x8] sm:$0xff]  ;;  %v3412_v16 = vld [vmem:[%s6376_s4 + $0x30] sm:$0xff] }
 0x111   : > { %v3343_v11 = vmin.u32 %v584_v25, %v4389_v63  ;;  %v742_v44 = vshrl.u32 %v6445_v34, %v4322_v20  ;;  %v773_v46 = vsel %vm759_vm6, %v770_v6, %v772_v51  ;;  %v1008_v50 = vshrl.u32 %v990_v28, %v1006_v30  ;;  %v1252_v20 = vld [vmem:[%s6376_s4 + $0x10] sm:$0xff]  ;;  %1261 = vperm.xlu0 %3632, %v1251_v39   ;;  %v3410_v28 = vld [vmem:[%s6376_s4 + $0x20] sm:$0xff] }
 0x112   : > { %v1012_v7 = vshll.u32 %v1011_v57, 23  ;;  %v4421_v53 = vmul.u32.u64.low %v774_v62, %v773_v46  ;;  %v4422_v12 = vmul.u32.u64.high %v774_v62, %v773_v46, %v4421_v53  ;;  %v1007_v60 = vshll.u32 %v4225_v52, %v4348_v42  ;;  %1266 = vperm.xlu1 %3631, %v1252_v20  }
 0x113   : > { %v586_v17 = vclz %v3343_v11  ;;  %v762_v6 = vsel %vm758_vm4, %v742_v44, %v745_v37  ;;  %v764_v25 = vsel %vm760_vm5, %v748_v22, %v763_v38  ;;  %vm3365_vm7 = vcmp.lt.s32.totalorder %v3364_v14, 0  ;;  %v1253_v44 = vld [vmem:[%s6376_s4 + $0x18] sm:$0xff] }
 0x114   : > { %v3367_v30 = vmin.u32 %v1208_v40, %v4377_v32  ;;  %v4437_v57 = vmul.u32.u64.low %v774_v62, %v769_v23  ;;  %v4438_v51 = vmul.u32.u64.high %v774_v62, %v769_v23, %v4437_v57  ;;  %v4444_v42 = vshrl.u32 %v4343_v58, %v902_v15  ;;  %v3413_v38 = vld [vmem:[%s6376_s4 + $0x38] sm:$0xff] }
 0x115   : > { %v3344_v37 = vadd.s32 4294967294, %v586_v17  ;;  %v6394_v22 = vand.u32 2147483647, %v4081_v24  ;;  %v4448_v47 = vor.u32 %v1008_v50, %v1007_v60  ;;  %v4450_v11 = vor.u32 4788187, %v1012_v7  ;;  %2220 = vperm.xlu0 %3632, %v3410_v28  }
 0x116   : > { %v765_v40 = vsel %vm759_vm6, %v762_v6, %v764_v25  ;;  %v4458_v58 = vsel %vm3365_vm7, 0, %v3364_v14  ;;  %v574_v15 = vadd.s32 %v4303_v18, %v4308_v54  ;;  %vm783_vm9 = vc.u32 %v4422_v12, %v4437_v57  ;;  %1271 = vperm.xlu1 %3631, %v1253_v44   ;;  %v3411_v25 = vld [vmem:[%s6376_s4 + $0x28] sm:$0xff] }
 0x117   : > { %vm3345_vm8 = vcmp.lt.s32.totalorder %v3344_v37, 0  ;;  %v1210_v23 = vclz %v3367_v30  ;;  %v784_v39 = vadd.s32 1, %v4438_v51  ;;  %v6446_v50 = vmov 2475754826  }
 0x118   : > { %v589_v46 = vsel %vm3345_vm8, 0, %v3344_v37  ;;  %v432_v7 = vshrl.u32 %v6446_v50, %v4339_v33  ;;  %v781_v20 = vmul.u32 %v774_v62, %v765_v40  ;;  %v421_v18 = vand.u32 8388607, %v6394_v22 }
 0x119   : > { %v590_v14 = vsub.s32 32, %v589_v46  ;;  %v594_v53 = vsub.s32 4294967266, %v589_v46  ;;  %v591_v54 = vshll.u32 %v4389_v63, %v589_v46  ;;  %v785_v60 = vsel %vm783_vm9, %v784_v39, %v4438_v51  ;;  %2230 = vperm.xlu0 %3632, %v3412_v16   ;;  %v3172_v63 = vld [vmem:[%s6378_s6] sm:$0x7] }
 0x11a   : > { %v431_v17 = vshll.u32 %v6445_v34, %v4310_v56  ;;  %v435_v6 = vshrl.u32 %v6398_v29, %v4339_v33  ;;  %v786_v30 = vadd.s32 %v785_v60, %v781_v20  ;;  %v6447_v37 = vmov 2102212464   ;;  %2225 = vperm.xlu1 %3631, %v3411_v25  }
 0x11b   : > { %v592_v62 = vshrl.u32 %v574_v15, %v590_v14  ;;  %v595_v28 = vadd.s32 127, %v594_v53  ;;  %v438_v40 = vshrl.u32 %v6447_v37, %v4339_v33  ;;  %v434_v44 = vshll.u32 %v6446_v50, %v4310_v56 }
 0x11c   : > { %v433_v51 = vor.u32 %v432_v7, %v431_v17  ;;  %v440_v46 = vshll.u32 %v6447_v37, %v4310_v56  ;;  %v441_v16 = vshrl.u32 %v6395_v36, %v4339_v33  ;;  %v787_v14 = vadd.s32 536870912, %v786_v30 }
 0x11d   : > { %v593_v15 = vor.u32 %v592_v62, %v591_v54  ;;  %v596_v39 = vshll.u32 %v595_v28, 23  ;;  %v437_v53 = vshll.u32 %v6398_v29, %v4310_v56  ;;  %v436_v20 = vor.u32 %v435_v6, %v434_v44  ;;  %3175 = vperm.xlu0 %3632, %v3172_v63  }
 0x11e   : > { %v442_v60 = vor.u32 %v441_v16, %v440_v46  ;;  %v443_v7 = vshll.u32 %v6395_v36, %v4310_v56  ;;  %v6448_v17 = vmov 1326507024   ;;  %v3368_v54 = vadd.s32 4294967294, %v1210_v23  ;;  %2235 = vperm.xlu1 %3631, %v3413_v38  }
 0x11f   : > { %v444_v22 = vshrl.u32 %v6448_v17, %v4339_v33  ;;  %v597_v62 = vor.u32 4788187, %v596_v39  ;;  %v4501_v28 = vshrl.u32 %v787_v14, 30  ;;  %v439_v52 = vor.u32 %v438_v40, %v437_v53 }
 0x120   : > { %vm520_vm10 = vcmp.lt.s32.totalorder %v3939_v55, 0  ;;  %v604_v6 = vsub.s32 4, %v4372_v61  ;;  %v422_v25 = vor.u32 8388608, %v421_v18  ;;  %vm446_vm11 = vcmp.lt.s32.totalorder %v4332_v26, 1 }
 0x121   : > { %v445_v44 = vor.u32 %v444_v22, %v443_v7  ;;  %v598_v56 = vand.u32 2147483647, %v597_v62  ;;  %v600_v46 = vcvt.s32.f32 %v593_v15  ;;  %v789_v16 = vshll.u32 %v4501_v28, 30 }
 0x122   : > { %vm449_vm12 = vcmp.lt.s32.totalorder %v4332_v26, 4  ;;  %v430_v23 = vshrl.u32 %v6445_v34, %v4339_v33  ;;  %vm447_vm13 = vcmp.lt.s32.totalorder %v4332_v26, 2  ;;  %v454_v40 = vsel %vm446_vm11, %v433_v51, %v436_v20 }
 0x123   : > { %v455_v63 = vsel %vm449_vm12, %v442_v60, 920167782  ;;  %v6449_v22 = vand.u32 2147483647, %v3939_v55  ;;  %v601_v15 = vmul.f32 %v600_v46, %v598_v56  ;;  %v4519_v39 = vsub.s32 %v786_v30, %v789_v16 }
 0x124   : > { %vm448_vm15 = vcmp.lt.s32.totalorder %v4332_v26, 3  ;;  %v451_v38 = vsel %vm449_vm12, %v439_v52, 2102212464  ;;  %v458_v33 = vsel %vm446_vm11, %v436_v20, %v439_v52  ;;  %v459_v53 = vsel %vm449_vm12, %v445_v44, 1326507024 }
 0x125   : > { %vm4515_vm14 = vcmp.le.f32.partialorder %v6449_v22, 0.7853982  ;;  %v456_v14 = vsel %vm448_vm15, %v439_v52, %v455_v63  ;;  %v462_v7 = vshll.u32 %v422_v25, 8  ;;  %vm3369_vm0 = vcmp.lt.s32.totalorder %v3368_v54, 0 }
 0x126   : > { %v792_v62 = vsub.s32 0, %v4519_v39  ;;  %v450_v22 = vsel %vm446_vm11, %v430_v23, %v433_v51  ;;  %v457_v56 = vsel %vm447_vm13, %v454_v40, %v456_v14  ;;  %v452_v30 = vsel %vm448_vm15, %v436_v20, %v451_v38 }
 0x127   : > { %v460_v46 = vsel %vm448_vm15, %v442_v60, %v459_v53  ;;  %v4529_v16 = vmul.u32.u64.low %v462_v7, %v457_v56  ;;  %v4530_v36 = vmul.u32.u64.high %v462_v7, %v457_v56, %v4529_v16  ;;  %v6452_v52 = vshll.u32 %v4169_v48, %v4345_v59 }
 0x128   : > { %v602_v44 = vxor.u32 2147483648, %v601_v15  ;;  %v3351_v63 = vmin.u32 %v792_v62, %v4519_v39  ;;  %v461_v51 = vsel %vm447_vm13, %v458_v33, %v460_v46  ;;  %v6453_v23 = vshll.u32 %v4383_v9, 23 }
 0x129   : > { %v4537_v25 = vor.u32 %v4444_v42, %v6452_v52  ;;  %v1114_v60 = vsub.s32 4294967266, %v4458_v58  ;;  %v4547_v40 = vmul.u32.u64.low %v462_v7, %v461_v51  ;;  %v4548_v38 = vmul.u32.u64.high %v462_v7, %v461_v51, %v4547_v40 }
 0x12a   : > { %v4544_v20 = vor.u32 4788187, %v6453_v23  ;;  %v4550_v14 = vsel %vm3369_vm0, 0, %v3368_v54  ;;  %v605_v48 = vsel %vm520_vm10, %v604_v6, %v4372_v61  ;;  %v794_v59 = vclz %v3351_v63 }
 0x12b   : > { %v453_v42 = vsel %vm447_vm13, %v450_v22, %v452_v30  ;;  %v4561_v53 = vadd.s32 %v4144_v31, %v4156_v5  ;;  %v472_v62 = vadd.s32 1, %v4530_v36  ;;  %v4567_v56 = vadd.s32 %v4236_v35, %v4247_v49 }
 0x12c   : > { %v603_v26 = vsel %vm520_vm10, %v602_v44, %v601_v15  ;;  %v3352_v61 = vadd.s32 4294967294, %v794_v59  ;;  %v1218_v6 = vsub.s32 4294967266, %v4550_v14  ;;  %v607_v22 = vsel %vm4515_vm14, 0, %v605_v48 }
 0x12d   : > { %v469_v30 = vmul.u32 %v462_v7, %v453_v42  ;;  %vm471_vm1 = vc.u32 %v4548_v38, %v4529_v16  ;;  %v4578_v5 = vadd.s32 127, %v1114_v60  ;;  %v606_v15 = vsel %vm4515_vm14, %v3939_v55, %v603_v26 }
 0x12e   : > { %vm3353_vm2 = vcmp.lt.s32.totalorder %v3352_v61, 0  ;;  %v473_v35 = vsel %vm471_vm1, %v472_v62, %v4530_v36  ;;  %v4585_v7 = vadd.s32 3, %v607_v22  ;;  %vm728_vm3 = vcmp.lt.s32.totalorder %v3947_v2, 0 }
 0x12f   : > { %v797_v46 = vsel %vm3353_vm2, 0, %v3352_v61  ;;  %v474_v52 = vadd.s32 %v473_v35, %v469_v30  ;;  %v782_v44 = vadd.s32 %v4437_v57, %v4422_v12  ;;  %v4590_v23 = vadd.s32 127, %v1218_v6 }
 0x130   : > { %v798_v63 = vsub.s32 32, %v797_v46  ;;  %v802_v51 = vsub.s32 4294967266, %v797_v46  ;;  %v812_v36 = vsub.s32 4, %v4501_v28  ;;  %v6397_v40 = vand.u32 2147483647, %v3945_v1 }
 0x131   : > { %v475_v60 = vadd.s32 536870912, %v474_v52  ;;  %3633 = vcosq.f32 %v606_v15  ;;  %v799_v18 = vshll.u32 %v4519_v39, %v797_v46  ;;  %v6454_v42 = vand.u32 2147483647, %v3947_v2 }
 0x132   : > { %v800_v48 = vshrl.u32 %v782_v44, %v798_v63  ;;  %v803_v59 = vadd.s32 127, %v802_v51  ;;  %v640_v57 = vshrl.u32 %v6446_v50, %v4326_v45  ;;  %v643_v26 = vshrl.u32 %v6398_v29, %v4326_v45 }
 0x133   : > { %vm4597_vm4 = vcmp.le.f32.partialorder %v6454_v42, 0.7853982  ;;  %v4601_v12 = vshrl.u32 %v475_v60, 30  ;;  %v6457_v61 = vmov 920167782   ;;  %v639_v30 = vshll.u32 %v6445_v34, %v4178_v8 }
 0x134   : > { %v649_v6 = vshrl.u32 %v6457_v61, %v4326_v45  ;;  %v801_v39 = vor.u32 %v800_v48, %v799_v18  ;;  %v804_v22 = vshll.u32 %v803_v59, 23  ;;  %v646_v35 = vshrl.u32 %v6447_v37, %v4326_v45 }
 0x135   : > { %v477_v46 = vshll.u32 %v4601_v12, 30  ;;  %v629_v44 = vand.u32 8388607, %v6397_v40  ;;  %v642_v63 = vshll.u32 %v6446_v50, %v4178_v8  ;;  %v648_v51 = vshll.u32 %v6447_v37, %v4178_v8 }
 0x136   : > { %3635 = vsinq.f32 %v606_v15  ;;  %v805_v60 = vor.u32 4788187, %v804_v22  ;;  %v645_v18 = vshll.u32 %v6398_v29, %v4178_v8  ;;  %v652_v48 = vshrl.u32 %v6448_v17, %v4326_v45 }
 0x137   : > { %v4624_v59 = vsub.s32 %v474_v52, %v477_v46  ;;  %v641_v42 = vor.u32 %v640_v57, %v639_v30  ;;  %v644_v31 = vor.u32 %v643_v26, %v642_v63  ;;  %v650_v9 = vor.u32 %v649_v6, %v648_v51 }
 0x138   : > { %v806_v40 = vand.u32 2147483647, %v805_v60  ;;  %v808_v33 = vcvt.s32.f32 %v801_v39  ;;  %v647_v49 = vor.u32 %v646_v35, %v645_v18  ;;  %v651_v54 = vshll.u32 %v6457_v61, %v4178_v8 }
 0x139   : > { %v813_v15 = vsel %vm728_vm3, %v812_v36, %v4501_v28  ;;  %v480_v22 = vsub.s32 0, %v4624_v59  ;;  %v630_v29 = vor.u32 8388608, %v629_v44  ;;  %v638_v52 = vshrl.u32 %v6445_v34, %v4326_v45 }
 0x13a   : > { %v809_v46 = vmul.f32 %v808_v33, %v806_v40  ;;  %v653_v57 = vor.u32 %v652_v48, %v651_v54  ;;  %vm654_vm5 = vcmp.lt.s32.totalorder %v4319_v10, 1  ;;  %vm657_vm6 = vcmp.lt.s32.totalorder %v4319_v10, 4 }
 0x13b   : > { %v3339_v26 = vmin.u32 %v480_v22, %v4624_v59  ;;  %vm656_vm7 = vcmp.lt.s32.totalorder %v4319_v10, 3  ;;  %v662_v8 = vsel %vm654_vm5, %v641_v42, %v644_v31  ;;  %v663_v28 = vsel %vm657_vm6, %v650_v9, 920167782  ;;  %v3634_v36 = vpop.eup %3633 }
 0x13c   : > { %v810_v6 = vxor.u32 2147483648, %v809_v46  ;;  %v815_v39 = vsel %vm4597_vm4, 0, %v813_v15  ;;  %v659_v45 = vsel %vm657_vm6, %v647_v49, 2102212464  ;;  %v664_v33 = vsel %vm656_vm7, %v647_v49, %v663_v28 }
 0x13d   : > { %v482_v54 = vclz %v3339_v26  ;;  %vm655_vm8 = vcmp.lt.s32.totalorder %v4319_v10, 2  ;;  %v658_v40 = vsel %vm654_vm5, %v638_v52, %v641_v42  ;;  %v666_v30 = vsel %vm654_vm5, %v644_v31, %v647_v49 }
 0x13e   : > { %v811_v35 = vsel %vm728_vm3, %v810_v6, %v809_v46  ;;  %v665_v44 = vsel %vm655_vm8, %v662_v8, %v664_v33  ;;  %v667_v63 = vsel %vm657_vm6, %v653_v57, 1326507024  ;;  %v670_v51 = vshll.u32 %v630_v29, 8 }
 0x13f   : > { %v814_v60 = vsel %vm4597_vm4, %v3947_v2, %v811_v35  ;;  %v3340_v18 = vadd.s32 4294967294, %v482_v54  ;;  %v660_v48 = vsel %vm656_vm7, %v644_v31, %v659_v45  ;;  %v668_v49 = vsel %vm656_vm7, %v650_v9, %v667_v63 }
 0x140   : > { %v3636_v42 = vpop.eup %3635  ;;  %3637 = vcosq.f32 %v814_v60  ;;  %v669_v15 = vsel %vm655_vm8, %v666_v30, %v668_v49  ;;  %v4662_v22 = vmul.u32.u64.low %v670_v51, %v665_v44  ;;  %v4663_v52 = vmul.u32.u64.high %v670_v51, %v665_v44, %v4662_v22 }
 0x141   : > { %3639 = vsinq.f32 %v814_v60  ;;  %vm3341_vm9 = vcmp.lt.s32.totalorder %v3340_v18, 0  ;;  %v4666_v29 = vmul.u32.u64.low %v670_v51, %v669_v15  ;;  %v4667_v62 = vmul.u32.u64.high %v670_v51, %v669_v15, %v4666_v29 }
 0x142   : > { %v6458_v46 = vsub.s32 32, %v4458_v58  ;;  %v612_v9 = vand.u32 3, %v4585_v7  ;;  %v485_v57 = vsel %vm3341_vm9, 0, %v3340_v18  ;;  %v661_v26 = vsel %vm655_vm8, %v658_v40, %v660_v48 }
 0x143   : > { %v1116_v8 = vshll.u32 %v4578_v5, 23  ;;  %v615_v28 = vxor.u32 2147483648, %v3636_v42  ;;  %v618_v6 = vxor.u32 2147483648, %v3634_v36  ;;  %v490_v45 = vsub.s32 4294967266, %v485_v57 }
 0x144   : > { %v1112_v31 = vshrl.u32 %v4561_v53, %v6458_v46  ;;  %v6459_v33 = vsub.s32 32, %v4550_v14  ;;  %v1220_v30 = vshll.u32 %v4590_v23, 23  ;;  %v819_v35 = vadd.s32 3, %v815_v39 }
 0x145   : > { %v680_v53 = vadd.s32 1, %v4663_v52  ;;  %v486_v44 = vsub.s32 32, %v485_v57  ;;  %v491_v7 = vadd.s32 127, %v490_v45  ;;  %v677_v63 = vmul.u32 %v670_v51, %v661_v26 }
 0x146   : > { %v1216_v54 = vshrl.u32 %v4567_v56, %v6459_v33  ;;  %vm679_vm10 = vc.u32 %v4667_v62, %v4662_v22  ;;  %vm614_vm11 = vcmp.eq.s32.totalorder %v612_v9, 0  ;;  %vm617_vm12 = vcmp.eq.s32.totalorder %v612_v9, 2 }
 0x147   : > { %v470_v10 = vadd.s32 %v4529_v16, %v4548_v38  ;;  %v681_v5 = vsel %vm679_vm10, %v680_v53, %v4663_v52  ;;  %v616_v40 = vsel %vm614_vm11, %v3634_v36, %v615_v28  ;;  %v619_v56 = vsel %vm617_vm12, %v618_v6, %v3636_v42 }
 0x148   : > { %vm818_vm13 = vweird.f32 %v3947_v2  ;;  %v492_v23 = vshll.u32 %v491_v7, 23  ;;  %v682_v39 = vadd.s32 %v681_v5, %v677_v63  ;;  %v1117_v60 = vor.u32 4788187, %v1116_v8 }
 0x149   : > { %v1215_v51 = vshll.u32 %v4377_v32, %v4550_v14  ;;  %v1221_v18 = vor.u32 4788187, %v1220_v30  ;;  %v820_v48 = vand.u32 3, %v819_v35  ;;  %v6460_v49 = vand.u32 2147483647, %v4450_v11 }
 0x14a   : > { %v6461_v15 = vcvt.s32.f32 %v4448_v47  ;;  %vm613_vm14 = vcmp.lt.s32.totalorder %v612_v9, 2  ;;  %v488_v16 = vshrl.u32 %v470_v10, %v486_v44  ;;  %v683_v38 = vadd.s32 536870912, %v682_v39  ;;  %v3638_v36 = vpop.eup %3637 }
 0x14b   : > { %v6462_v42 = vshll.u32 %v4292_v0, %v4458_v58  ;;  %v1217_v46 = vor.u32 %v1216_v54, %v1215_v51  ;;  %vm610_vm15 = vweird.f32 %v3939_v55  ;;  %v620_v26 = vsel %vm613_vm14, %v616_v40, %v619_v56  ;;  %v3640_v32 = vpop.eup %3639 }
 0x14c   : > { %v1017_v29 = vmul.f32 %v6461_v15, %v6460_v49  ;;  %v826_v14 = vxor.u32 2147483648, %v3638_v36  ;;  %v487_v8 = vshll.u32 %v4624_v59, %v485_v57  ;;  %v493_v11 = vor.u32 4788187, %v492_v23 }
 0x14d   : > { %v1113_v52 = vor.u32 %v1112_v31, %v6462_v42  ;;  %v4698_v28 = vshrl.u32 %v683_v38, 30  ;;  %v1118_v47 = vand.u32 2147483647, %v1117_v60  ;;  %v1222_v9 = vand.u32 2147483647, %v1221_v18 }
 0x14e   : > { %v823_v6 = vxor.u32 2147483648, %v3640_v32  ;;  %vm825_vm0 = vcmp.eq.s32.totalorder %v820_v48, 2  ;;  %vm822_vm1 = vcmp.eq.s32.totalorder %v820_v48, 0  ;;  %v489_v33 = vor.u32 %v488_v16, %v487_v8 }
 0x14f   : > { %v827_v45 = vsel %vm825_vm0, %v826_v14, %v3640_v32  ;;  %v685_v0 = vshll.u32 %v4698_v28, 30  ;;  %v1120_v58 = vcvt.s32.f32 %v1113_v52  ;;  %v621_v31 = vsel %vm610_vm15, nan, %v620_v26 }
 0x150   : > { %vm821_vm2 = vcmp.lt.s32.totalorder %v820_v48, 2  ;;  %v824_v54 = vsel %vm822_vm1, %v3638_v36, %v823_v6  ;;  %v1224_v30 = vcvt.s32.f32 %v1217_v46  ;;  %v494_v57 = vand.u32 2147483647, %v493_v11 }
 0x151   : > { %v828_v59 = vsel %vm821_vm2, %v824_v54, %v827_v45  ;;  %v686_v35 = vsub.s32 %v682_v39, %v685_v0  ;;  %v910_v53 = vand.u32 2147483647, %v4544_v20  ;;  %v1121_v44 = vmul.f32 %v1120_v58, %v1118_v47 }
 0x152   : > { %v829_v7 = vsel %vm818_vm13, nan, %v828_v59  ;;  %v1225_v63 = vmul.f32 %v1224_v30, %v1222_v9  ;;  %v496_v5 = vcvt.s32.f32 %v489_v33  ;;  %v912_v56 = vcvt.s32.f32 %v4537_v25 }
 0x153   : > { %v3457_v10 = vpack.c.bf16 %v829_v7, %v621_v31  ;;  %v688_v40 = vsub.s32 0, %v686_v35  ;;  %v1018_v55 = vxor.u32 2147483648, %v1017_v29  ;;  %v1122_v18 = vxor.u32 2147483648, %v1121_v44 }
 0x154   : > { %v497_v23 = vmul.f32 %v496_v5, %v494_v57  ;;  %v913_v51 = vmul.f32 %v912_v56, %v910_v53  ;;  %v1226_v48 = vxor.u32 2147483648, %v1225_v63  ;;  %vm832_vm3 = vcmp.lt.s32.totalorder %v3926_v41, 0 }
 0x155   : > { %3458 = vmatprep.subr.bf16.mxu0 %v3457_v10  ;;  %v3347_v60 = vmin.u32 %v688_v40, %v686_v35  ;;  %vm936_vm4 = vcmp.lt.s32.totalorder %v3929_v43, 0  ;;  %vm1040_vm5 = vcmp.lt.s32.totalorder %v3970_v19, 0  ;;  %vm1144_vm6 = vcmp.lt.s32.totalorder %v4062_v3, 0 }
 0x156   : > { %v1019_v2 = vsel %vm936_vm4, %v1018_v55, %v1017_v29  ;;  %v498_v20 = vxor.u32 2147483648, %v497_v23  ;;  %v914_v25 = vxor.u32 2147483648, %v913_v51  ;;  %v500_v15 = vsub.s32 4, %v4601_v12 }
 0x157   : > { %v690_v39 = vclz %v3347_v60  ;;  %v1123_v16 = vsel %vm1040_vm5, %v1122_v18, %v1121_v44  ;;  %v1227_v38 = vsel %vm1144_vm6, %v1226_v48, %v1225_v63  ;;  %v6463_v36 = vand.u32 2147483647, %v3929_v43 }
 0x158   : > { %v6400_v42 = vmov 0.0   ;;  %vm416_vm9 = vcmp.lt.s32.totalorder %v4081_v24, 0  ;;  %v678_v52 = vadd.s32 %v4662_v22, %v4667_v62  ;;  %v6466_v11 = vand.u32 2147483647, %v4062_v3 }
 0x159   : > { %v3348_v49 = vadd.s32 4294967294, %v690_v39  ;;  %vm4720_vm8 = vcmp.le.f32.partialorder %v6463_v36, 0.7853982  ;;  %1351 = vmatprep.mubr.f32.mxu0 %v6400_v42  ;;  %2314 = vmatprep.mubr.f32.mxu1 %v6400_v42  ;;  %v499_v32 = vsel %vm416_vm9, %v498_v20, %v497_v23  ;;  %v6469_v9 = vand.u32 2147483647, %v4081_v24 }
 0x15a   : > { %v1022_v26 = vsel %vm4720_vm8, %v3929_v43, %v1019_v2  ;;  %vm4734_vm10 = vcmp.le.f32.partialorder %v6466_v11, 0.7853982  ;;  %v501_v22 = vsel %vm416_vm9, %v500_v15, %v4601_v12  ;;  %v1020_v62 = vsub.s32 4, %v4180_v13 }
 0x15b   : > { %vm3349_vm7 = vcmp.lt.s32.totalorder %v3348_v49, 0  ;;  %vm4740_vm11 = vcmp.le.f32.partialorder %v6469_v9, 0.7853982  ;;  %v1230_v45 = vsel %vm4734_vm10, %v4062_v3, %v1227_v38  ;;  %3641 = vcosq.f32 %v1022_v26 }
 0x15c   : > { %v693_v46 = vsel %vm3349_vm7, 0, %v3348_v49  ;;  %v915_v31 = vsel %vm832_vm3, %v914_v25, %v913_v51  ;;  %v502_v54 = vsel %vm4740_vm11, %v4081_v24, %v499_v32  ;;  %3643 = vsinq.f32 %v1022_v26 }
 0x15d   : > { %v694_v14 = vsub.s32 32, %v693_v46  ;;  %v698_v8 = vsub.s32 4294967266, %v693_v46  ;;  %v695_v33 = vshll.u32 %v686_v35, %v693_v46  ;;  %v1228_v12 = vsub.s32 4, %v4334_v21 }
 0x15e   : > { %3645 = vcosq.f32 %v1230_v45  ;;  %v6472_v57 = vand.u32 2147483647, %v3970_v19  ;;  %v503_v53 = vsel %vm4740_vm11, 0, %v501_v22  ;;  %v1021_v63 = vsel %vm936_vm4, %v1020_v62, %v4180_v13 }
 0x15f   : > { %v696_v0 = vshrl.u32 %v678_v52, %v694_v14  ;;  %v699_v58 = vadd.s32 127, %v698_v8  ;;  %3647 = vsinq.f32 %v1230_v45  ;;  %v6475_v10 = vand.u32 2147483647, %v3926_v41 }
 0x160   : > { %vm4757_vm12 = vcmp.le.f32.partialorder %v6472_v57, 0.7853982  ;;  %3649 = vcosq.f32 %v502_v54  ;;  %v708_v40 = vsub.s32 4, %v4698_v28  ;;  %v1124_v55 = vsub.s32 4, %v4240_v4 }
 0x161   : > { %v697_v30 = vor.u32 %v696_v0, %v695_v33  ;;  %v700_v59 = vshll.u32 %v699_v58, 23  ;;  %v1126_v44 = vsel %vm4757_vm12, %v3970_v19, %v1123_v16  ;;  %vm4771_vm13 = vcmp.le.f32.partialorder %v6475_v10, 0.7853982 }
 0x162   : > { %3651 = vsinq.f32 %v502_v54  ;;  %v918_v56 = vsel %vm4771_vm13, %v3926_v41, %v915_v31  ;;  %v1229_v13 = vsel %vm1144_vm6, %v1228_v12, %v4334_v21  ;;  %v507_v51 = vadd.s32 3, %v503_v53 }
 0x163   : > { %v701_v7 = vor.u32 4788187, %v700_v59  ;;  %v704_v60 = vcvt.s32.f32 %v697_v30  ;;  %3653 = vcosq.f32 %v1126_v44  ;;  %v1023_v18 = vsel %vm4720_vm8, 0, %v1021_v63 }
 0x164   : > { %v916_v48 = vsub.s32 4, %v4122_v27  ;;  %3655 = vsinq.f32 %v1126_v44  ;;  %vm624_vm14 = vcmp.lt.s32.totalorder %v3945_v1, 0  ;;  %v1231_v20 = vsel %vm4734_vm10, 0, %v1229_v13 }
 0x165   : > { %v702_v23 = vand.u32 2147483647, %v701_v7  ;;  %3657 = vcosq.f32 %v918_v56  ;;  %v709_v2 = vsel %vm624_vm14, %v708_v40, %v4698_v28  ;;  %v1125_v21 = vsel %vm1040_vm5, %v1124_v55, %v4240_v4  ;;  %v3642_v49 = vpop.eup %3641 }
 0x166   : > { %3659 = vsinq.f32 %v918_v56  ;;  %v1027_v15 = vadd.s32 3, %v1023_v18  ;;  %v3644_v16 = vpop.eup %3643  ;;  %v4793_v38 = vand.u32 3, %v507_v51  ;;  %v6478_v36 = vand.u32 2147483647, %v3945_v1 }
 0x167   : > { %v705_v39 = vmul.f32 %v704_v60, %v702_v23  ;;  %v917_v28 = vsel %vm832_vm3, %v916_v48, %v4122_v27  ;;  %v1235_v26 = vadd.s32 3, %v1231_v20  ;;  %v1127_v4 = vsel %vm4757_vm12, 0, %v1125_v21 }
 0x168   : > { %vm623_vm15 = vcmp.le.f32.partialorder %v6478_v36, 0.7853982  ;;  %v3646_v29 = vpop.eup %3645  ;;  %v1028_v11 = vand.u32 3, %v1027_v15  ;;  %v919_v47 = vsel %vm4771_vm13, 0, %v917_v28  ;;  %v1034_v27 = vxor.u32 2147483648, %v3642_v49 }
 0x169   : > { %v706_v25 = vxor.u32 2147483648, %v705_v39  ;;  %v711_v46 = vsel %vm623_vm15, 0, %v709_v2  ;;  %v3648_v32 = vpop.eup %3647  ;;  %v1131_v22 = vadd.s32 3, %v1127_v4  ;;  %vm509_vm0 = vcmp.lt.s32.totalorder %v4793_v38, 2 }
 0x16a   : > { %v3650_v8 = vpop.eup %3649  ;;  %v715_v6 = vadd.s32 3, %v711_v46  ;;  %vm510_vm1 = vcmp.eq.s32.totalorder %v4793_v38, 0  ;;  %vm513_vm2 = vcmp.eq.s32.totalorder %v4793_v38, 2  ;;  %v1236_v45 = vand.u32 3, %v1235_v26 }
 0x16b   : > { %v707_v52 = vsel %vm624_vm14, %v706_v25, %v705_v39  ;;  %v1031_v0 = vxor.u32 2147483648, %v3644_v16  ;;  %v1239_v58 = vxor.u32 2147483648, %v3648_v32  ;;  %v1242_v31 = vxor.u32 2147483648, %v3646_v29 }
 0x16c   : > { %v710_v14 = vsel %vm623_vm15, %v3945_v1, %v707_v52  ;;  %v3652_v9 = vpop.eup %3651  ;;  %v923_v54 = vadd.s32 3, %v919_v47  ;;  %v514_v59 = vxor.u32 2147483648, %v3650_v8  ;;  %vm1029_vm3 = vcmp.lt.s32.totalorder %v1028_v11, 2 }
 0x16d   : > { %3661 = vcosq.f32 %v710_v14  ;;  %v3654_v62 = vpop.eup %3653  ;;  %v511_v30 = vxor.u32 2147483648, %v3652_v9  ;;  %vm1033_vm4 = vcmp.eq.s32.totalorder %v1028_v11, 2  ;;  %vm1234_vm5 = vweird.f32 %v4062_v3 }
 0x16e   : > { %3663 = vsinq.f32 %v710_v14  ;;  %v3656_v33 = vpop.eup %3655  ;;  %vm506_vm6 = vweird.f32 %v4081_v24  ;;  %v716_v35 = vand.u32 3, %v715_v6  ;;  %vm1030_vm7 = vcmp.eq.s32.totalorder %v1028_v11, 0 }
 0x16f   : > { %v3658_v12 = vpop.eup %3657  ;;  %v1035_v53 = vsel %vm1033_vm4, %v1034_v27, %v3644_v16  ;;  %v1132_v44 = vand.u32 3, %v1131_v22  ;;  %vm1026_vm8 = vweird.f32 %v3929_v43  ;;  %vm1238_vm9 = vcmp.eq.s32.totalorder %v1236_v45, 0  ;;  %v1246_v43 = vld [vmem:[%s6375_s3] sm:$0xff] }
 0x170   : > { %v3660_v57 = vpop.eup %3659  ;;  %vm1241_vm10 = vcmp.eq.s32.totalorder %v1236_v45, 2  ;;  %v1135_v7 = vxor.u32 2147483648, %v3656_v33  ;;  %v1138_v63 = vxor.u32 2147483648, %v3654_v62  ;;  %vm714_vm11 = vweird.f32 %v3945_v1  ;;  %v1247_v1 = vld [vmem:[%s6375_s3 + $0x8] sm:$0xff] }
 0x171   : > { %v1032_v10 = vsel %vm1030_vm7, %v3642_v49, %v1031_v0  ;;  %v1240_v5 = vsel %vm1238_vm9, %v3646_v29, %v1239_v58  ;;  %v1243_v40 = vsel %vm1241_vm10, %v1242_v31, %v3648_v32  ;;  %v924_v56 = vand.u32 3, %v923_v54 }
 0x172   : > { %v512_v55 = vsel %vm510_vm1, %v3650_v8, %v511_v30  ;;  %v515_v23 = vsel %vm513_vm2, %v514_v59, %v3652_v9  ;;  %v927_v60 = vxor.u32 2147483648, %v3660_v57  ;;  %v930_v13 = vxor.u32 2147483648, %v3658_v12 }
 0x173   : > { %vm721_vm12 = vcmp.eq.s32.totalorder %v716_v35, 2  ;;  %vm1237_vm13 = vcmp.lt.s32.totalorder %v1236_v45, 2  ;;  %vm1134_vm14 = vcmp.eq.s32.totalorder %v1132_v44, 0  ;;  %vm1137_vm15 = vcmp.eq.s32.totalorder %v1132_v44, 2 }
 0x174   : > { %v1036_v18 = vsel %vm1029_vm3, %v1032_v10, %v1035_v53  ;;  %v1244_v48 = vsel %vm1237_vm13, %v1240_v5, %v1243_v40  ;;  %v1136_v39 = vsel %vm1134_vm14, %v3654_v62, %v1135_v7  ;;  %v1139_v2 = vsel %vm1137_vm15, %v1138_v63, %v3656_v33 }
 0x175   : > { %v516_v21 = vsel %vm509_vm0, %v512_v55, %v515_v23  ;;  %vm926_vm1 = vcmp.eq.s32.totalorder %v924_v56, 0  ;;  %vm929_vm4 = vcmp.eq.s32.totalorder %v924_v56, 2  ;;  %vm1133_vm2 = vcmp.lt.s32.totalorder %v1132_v44, 2 }
 0x176   : > { %v928_v15 = vsel %vm926_vm1, %v3658_v12, %v927_v60  ;;  %v931_v16 = vsel %vm929_vm4, %v930_v13, %v3660_v57  ;;  %vm718_vm7 = vcmp.eq.s32.totalorder %v716_v35, 0  ;;  %v1245_v28 = vsel %vm1234_vm5, nan, %v1244_v48 }
 0x177   : > { %v3662_v51 = vpop.eup %3661  ;;  %v1140_v29 = vsel %vm1133_vm2, %v1136_v39, %v1139_v2  ;;  %v517_v52 = vsel %vm506_vm6, nan, %v516_v21  ;;  %vm717_vm3 = vcmp.lt.s32.totalorder %v716_v35, 2  ;;  %vm925_vm0 = vcmp.lt.s32.totalorder %v924_v56, 2 }
 0x178   : > { %v3664_v20 = vpop.eup %3663  ;;  %v722_v49 = vxor.u32 2147483648, %v3662_v51  ;;  %v1037_v26 = vsel %vm1026_vm8, nan, %v1036_v18  ;;  %v932_v4 = vsel %vm925_vm0, %v928_v15, %v931_v16  ;;  %vm1130_vm9 = vweird.f32 %v3970_v19  ;;  %v1249_v19 = vld [vmem:[%s6375_s3 + $0x18] sm:$0xff] }
 0x179   : > { %v719_v25 = vxor.u32 2147483648, %v3664_v20  ;;  %v3461_v14 = vpack.c.bf16 %v1245_v28, %v1037_v26  ;;  %v1141_v3 = vsel %vm1130_vm9, nan, %v1140_v29  ;;  %vm922_vm5 = vweird.f32 %v3926_v41  ;;  %v1248_v41 = vld [vmem:[%s6375_s3 + $0x10] sm:$0xff] }
 0x17a   : > { %v723_v36 = vsel %vm721_vm12, %v722_v49, %v3664_v20  ;;  %v933_v24 = vsel %vm922_vm5, nan, %v932_v4  ;;  %vm6438_vm6 = vcmask 261120   ;;  %v6482_v18 = vmov 2131351028  }
 0x17b   : > { %v720_v38 = vsel %vm718_vm7, %v3662_v51, %v719_v25  ;;  %v3463_v11 = vpack.c.bf16 %v1141_v3, %v933_v24 }
 0x17c   : > { %v724_v46 = vsel %vm717_vm3, %v720_v38, %v723_v36 }
 0x17d   : > { %v725_v32 = vsel %vm714_vm11, nan, %v724_v46 }
 0x17e   : > { %v3459_v8 = vpack.c.bf16 %v725_v32, %v517_v52 }
 0x180   : > { %3460 = vmatpush1.bf16.msra.mxu0 %v3459_v8 }
 0x181   : > { %3462 = vmatprep.subr.bf16.mxu0 %v3461_v14 }
 0x184   : > { %3464 = vmatpush1.bf16.msra.mxu0 %v3463_v11 }
 0x187   : > { %3370 = vmatmul.mubr.msk.f32.vlgmr.msra.gmra.mrb[0].mxu0 %vm6438_vm6, %v1246_v43 }
 0x188   : > { %1357 = vmatprep.mubr.f32.mxu0 %v6400_v42 }
 0x189   : > { %v1257_v47 = vpop.permute.xlu1 %1256 }
 0x18b   : > { %3371 = vmatmul.mubr.msk.f32.gmra.mrb[2].mxu0 %vm6438_vm6, %v1247_v1 }
 0x18c   : > { %1363 = vmatprep.mubr.f32.mxu0 %v6400_v42 }
 0x18f   : > { %3372 = vmatmul.mubr.msk.f32.gmra.mrb[4].mxu0 %vm6438_vm6, %v1248_v41 }
 0x190   : > { %1369 = vmatprep.mubr.f32.mxu0 %v6400_v42  ;;  %v1262_v62 = vpop.permute.xlu0 %1261 }
 0x193   : > { %3373 = vmatmul.mubr.msk.f32.gmra.mrb[6].mxu0 %vm6438_vm6, %v1249_v19 }
 0x194   : > { %3245 = vmatprep.mubr.f32.mxu0 %v6400_v42 }
 0x25a   : > { %v1353_v9 = vpop.f32.mrb[0].mxu0 }
 0x25b   : > { %v4850_v6 = vadd.f32 %v1353_v9, %v1257_v47  ;;  %v1355_v27 = vpop.f32.mrb[1].mxu0 }
 0x25c   : > { %v4861_v35 = vadd.f32 %v1355_v27, %v1257_v47 }
 0x25d   : > { %6479 = vst [vmem:[#allocation5_spill] sm:$0xff] %v4850_v6  ;;  %v1379_v22 = vand.u32 2139095040, %v4850_v6  ;;  %v6404_v57 = vand.u32 2147483647, %v4850_v6 }
 0x25e   : > { %v1359_v45 = vpop.f32.mrb[2].mxu0  ;;  %6481 = vst [vmem:[#allocation7_spill] sm:$0xff] %v4861_v35  ;;  %v1483_v56 = vand.u32 2139095040, %v4861_v35 }
 0x25f   : > { %v1380_v33 = vshrl.u32 %v1379_v22, 23  ;;  %v4853_v0 = vadd.f32 %v1359_v45, %v1262_v62  ;;  %v1361_v58 = vpop.f32.mrb[3].mxu0  ;;  %v1383_v5 = vand.u32 8388607, %v6404_v57 }
 0x260   : > { %v1484_v26 = vshrl.u32 %v1483_v56, 23  ;;  %v4895_v45 = vadd.f32 %v1361_v58, %v1262_v62 }
 0x261   : > { %6480 = vst [vmem:[#allocation6_spill] sm:$0xff] %v4853_v0  ;;  %v3374_v31 = vadd.s32 4294967169, %v1380_v33  ;;  %v1587_v54 = vand.u32 2139095040, %v4853_v0  ;;  %v1384_v15 = vor.u32 8388608, %v1383_v5  ;;  %v6402_v22 = vand.u32 2147483647, %v4853_v0 }
 0x262   : > { %v4856_v12 = vpop.f32.mrb[4].mxu0  ;;  %v1691_v62 = vand.u32 2139095040, %v4895_v45 }
 0x263   : > { %v1386_v30 = vadd.s32 1, %v3374_v31  ;;  %v4858_v59 = vpop.f32.mrb[5].mxu0  ;;  %v1588_v44 = vshrl.u32 %v1587_v54, 23  ;;  %v1424_v24 = vshll.u32 %v1384_v15, 8  ;;  %v1591_v5 = vand.u32 8388607, %v6402_v22 }
 0x265   : > { %vm1387_vm8 = vcmp.gt.s32.totalorder %v1386_v30, 0  ;;  %v3382_v13 = vadd.s32 4294967169, %v1588_v44  ;;  %v3378_v44 = vadd.s32 4294967169, %v1484_v26 }
 0x266   : > { %v1388_v53 = vsel %vm1387_vm8, %v1386_v30, 0  ;;  %v4863_v7 = vpop.f32.mrb[6].mxu0 }
 0x267   : > { %v1390_v63 = vand.u32 31, %v1388_v53  ;;  %v4865_v10 = vpop.f32.mrb[7].mxu0  ;;  %v1389_v55 = vshrl.u32 %v1388_v53, 5  ;;  %v1594_v14 = vadd.s32 1, %v3382_v13 }
 0x269   : > { %v1391_v40 = vsub.s32 32, %v1390_v63  ;;  %v1393_v23 = vshll.u32 %v6445_v34, %v1390_v63  ;;  %v1396_v60 = vshll.u32 %v6446_v50, %v1390_v63  ;;  %v1399_v39 = vshll.u32 %v6482_v18, %v1390_v63 }
 0x26a   : > { %v1402_v20 = vshll.u32 %v6447_v37, %v1390_v63  ;;  %v1405_v49 = vshll.u32 %v6457_v61, %v1390_v63  ;;  %vm1408_vm10 = vcmp.lt.s32.totalorder %v1389_v55, 1  ;;  %vm1411_vm11 = vcmp.lt.s32.totalorder %v1389_v55, 4 }
 0x26b   : > { %v1394_v51 = vshrl.u32 %v6446_v50, %v1391_v40  ;;  %v1397_v48 = vshrl.u32 %v6482_v18, %v1391_v40  ;;  %v1400_v2 = vshrl.u32 %v6447_v37, %v1391_v40  ;;  %v1403_v21 = vshrl.u32 %v6457_v61, %v1391_v40 }
 0x26c   : > { %v1406_v25 = vshrl.u32 %v6448_v17, %v1391_v40  ;;  %vm1410_vm12 = vcmp.lt.s32.totalorder %v1389_v55, 3  ;;  %vm1409_vm13 = vcmp.lt.s32.totalorder %v1389_v55, 2  ;;  %v1392_v11 = vshrl.u32 %v6445_v34, %v1391_v40 }
 0x26d   : > { %v1395_v16 = vor.u32 %v1394_v51, %v1393_v23  ;;  %v1398_v36 = vor.u32 %v1397_v48, %v1396_v60  ;;  %v1401_v28 = vor.u32 %v1400_v2, %v1399_v39  ;;  %v1404_v29 = vor.u32 %v1403_v21, %v1402_v20 }
 0x26e   : > { %v1407_v52 = vor.u32 %v1406_v25, %v1405_v49  ;;  %vm1595_vm14 = vcmp.gt.s32.totalorder %v1594_v14, 0  ;;  %v1592_v25 = vor.u32 8388608, %v1591_v5 }
 0x26f   : > { %v1416_v38 = vsel %vm1408_vm10, %v1395_v16, %v1398_v36  ;;  %v1420_v46 = vsel %vm1408_vm10, %v1398_v36, %v1401_v28  ;;  %v1417_v4 = vsel %vm1411_vm11, %v1404_v29, 920167782  ;;  %v1413_v43 = vsel %vm1411_vm11, %v1401_v28, 2102212464 }
 0x270   : > { %v1421_v32 = vsel %vm1411_vm11, %v1407_v52, 1326507024  ;;  %v1418_v3 = vsel %vm1410_vm12, %v1401_v28, %v1417_v4  ;;  %v1412_v33 = vsel %vm1408_vm10, %v1392_v11, %v1395_v16  ;;  %v1414_v31 = vsel %vm1410_vm12, %v1398_v36, %v1413_v43  ;;  %v1267_v36 = vpop.permute.xlu1 %1266 }
 0x271   : > { %v1422_v8 = vsel %vm1410_vm12, %v1404_v29, %v1421_v32  ;;  %v1419_v1 = vsel %vm1409_vm13, %v1416_v38, %v1418_v3  ;;  %v1596_v54 = vsel %vm1595_vm14, %v1594_v14, 0  ;;  %v1415_v63 = vsel %vm1409_vm13, %v1412_v33, %v1414_v31 }
 0x272   : > { %v1423_v41 = vsel %vm1409_vm13, %v1420_v46, %v1422_v8  ;;  %v4890_v9 = vmul.u32.u64.low %v1424_v24, %v1419_v1  ;;  %v4891_v27 = vmul.u32.u64.high %v1424_v24, %v1419_v1, %v4890_v9  ;;  %v1598_v30 = vand.u32 31, %v1596_v54 }
 0x273   : > { %v4887_v19 = vmul.u32.u64.low %v1424_v24, %v1423_v41  ;;  %v4888_v47 = vmul.u32.u64.high %v1424_v24, %v1423_v41, %v4887_v19  ;;  %v4906_v58 = vshrl.u32 %v1596_v54, 5  ;;  %v1431_v49 = vmul.u32 %v1424_v24, %v1415_v63 }
 0x274   : > { %v1434_v53 = vadd.s32 1, %v4891_v27  ;;  %v1599_v40 = vsub.s32 32, %v1598_v30  ;;  %v1601_v56 = vshll.u32 %v6445_v34, %v1598_v30  ;;  %v1604_v23 = vshll.u32 %v6446_v50, %v1598_v30 }
 0x275   : > { %vm1433_vm15 = vc.u32 %v4888_v47, %v4890_v9  ;;  %v1607_v60 = vshll.u32 %v6482_v18, %v1598_v30  ;;  %v1610_v48 = vshll.u32 %v6447_v37, %v1598_v30  ;;  %v1613_v20 = vshll.u32 %v6457_v61, %v1598_v30 }
 0x276   : > { %v1435_v13 = vsel %vm1433_vm15, %v1434_v53, %v4891_v27  ;;  %v1602_v51 = vshrl.u32 %v6446_v50, %v1599_v40  ;;  %v1605_v55 = vshrl.u32 %v6482_v18, %v1599_v40  ;;  %v1608_v39 = vshrl.u32 %v6447_v37, %v1599_v40 }
 0x277   : > { %v1611_v2 = vshrl.u32 %v6457_v61, %v1599_v40  ;;  %v1614_v21 = vshrl.u32 %v6448_v17, %v1599_v40  ;;  %vm1616_vm1 = vcmp.lt.s32.totalorder %v4906_v58, 1  ;;  %v1436_v38 = vadd.s32 %v1435_v13, %v1431_v49 }
 0x278   : > { %v1603_v15 = vor.u32 %v1602_v51, %v1601_v56  ;;  %v1606_v16 = vor.u32 %v1605_v55, %v1604_v23  ;;  %v1609_v28 = vor.u32 %v1608_v39, %v1607_v60  ;;  %vm1619_vm4 = vcmp.lt.s32.totalorder %v4906_v58, 4 }
 0x279   : > { %v1612_v29 = vor.u32 %v1611_v2, %v1610_v48  ;;  %v1615_v52 = vor.u32 %v1614_v21, %v1613_v20  ;;  %v4924_v26 = vadd.f32 %v4856_v12, %v1267_v36  ;;  %vm1618_vm2 = vcmp.lt.s32.totalorder %v4906_v58, 3 }
 0x27a   : > { %v1624_v46 = vsel %vm1616_vm1, %v1603_v15, %v1606_v16  ;;  %v1628_v32 = vsel %vm1616_vm1, %v1606_v16, %v1609_v28  ;;  %v1490_v3 = vadd.s32 1, %v3378_v44  ;;  %vm1617_vm7 = vcmp.lt.s32.totalorder %v4906_v58, 2 }
 0x27b   : > { %6483 = vst [vmem:[#allocation8_spill] sm:$0xff] %v4924_v26  ;;  %v1625_v4 = vsel %vm1619_vm4, %v1612_v29, 920167782  ;;  %v1629_v14 = vsel %vm1619_vm4, %v1615_v52, 1326507024  ;;  %v1632_v43 = vshll.u32 %v1592_v25, 8  ;;  %v1600_v5 = vshrl.u32 %v6445_v34, %v1599_v40 }
 0x27c   : > { %v1626_v8 = vsel %vm1618_vm2, %v1609_v28, %v1625_v4  ;;  %v1630_v12 = vsel %vm1618_vm2, %v1612_v29, %v1629_v14  ;;  %v1437_v1 = vadd.s32 536870912, %v1436_v38  ;;  %v1692_v27 = vshrl.u32 %v1691_v62, 23 }
 0x27d   : > { %v1627_v24 = vsel %vm1617_vm7, %v1624_v46, %v1626_v8  ;;  %v1631_v11 = vsel %vm1617_vm7, %v1628_v32, %v1630_v12  ;;  %vm1491_vm3 = vcmp.gt.s32.totalorder %v1490_v3, 0  ;;  %v1795_v54 = vand.u32 2139095040, %v4924_v26 }
 0x27e   : > { %v4942_v41 = vmul.u32.u64.low %v1632_v43, %v1627_v24  ;;  %v4943_v19 = vmul.u32.u64.high %v1632_v43, %v1627_v24, %v4942_v41  ;;  %v4946_v33 = vmul.u32.u64.low %v1632_v43, %v1631_v11  ;;  %v4947_v31 = vmul.u32.u64.high %v1632_v43, %v1631_v11, %v4946_v33 }
 0x27f   : > { %v4950_v30 = vshrl.u32 %v1437_v1, 30  ;;  %v4952_v53 = vsel %vm1491_vm3, %v1490_v3, 0  ;;  %v1621_v44 = vsel %vm1619_vm4, %v1609_v28, 2102212464  ;;  %v1796_v63 = vshrl.u32 %v1795_v54, 23 }
 0x280   : > { %v3386_v56 = vadd.s32 4294967169, %v1692_v27  ;;  %v4958_v23 = vadd.f32 %v4858_v59, %v1267_v36  ;;  %v4961_v60 = vand.u32 31, %v4952_v53  ;;  %v1620_v13 = vsel %vm1616_vm1, %v1600_v5, %v1603_v15  ;;  %v5011_v5 = vpop.permute.xlu1 %1271 }
 0x281   : > { %6484 = vst [vmem:[#allocation9_spill] sm:$0xff] %v4950_v30  ;;  %v3390_v62 = vadd.s32 4294967169, %v1796_v63  ;;  %v1622_v51 = vsel %vm1618_vm2, %v1606_v16, %v1621_v44  ;;  %v1439_v55 = vshll.u32 %v4950_v30, 30  ;;  %v1642_v48 = vadd.s32 1, %v4943_v19 }
 0x282   : > { %6485 = vst [vmem:[#allocation10_spill] sm:$0xff] %v4958_v23  ;;  %vm1641_vm0 = vc.u32 %v4947_v31, %v4942_v41  ;;  %v1698_v59 = vadd.s32 1, %v3386_v56  ;;  %v1899_v40 = vand.u32 2139095040, %v4958_v23  ;;  %v1623_v2 = vsel %vm1617_vm7, %v1620_v13, %v1622_v51 }
 0x283   : > { %v1802_v39 = vadd.s32 1, %v3390_v62  ;;  %v4975_v20 = vsub.s32 32, %v4961_v60  ;;  %v4977_v21 = vsub.s32 %v1436_v38, %v1439_v55  ;;  %v1643_v49 = vsel %vm1641_vm0, %v1642_v48, %v4943_v19 }
 0x284   : > { %v6406_v25 = vand.u32 2147483647, %v4924_v26  ;;  %v1639_v16 = vmul.u32 %v1632_v43, %v1623_v2  ;;  %vm1699_vm5 = vcmp.gt.s32.totalorder %v1698_v59, 0  ;;  %v1900_v36 = vshrl.u32 %v1899_v40, 23 }
 0x285   : > { %vm1803_vm9 = vcmp.gt.s32.totalorder %v1802_v39, 0  ;;  %6486 = vst [vmem:[#allocation11_spill] sm:$0xff] %v4977_v21  ;;  %v6403_v29 = vand.u32 2147483647, %v4861_v35  ;;  %v4984_v58 = vshll.u32 %v6447_v37, %v4961_v60  ;;  %v4988_v52 = vshrl.u32 %v6457_v61, %v4975_v20 }
 0x286   : > { %v1804_v15 = vsel %vm1803_vm9, %v1802_v39, 0  ;;  %v4992_v38 = vshrl.u32 %v6448_v17, %v4975_v20  ;;  %v4994_v46 = vadd.s32 %v1643_v49, %v1639_v16  ;;  %v1442_v4 = vsub.s32 0, %v4977_v21 }
 0x287   : > { %v1806_v28 = vand.u32 31, %v1804_v15  ;;  %v4997_v32 = vsel %vm1699_vm5, %v1698_v59, 0  ;;  %v1799_v14 = vand.u32 8388607, %v6406_v25  ;;  %v1805_v8 = vshrl.u32 %v1804_v15, 5 }
 0x288   : > { %v3394_v11 = vadd.s32 4294967169, %v1900_v36  ;;  %v1645_v33 = vadd.s32 536870912, %v4994_v46  ;;  %v5015_v55 = vmin.u32 %v1442_v4, %v4977_v21  ;;  %v6405_v39 = vand.u32 2147483647, %v4958_v23 }
 0x289   : > { %v1807_v3 = vsub.s32 32, %v1806_v28  ;;  %v1809_v12 = vshll.u32 %v6445_v34, %v1806_v28  ;;  %v1812_v24 = vshll.u32 %v6446_v50, %v1806_v28  ;;  %v1815_v19 = vshll.u32 %v6482_v18, %v1806_v28 }
 0x28a   : > { %v1818_v54 = vshll.u32 %v6447_v37, %v1806_v28  ;;  %v1821_v63 = vshll.u32 %v6457_v61, %v1806_v28  ;;  %v5020_v59 = vadd.f32 %v4863_v7, %v5011_v5  ;;  %v1800_v40 = vor.u32 8388608, %v1799_v14 }
 0x28b   : > { %v1810_v43 = vshrl.u32 %v6446_v50, %v1807_v3  ;;  %v1813_v1 = vshrl.u32 %v6482_v18, %v1807_v3  ;;  %v1816_v27 = vshrl.u32 %v6447_v37, %v1807_v3  ;;  %v1819_v44 = vshrl.u32 %v6457_v61, %v1807_v3 }
 0x28c   : > { %v1822_v51 = vshrl.u32 %v6448_v17, %v1807_v3  ;;  %6487 = vst [vmem:[#allocation12_spill] sm:$0xff] %v5020_v59  ;;  %vm1824_vm8 = vcmp.lt.s32.totalorder %v1805_v8, 1  ;;  %v1906_v49 = vadd.s32 1, %v3394_v11  ;;  %v5022_v15 = vshrl.u32 %v1645_v33, 30 }
 0x28d   : > { %v1811_v56 = vor.u32 %v1810_v43, %v1809_v12  ;;  %v1814_v62 = vor.u32 %v1813_v1, %v1812_v24  ;;  %v1817_v13 = vor.u32 %v1816_v27, %v1815_v19  ;;  %v1820_v48 = vor.u32 %v1819_v44, %v1818_v54 }
 0x28e   : > { %v1823_v2 = vor.u32 %v1822_v51, %v1821_v63  ;;  %6488 = vst [vmem:[#allocation13_spill] sm:$0xff] %v5022_v15  ;;  %vm1826_vm10 = vcmp.lt.s32.totalorder %v1805_v8, 3  ;;  %vm1827_vm11 = vcmp.lt.s32.totalorder %v1805_v8, 4  ;;  %v1808_v24 = vshrl.u32 %v6445_v34, %v1807_v3 }
 0x28f   : > { %v1832_v16 = vsel %vm1824_vm8, %v1811_v56, %v1814_v62  ;;  %v1829_v36 = vsel %vm1827_vm11, %v1817_v13, 2102212464  ;;  %v1833_v28 = vsel %vm1827_vm11, %v1820_v48, 920167782  ;;  %v1836_v4 = vsel %vm1824_vm8, %v1814_v62, %v1817_v13 }
 0x290   : > { %v1837_v12 = vsel %vm1827_vm11, %v1823_v2, 1326507024  ;;  %vm1825_vm12 = vcmp.lt.s32.totalorder %v1805_v8, 2  ;;  %v1834_v7 = vsel %vm1826_vm10, %v1817_v13, %v1833_v28  ;;  %v2003_v14 = vand.u32 2139095040, %v5020_v59 }
 0x291   : > { %v1835_v11 = vsel %vm1825_vm12, %v1832_v16, %v1834_v7  ;;  %v1838_v43 = vsel %vm1826_vm10, %v1820_v48, %v1837_v12  ;;  %v1840_v1 = vshll.u32 %v1800_v40, 8  ;;  %vm1907_vm13 = vcmp.gt.s32.totalorder %v1906_v49, 0 }
 0x292   : > { %v1828_v19 = vsel %vm1824_vm8, %v1808_v24, %v1811_v56  ;;  %v1830_v27 = vsel %vm1826_vm10, %v1814_v62, %v1829_v36  ;;  %v1839_v33 = vsel %vm1825_vm12, %v1836_v4, %v1838_v43  ;;  %v1903_v3 = vand.u32 8388607, %v6405_v39 }
 0x293   : > { %v5036_v54 = vmul.u32.u64.low %v1840_v1, %v1839_v33  ;;  %v5037_v44 = vmul.u32.u64.high %v1840_v1, %v1839_v33, %v5036_v54  ;;  %v5039_v63 = vmul.u32.u64.low %v1840_v1, %v1835_v11  ;;  %v5040_v13 = vmul.u32.u64.high %v1840_v1, %v1835_v11, %v5039_v63 }
 0x294   : > { %v5045_v51 = vshll.u32 %v6457_v61, %v4961_v60  ;;  %v1647_v56 = vshll.u32 %v5022_v15, 30  ;;  %v1908_v48 = vsel %vm1907_vm13, %v1906_v49, 0  ;;  %v2004_v62 = vshrl.u32 %v2003_v14, 23 }
 0x295   : > { %v5049_v40 = vshrl.u32 %v4952_v53, 5  ;;  %v1831_v2 = vsel %vm1825_vm12, %v1828_v19, %v1830_v27  ;;  %v1910_v16 = vand.u32 31, %v1908_v48  ;;  %v5054_v36 = vand.u32 8388607, %v6403_v29 }
 0x296   : > { %v5059_v4 = vor.u32 %v4988_v52, %v4984_v58  ;;  %v1511_v49 = vor.u32 %v4992_v38, %v5045_v51  ;;  %v5064_v12 = vand.u32 31, %v4997_v32  ;;  %vm1849_vm14 = vc.u32 %v5037_v44, %v5039_v63 }
 0x297   : > { %v1850_v53 = vadd.s32 1, %v5040_v13  ;;  %v1904_v8 = vor.u32 8388608, %v1903_v3  ;;  %v1911_v24 = vsub.s32 32, %v1910_v16  ;;  %v5070_v7 = vsub.s32 %v4994_v46, %v1647_v56 }
 0x298   : > { %v1847_v14 = vmul.u32 %v1840_v1, %v1831_v2  ;;  %v1913_v58 = vshll.u32 %v6445_v34, %v1910_v16  ;;  %v3398_v52 = vadd.s32 4294967169, %v2004_v62  ;;  %v1916_v43 = vshll.u32 %v6446_v50, %v1910_v16 }
 0x299   : > { %6489 = vst [vmem:[#allocation14_spill] sm:$0xff] %v5070_v7  ;;  %v1851_v11 = vsel %vm1849_vm14, %v1850_v53, %v5040_v13  ;;  %v1914_v38 = vshrl.u32 %v6446_v50, %v1911_v24  ;;  %v1917_v19 = vshrl.u32 %v6482_v18, %v1911_v24  ;;  %v1909_v33 = vshrl.u32 %v1908_v48, 5 }
 0x29a   : > { %v1852_v27 = vadd.s32 %v1851_v11, %v1847_v14  ;;  %v1919_v3 = vshll.u32 %v6482_v18, %v1910_v16  ;;  %v1920_v54 = vshrl.u32 %v6447_v37, %v1911_v24  ;;  %v1922_v1 = vshll.u32 %v6447_v37, %v1910_v16 }
 0x29b   : > { %v1915_v46 = vor.u32 %v1914_v38, %v1913_v58  ;;  %v1918_v51 = vor.u32 %v1917_v19, %v1916_v43  ;;  %v1923_v56 = vshrl.u32 %v6457_v61, %v1911_v24  ;;  %v1944_v2 = vshll.u32 %v1904_v8, 8 }
 0x29c   : > { %v1853_v62 = vadd.s32 536870912, %v1852_v27  ;;  %v1921_v13 = vor.u32 %v1920_v54, %v1919_v3  ;;  %v6407_v53 = vand.u32 2147483647, %v5020_v59  ;;  %v1650_v42 = vsub.s32 0, %v5070_v7 }
 0x29d   : > { %v1924_v22 = vor.u32 %v1923_v56, %v1922_v1  ;;  %v1925_v48 = vshll.u32 %v6457_v61, %v1910_v16  ;;  %v1926_v14 = vshrl.u32 %v6448_v17, %v1911_v24  ;;  %vm1928_vm15 = vcmp.lt.s32.totalorder %v1909_v33, 1 }
 0x29e   : > { %v5085_v11 = vshrl.u32 %v1853_v62, 30  ;;  %vm1931_vm1 = vcmp.lt.s32.totalorder %v1909_v33, 4  ;;  %v2010_v58 = vadd.s32 1, %v3398_v52  ;;  %v1912_v38 = vshrl.u32 %v6445_v34, %v1911_v24 }
 0x29f   : > { %v1927_v43 = vor.u32 %v1926_v14, %v1925_v48  ;;  %v1933_v19 = vsel %vm1931_vm1, %v1921_v13, 2102212464  ;;  %v1936_v3 = vsel %vm1928_vm15, %v1915_v46, %v1918_v51  ;;  %vm1929_vm4 = vcmp.lt.s32.totalorder %v1909_v33, 2 }
 0x2a0   : > { %6490 = vst [vmem:[#allocation15_spill] sm:$0xff] %v5085_v11  ;;  %v1855_v8 = vshll.u32 %v5085_v11, 30  ;;  %vm1930_vm2 = vcmp.lt.s32.totalorder %v1909_v33, 3  ;;  %v1937_v54 = vsel %vm1931_vm1, %v1924_v22, 920167782  ;;  %v1932_v1 = vsel %vm1928_vm15, %v1912_v38, %v1915_v46 }
 0x2a1   : > { %v1938_v56 = vsel %vm1930_vm2, %v1921_v13, %v1937_v54  ;;  %v1940_v16 = vsel %vm1928_vm15, %v1918_v51, %v1921_v13  ;;  %v1941_v29 = vsel %vm1931_vm1, %v1927_v43, 1326507024  ;;  %v1934_v62 = vsel %vm1930_vm2, %v1918_v51, %v1933_v19 }
 0x2a2   : > { %v5089_v57 = vsub.s32 %v1852_v27, %v1855_v8  ;;  %v1939_v39 = vsel %vm1929_vm4, %v1936_v3, %v1938_v56  ;;  %v1942_v52 = vsel %vm1930_vm2, %v1924_v22, %v1941_v29  ;;  %vm2011_vm7 = vcmp.gt.s32.totalorder %v2010_v58, 0 }
 0x2a3   : > { %v1943_v24 = vsel %vm1929_vm4, %v1940_v16, %v1942_v52  ;;  %v5093_v48 = vmul.u32.u64.low %v1944_v2, %v1939_v39  ;;  %v5094_v14 = vmul.u32.u64.high %v1944_v2, %v1939_v39, %v5093_v48  ;;  %v3383_v25 = vmin.u32 %v1650_v42, %v5070_v7 }
 0x2a4   : > { %v5098_v28 = vmul.u32.u64.low %v1944_v2, %v1943_v24  ;;  %v5099_v46 = vmul.u32.u64.high %v1944_v2, %v1943_v24, %v5098_v28  ;;  %v2012_v13 = vsel %vm2011_vm7, %v2010_v58, 0  ;;  %vm1515_vm3 = vcmp.lt.s32.totalorder %v5049_v40, 4 }
 0x2a5   : > { %v1935_v27 = vsel %vm1929_vm4, %v1932_v1, %v1934_v62  ;;  %v2007_v22 = vand.u32 8388607, %v6407_v53  ;;  %v2014_v29 = vand.u32 31, %v2012_v13  ;;  %v5108_v39 = vsel %vm1515_vm3, %v5059_v4, 920167782 }
 0x2a6   : > { %v5112_v42 = vsel %vm1515_vm3, %v1511_v49, 1326507024  ;;  %v1858_v28 = vsub.s32 0, %v5089_v57  ;;  %v6491_v33 = vclz %v5015_v55  ;;  %v5121_v38 = vsub.s32 32, %v5064_v12 }
 0x2a7   : > { %v1954_v43 = vadd.s32 1, %v5094_v14  ;;  %v2015_v19 = vsub.s32 32, %v2014_v29  ;;  %v1652_v3 = vclz %v3383_v25  ;;  %v1951_v8 = vmul.u32 %v1944_v2, %v1935_v27 }
 0x2a8   : > { %v5118_v58 = vadd.s32 4294967294, %v6491_v33  ;;  %vm1953_vm0 = vc.u32 %v5099_v46, %v5093_v48  ;;  %v5128_v49 = vadd.f32 %v4865_v10, %v5011_v5  ;;  %v2008_v55 = vor.u32 8388608, %v2007_v22 }
 0x2a9   : > { %v1955_v54 = vsel %vm1953_vm0, %v1954_v43, %v5094_v14  ;;  %v2018_v1 = vshrl.u32 %v6446_v50, %v2015_v19  ;;  %v2021_v56 = vshrl.u32 %v6482_v18, %v2015_v19  ;;  %v3391_v16 = vmin.u32 %v1858_v28, %v5089_v57 }
 0x2aa   : > { %6492 = vst [vmem:[#allocation16_spill] sm:$0xff] %v5128_v49  ;;  %v1956_v62 = vadd.s32 %v1955_v54, %v1951_v8  ;;  %v2017_v25 = vshll.u32 %v6445_v34, %v2014_v29  ;;  %v2024_v2 = vshrl.u32 %v6447_v37, %v2015_v19  ;;  %v2020_v52 = vshll.u32 %v6446_v50, %v2014_v29 }
 0x2ab   : > { %v2023_v24 = vshll.u32 %v6482_v18, %v2014_v29  ;;  %v2026_v10 = vshll.u32 %v6447_v37, %v2014_v29  ;;  %v2027_v5 = vshrl.u32 %v6457_v61, %v2015_v19  ;;  %v2013_v27 = vshrl.u32 %v2012_v13, 5 }
 0x2ac   : > { %v1957_v14 = vadd.s32 536870912, %v1956_v62  ;;  %v2019_v22 = vor.u32 %v2018_v1, %v2017_v25  ;;  %v2030_v33 = vshrl.u32 %v6448_v17, %v2015_v19  ;;  %v2022_v43 = vor.u32 %v2021_v56, %v2020_v52 }
 0x2ad   : > { %v2025_v28 = vor.u32 %v2024_v2, %v2023_v24  ;;  %v2028_v8 = vor.u32 %v2027_v5, %v2026_v10  ;;  %v2029_v54 = vshll.u32 %v6457_v61, %v2014_v29  ;;  %v5144_v53 = vadd.s32 %v4890_v9, %v4888_v47 }
 0x2ae   : > { %v5147_v51 = vshrl.u32 %v4997_v32, 5  ;;  %v1715_v11 = vshrl.u32 %v6457_v61, %v5121_v38  ;;  %v1860_v15 = vclz %v3391_v16  ;;  %vm3377_vm9 = vcmp.lt.s32.totalorder %v5118_v58, 0 }
 0x2af   : > { %v1718_v13 = vshrl.u32 %v6448_v17, %v5121_v38  ;;  %v2031_v1 = vor.u32 %v2030_v33, %v2029_v54  ;;  %v2107_v56 = vand.u32 2139095040, %v5128_v49  ;;  %v3384_v29 = vadd.s32 4294967294, %v1652_v3 }
 0x2b0   : > { %v5155_v25 = vshrl.u32 %v1957_v14, 30  ;;  %vm2032_vm5 = vcmp.lt.s32.totalorder %v2013_v27, 1  ;;  %vm2035_vm8 = vcmp.lt.s32.totalorder %v2013_v27, 4  ;;  %v2048_v2 = vshll.u32 %v2008_v55, 8 }
 0x2b1   : > { %v2037_v47 = vsel %vm2035_vm8, %v2025_v28, 2102212464  ;;  %v2040_v9 = vsel %vm2032_vm5, %v2019_v22, %v2022_v43  ;;  %v2041_v32 = vsel %vm2035_vm8, %v2028_v8, 920167782  ;;  %v3392_v52 = vadd.s32 4294967294, %v1860_v15 }
 0x2b2   : > { %6493 = vst [vmem:[#allocation17_spill] sm:$0xff] %v5155_v25  ;;  %v2016_v16 = vshrl.u32 %v6445_v34, %v2015_v19  ;;  %vm2033_vm10 = vcmp.lt.s32.totalorder %v2013_v27, 2  ;;  %vm2034_vm11 = vcmp.lt.s32.totalorder %v2013_v27, 3  ;;  %v2044_v10 = vsel %vm2032_vm5, %v2022_v43, %v2025_v28 }
 0x2b3   : > { %v2042_v24 = vsel %vm2034_vm11, %v2025_v28, %v2041_v32  ;;  %v2045_v5 = vsel %vm2035_vm8, %v2031_v1, 1326507024  ;;  %v2108_v33 = vshrl.u32 %v2107_v56, 23  ;;  %v1959_v54 = vshll.u32 %v5155_v25, 30 }
 0x2b4   : > { %v2036_v3 = vsel %vm2032_vm5, %v2016_v16, %v2019_v22  ;;  %v2038_v14 = vsel %vm2034_vm11, %v2022_v43, %v2037_v47  ;;  %v2043_v35 = vsel %vm2033_vm10, %v2040_v9, %v2042_v24  ;;  %v2046_v59 = vsel %vm2034_vm11, %v2028_v8, %v2045_v5 }
 0x2b5   : > { %v5160_v30 = vmul.u32.u64.low %v2048_v2, %v2043_v35  ;;  %v5161_v0 = vmul.u32.u64.high %v2048_v2, %v2043_v35, %v5160_v30  ;;  %v3402_v15 = vadd.s32 4294967169, %v2108_v33  ;;  %v1714_v19 = vshll.u32 %v6447_v37, %v5064_v12 }
 0x2b6   : > { %v1717_v55 = vshll.u32 %v6457_v61, %v5064_v12  ;;  %vm1723_vm12 = vcmp.lt.s32.totalorder %v5147_v51, 4  ;;  %v2047_v28 = vsel %vm2033_vm10, %v2044_v10, %v2046_v59  ;;  %v5173_v22 = vsel %vm3377_vm9, 0, %v5118_v58 }
 0x2b7   : > { %6494 = vst [vmem:[#allocation18_spill] sm:$0xff] %v5160_v30  ;;  %6495 = vst [vmem:[#allocation19_spill] sm:$0xff] %v5173_v22  ;;  %v5175_v43 = vmul.u32.u64.low %v2048_v2, %v2047_v28  ;;  %v5176_v35 = vmul.u32.u64.high %v2048_v2, %v2047_v28, %v5175_v43  ;;  %v2114_v8 = vadd.s32 1, %v3402_v15  ;;  %v5178_v1 = vor.u32 %v1715_v11, %v1714_v19 }
 0x2b8   : > { %v1719_v56 = vor.u32 %v1718_v13, %v1717_v55  ;;  %v5180_v47 = vsub.s32 %v1956_v62, %v1959_v54  ;;  %v2039_v9 = vsel %vm2033_vm10, %v2036_v3, %v2038_v14  ;;  %vm3385_vm13 = vcmp.lt.s32.totalorder %v3384_v29, 0 }
 0x2b9   : > { %6496 = vst [vmem:[#allocation20_spill] sm:$0xff] %v5176_v35  ;;  %vm3393_vm14 = vcmp.lt.s32.totalorder %v3392_v52, 0  ;;  %v2058_v59 = vadd.s32 1, %v5161_v0  ;;  %vm2115_vm15 = vcmp.gt.s32.totalorder %v2114_v8, 0  ;;  %v1448_v32 = vsub.s32 32, %v5173_v22 }
 0x2ba   : > { %v5187_v58 = vadd.s32 %v4942_v41, %v4947_v31  ;;  %v6420_v16 = vand.u32 2147483647, %v5128_v49  ;;  %v2116_v11 = vsel %vm2115_vm15, %v2114_v8, 0  ;;  %v1452_v13 = vsub.s32 4294967266, %v5173_v22 }
 0x2bb   : > { %v2055_v62 = vmul.u32 %v2048_v2, %v2039_v9  ;;  %vm2057_vm1 = vc.u32 %v5176_v35, %v5160_v30  ;;  %v2118_v27 = vand.u32 31, %v2116_v11  ;;  %v5193_v24 = vsel %vm3385_vm13, 0, %v3384_v29 }
 0x2bc   : > { %v5195_v10 = vsel %vm3393_vm14, 0, %v3392_v52  ;;  %v1962_v5 = vsub.s32 0, %v5180_v47  ;;  %v2059_v33 = vsel %vm2057_vm1, %v2058_v59, %v5161_v0  ;;  %v5202_v41 = vsel %vm1723_vm12, %v5178_v1, 920167782 }
 0x2bd   : > { %v5206_v31 = vsel %vm1723_vm12, %v1719_v56, 1326507024  ;;  %v2060_v2 = vadd.s32 %v2059_v33, %v2055_v62  ;;  %v2119_v54 = vsub.s32 32, %v2118_v27  ;;  %v5211_v52 = vshrl.u32 %v5144_v53, %v1448_v32 }
 0x2be   : > { %v2111_v0 = vand.u32 8388607, %v6420_v16  ;;  %v5217_v3 = vshrl.u32 %v6445_v34, %v4975_v20  ;;  %v5219_v14 = vadd.s32 127, %v1452_v13  ;;  %v1660_v15 = vsub.s32 4294967266, %v5193_v24 }
 0x2bf   : > { %6497 = vst [vmem:[#allocation21_spill] sm:$0xff] %v5211_v52  ;;  %v5224_v19 = vadd.s32 %v5039_v63, %v5037_v44  ;;  %v1868_v55 = vsub.s32 4294967266, %v5195_v10  ;;  %v3395_v53 = vmin.u32 %v1962_v5, %v5180_v47  ;;  %v2061_v28 = vadd.s32 536870912, %v2060_v2 }
 0x2c0   : > { %v2121_v43 = vshll.u32 %v6445_v34, %v2118_v27  ;;  %v2122_v8 = vshrl.u32 %v6446_v50, %v2119_v54  ;;  %v2124_v56 = vshll.u32 %v6446_v50, %v2118_v27  ;;  %v2125_v9 = vshrl.u32 %v6482_v18, %v2119_v54 }
 0x2c1   : > { %v2127_v59 = vshll.u32 %v6482_v18, %v2118_v27  ;;  %v2128_v32 = vshrl.u32 %v6447_v37, %v2119_v54  ;;  %v2112_v13 = vor.u32 8388608, %v2111_v0  ;;  %v2117_v44 = vshrl.u32 %v2116_v11, 5 }
 0x2c2   : > { %v2123_v63 = vor.u32 %v2122_v8, %v2121_v43  ;;  %v1497_v62 = vshll.u32 %v6445_v34, %v4961_v60  ;;  %v2126_v5 = vor.u32 %v2125_v9, %v2124_v56  ;;  %v2130_v16 = vshll.u32 %v6447_v37, %v2118_v27 }
 0x2c3   : > { %v2129_v33 = vor.u32 %v2128_v32, %v2127_v59  ;;  %v2131_v29 = vshrl.u32 %v6457_v61, %v2119_v54  ;;  %v1864_v25 = vsub.s32 32, %v5195_v10  ;;  %v1869_v49 = vadd.s32 127, %v1868_v55 }
 0x2c4   : > { %v2133_v6 = vshll.u32 %v6457_v61, %v2118_v27  ;;  %v2134_v30 = vshrl.u32 %v6448_v17, %v2119_v54  ;;  %v1964_v35 = vclz %v3395_v53  ;;  %v5241_v0 = vshrl.u32 %v2061_v28, 30 }
 0x2c5   : > { %v2132_v11 = vor.u32 %v2131_v29, %v2130_v16  ;;  %v1498_v43 = vshrl.u32 %v6446_v50, %v4975_v20  ;;  %vm2136_vm4 = vcmp.lt.s32.totalorder %v2117_v44, 1  ;;  %vm2139_vm2 = vcmp.lt.s32.totalorder %v2117_v44, 4 }
 0x2c6   : > { %v2135_v8 = vor.u32 %v2134_v30, %v2133_v6  ;;  %v2152_v56 = vshll.u32 %v2112_v13, 8  ;;  %v2141_v9 = vsel %vm2139_vm2, %v2129_v33, 2102212464  ;;  %v2144_v59 = vsel %vm2136_vm4, %v2123_v63, %v2126_v5 }
 0x2c7   : > { %v1500_v55 = vshll.u32 %v6446_v50, %v4961_v60  ;;  %v1501_v27 = vshrl.u32 %v6482_v18, %v4975_v20  ;;  %v2120_v53 = vshrl.u32 %v6445_v34, %v2119_v54  ;;  %vm2138_vm7 = vcmp.lt.s32.totalorder %v2117_v44, 3 }
 0x2c8   : > { %v2145_v28 = vsel %vm2139_vm2, %v2132_v11, 920167782  ;;  %v2148_v16 = vsel %vm2136_vm4, %v2126_v5, %v2129_v33  ;;  %v2063_v29 = vshll.u32 %v5241_v0, 30  ;;  %vm2137_vm0 = vcmp.lt.s32.totalorder %v2117_v44, 2 }
 0x2c9   : > { %v2146_v6 = vsel %vm2138_vm7, %v2129_v33, %v2145_v28  ;;  %v2149_v30 = vsel %vm2139_vm2, %v2135_v8, 1326507024  ;;  %v2140_v32 = vsel %vm2136_vm4, %v2120_v53, %v2123_v63  ;;  %v2142_v13 = vsel %vm2138_vm7, %v2126_v5, %v2141_v9 }
 0x2ca   : > { %v2147_v17 = vsel %vm2137_vm0, %v2144_v59, %v2146_v6  ;;  %v2150_v61 = vsel %vm2138_vm7, %v2132_v11, %v2149_v30  ;;  %v3396_v23 = vadd.s32 4294967294, %v1964_v35  ;;  %v1503_v21 = vshll.u32 %v6482_v18, %v4961_v60 }
 0x2cb   : > { %v2151_v26 = vsel %vm2137_vm0, %v2148_v16, %v2150_v61  ;;  %v5251_v7 = vmul.u32.u64.low %v2152_v56, %v2147_v17  ;;  %v5252_v52 = vmul.u32.u64.high %v2152_v56, %v2147_v17, %v5251_v7  ;;  %v1504_v44 = vshrl.u32 %v6447_v37, %v4975_v20 }
 0x2cc   : > { %v5255_v22 = vmul.u32.u64.low %v2152_v56, %v2151_v26  ;;  %v5256_v54 = vmul.u32.u64.high %v2152_v56, %v2151_v26, %v5255_v22  ;;  %v5262_v33 = vsub.s32 %v2060_v2, %v2063_v29  ;;  %v2143_v63 = vsel %vm2137_vm0, %v2140_v32, %v2142_v13 }
 0x2cd   : > { %v1499_v5 = vor.u32 %v1498_v43, %v1497_v62  ;;  %v1502_v11 = vor.u32 %v1501_v27, %v1500_v55  ;;  %v1454_v61 = vshll.u32 %v5219_v14, 23  ;;  %v1656_v17 = vsub.s32 32, %v5193_v24 }
 0x2ce   : > { %v5266_v35 = vadd.s32 127, %v1660_v15  ;;  %v1505_v8 = vor.u32 %v1504_v44, %v1503_v21  ;;  %v1865_v26 = vshll.u32 %v5089_v57, %v5195_v10  ;;  %v1866_v60 = vshrl.u32 %v5224_v19, %v1864_v25 }
 0x2cf   : > { %v1870_v22 = vshll.u32 %v1869_v49, 23  ;;  %v2162_v20 = vadd.s32 1, %v5252_v52  ;;  %vm3397_vm9 = vcmp.lt.s32.totalorder %v3396_v23, 0  ;;  %v2159_v2 = vmul.u32 %v2152_v56, %v2143_v63 }
 0x2d0   : > { %vm2161_vm5 = vc.u32 %v5256_v54, %v5251_v7  ;;  %vm1512_vm8 = vcmp.lt.s32.totalorder %v5049_v40, 1  ;;  %v2066_v14 = vsub.s32 0, %v5262_v33  ;;  %vm1514_vm10 = vcmp.lt.s32.totalorder %v5049_v40, 3 }
 0x2d1   : > { %v2163_v15 = vsel %vm2161_vm5, %v2162_v20, %v5252_v52  ;;  %v1520_v57 = vsel %vm1512_vm8, %v1499_v5, %v1502_v11  ;;  %v1517_v49 = vsel %vm1515_vm3, %v1505_v8, 2102212464  ;;  %v1522_v25 = vsel %vm1514_vm10, %v1505_v8, %v5108_v39 }
 0x2d2   : > { %v2164_v21 = vadd.s32 %v2163_v15, %v2159_v2  ;;  %v1524_v10 = vsel %vm1512_vm8, %v1502_v11, %v1505_v8  ;;  %v5287_v19 = vor.u32 %v1866_v60, %v1865_v26  ;;  %v5289_v62 = vor.u32 4788187, %v1870_v22 }
 0x2d3   : > { %v5291_v52 = vsel %vm3397_vm9, 0, %v3396_v23  ;;  %vm1513_vm11 = vcmp.lt.s32.totalorder %v5049_v40, 2  ;;  %v1526_v39 = vsel %vm1514_vm10, %v5059_v4, %v5112_v42  ;;  %v6498_v9 = vor.u32 8388608, %v5054_v36 }
 0x2d4   : > { %v2165_v43 = vadd.s32 536870912, %v2164_v21  ;;  %v1523_v56 = vsel %vm1513_vm11, %v1520_v57, %v1522_v25  ;;  %v3399_v55 = vmin.u32 %v2066_v14, %v5262_v33  ;;  %v1516_v23 = vsel %vm1512_vm8, %v5217_v3, %v1499_v5 }
 0x2d5   : > { %v1528_v59 = vshll.u32 %v6498_v9, 8  ;;  %v1518_v27 = vsel %vm1514_vm10, %v1502_v11, %v1517_v49  ;;  %v1527_v53 = vsel %vm1513_vm11, %v1524_v10, %v1526_v39  ;;  %v1688_v36 = vand.u32 2147483647, %v4895_v45 }
 0x2d6   : > { %v5310_v28 = vshrl.u32 %v2165_v43, 30  ;;  %v5316_v4 = vor.u32 4788187, %v1454_v61  ;;  %v5319_v42 = vshrl.u32 %v5187_v58, %v1656_v17  ;;  %v1662_v30 = vshll.u32 %v5266_v35, 23 }
 0x2d7   : > { %v5312_v16 = vmul.u32.u64.low %v1528_v59, %v1527_v53  ;;  %v5313_v29 = vmul.u32.u64.high %v1528_v59, %v1527_v53, %v5312_v16  ;;  %v5321_v6 = vmul.u32.u64.low %v1528_v59, %v1523_v56  ;;  %v5322_v3 = vmul.u32.u64.high %v1528_v59, %v1523_v56, %v5321_v6 }
 0x2d8   : > { %v1874_v32 = vcvt.s32.f32 %v5287_v19  ;;  %v1952_v13 = vadd.s32 %v5093_v48, %v5099_v46  ;;  %v2167_v44 = vshll.u32 %v5310_v28, 30  ;;  %v1872_v63 = vand.u32 2147483647, %v5289_v62 }
 0x2d9   : > { %v1972_v5 = vsub.s32 4294967266, %v5291_v52  ;;  %v1519_v58 = vsel %vm1513_vm11, %v1516_v23, %v1518_v27  ;;  %v1706_v11 = vshrl.u32 %v6446_v50, %v5121_v38  ;;  %v2068_v61 = vclz %v3399_v55 }
 0x2da   : > { %v5336_v17 = vsub.s32 %v2164_v21, %v2167_v44  ;;  %vm1537_vm3 = vc.u32 %v5313_v29, %v5321_v6  ;;  %v1695_v48 = vand.u32 8388607, %v1688_v36  ;;  %v1538_v46 = vadd.s32 1, %v5322_v3 }
 0x2db   : > { %v1705_v8 = vshll.u32 %v6445_v34, %v5064_v12  ;;  %v1708_v40 = vshll.u32 %v6446_v50, %v5064_v12  ;;  %v1709_v26 = vshrl.u32 %v6482_v18, %v5121_v38  ;;  %v1535_v22 = vmul.u32 %v1528_v59, %v1519_v58 }
 0x2dc   : > { %v2170_v60 = vsub.s32 0, %v5336_v17  ;;  %v1711_v20 = vshll.u32 %v6482_v18, %v5064_v12  ;;  %v1712_v2 = vshrl.u32 %v6447_v37, %v5121_v38  ;;  %v1973_v14 = vadd.s32 127, %v1972_v5 }
 0x2dd   : > { %v1539_v15 = vsel %vm1537_vm3, %v1538_v46, %v5322_v3  ;;  %v1707_v57 = vor.u32 %v1706_v11, %v1705_v8  ;;  %v1710_v21 = vor.u32 %v1709_v26, %v1708_v40  ;;  %v1968_v49 = vsub.s32 32, %v5291_v52 }
 0x2de   : > { %v3403_v25 = vmin.u32 %v2170_v60, %v5336_v17  ;;  %v1540_v10 = vadd.s32 %v1539_v15, %v1535_v22  ;;  %v1713_v62 = vor.u32 %v1712_v2, %v1711_v20  ;;  %v1969_v43 = vshll.u32 %v5180_v47, %v5291_v52  ;;  %v6499_v20 = vld [vmem:[#allocation11_spill] sm:$0xff]  ;;  %v6502_v15 = vld [vmem:[#allocation21_spill] sm:$0xff] }
 0x2df   : > { %v3400_v56 = vadd.s32 4294967294, %v2068_v61  ;;  %v1696_v39 = vor.u32 8388608, %v1695_v48  ;;  %vm1722_vm13 = vcmp.lt.s32.totalorder %v5147_v51, 3  ;;  %vm1720_vm14 = vcmp.lt.s32.totalorder %v5147_v51, 1  ;;  %v6500_v2 = vld [vmem:[#allocation19_spill] sm:$0xff] }
 0x2e0   : > { %v2172_v12 = vclz %v3403_v25  ;;  %v1541_v9 = vadd.s32 536870912, %v1540_v10  ;;  %v1734_v59 = vsel %vm1722_vm13, %v5178_v1, %v5206_v31  ;;  %v1974_v55 = vshll.u32 %v1973_v14, 23  ;;  %v6503_v25 = vld [vmem:[#allocation14_spill] sm:$0xff] }
 0x2e1   : > { %v1728_v23 = vsel %vm1720_vm14, %v1707_v57, %v1710_v21  ;;  %v1730_v47 = vsel %vm1722_vm13, %v1713_v62, %v5202_v41  ;;  %v1732_v52 = vsel %vm1720_vm14, %v1710_v21, %v1713_v62  ;;  %v1970_v27 = vshrl.u32 %v1952_v13, %v1968_v49 }
 0x2e2   : > { %v3404_v53 = vadd.s32 4294967294, %v2172_v12  ;;  %v5372_v16 = vshrl.u32 %v1541_v9, 30  ;;  %vm1721_vm15 = vcmp.lt.s32.totalorder %v5147_v51, 2  ;;  %vm3401_vm1 = vcmp.lt.s32.totalorder %v3400_v56, 0 }
 0x2e3   : > { %v1725_v1 = vsel %vm1723_vm12, %v1713_v62, 2102212464  ;;  %v1735_v31 = vsel %vm1721_vm15, %v1732_v52, %v1734_v59  ;;  %v1736_v3 = vshll.u32 %v1696_v39, 8  ;;  %v1704_v44 = vshrl.u32 %v6445_v34, %v5121_v38  ;;  %v6504_v62 = vld [vmem:[#allocation8_spill] sm:$0xff]  ;;  %v6508_v52 = vld [vmem:[#allocation10_spill] sm:$0xff] }
 0x2e4   : > { %vm3405_vm4 = vcmp.lt.s32.totalorder %v3404_v53, 0  ;;  %v1543_v41 = vshll.u32 %v5372_v16, 30  ;;  %v1731_v13 = vsel %vm1721_vm15, %v1728_v23, %v1730_v47  ;;  %v1975_v5 = vor.u32 4788187, %v1974_v55 }
 0x2e5   : > { %v5384_v58 = vsel %vm3405_vm4, 0, %v3404_v53  ;;  %v5386_v11 = vmul.u32.u64.low %v1736_v3, %v1735_v31  ;;  %v5387_v61 = vmul.u32.u64.high %v1736_v3, %v1735_v31, %v5386_v11  ;;  %v5389_v48 = vsel %vm3401_vm1, 0, %v3400_v56 }
 0x2e6   : > { %v5391_v46 = vsub.s32 %v1540_v10, %v1543_v41  ;;  %v1724_v8 = vsel %vm1720_vm14, %v1704_v44, %v1707_v57  ;;  %v1726_v40 = vsel %vm1722_vm13, %v1710_v21, %v1725_v1  ;;  %v1971_v38 = vor.u32 %v1970_v27, %v1969_v43 }
 0x2e7   : > { %v2180_v26 = vsub.s32 4294967266, %v5384_v58  ;;  %v5398_v60 = vmul.u32.u64.low %v1736_v3, %v1731_v13  ;;  %v5399_v22 = vmul.u32.u64.high %v1736_v3, %v1731_v13, %v5398_v60  ;;  %v6501_v14 = vshll.u32 %v6499_v20, %v6500_v2 }
 0x2e8   : > { %v1657_v10 = vshll.u32 %v6503_v25, %v5193_v24  ;;  %v1875_v57 = vmul.f32 %v1874_v32, %v1872_v63  ;;  %v1546_v21 = vsub.s32 0, %v5391_v46  ;;  %vm1794_vm12 = vcmp.lt.s32.totalorder %v6504_v62, 0 }
 0x2e9   : > { %v1451_v49 = vor.u32 %v6502_v15, %v6501_v14  ;;  %v1976_v43 = vand.u32 2147483647, %v1975_v5  ;;  %v2076_v56 = vsub.s32 4294967266, %v5389_v48  ;;  %v1727_v39 = vsel %vm1721_vm15, %v1724_v8, %v1726_v40  ;;  %v6509_v40 = vld [vmem:[#allocation20_spill] sm:$0xff] }
 0x2ea   : > { %v1456_v12 = vand.u32 2147483647, %v5316_v4  ;;  %v1659_v9 = vor.u32 %v5319_v42, %v1657_v10  ;;  %v3379_v59 = vmin.u32 %v1546_v21, %v5391_v46  ;;  %vm1745_vm2 = vc.u32 %v5387_v61, %v5398_v60 }
 0x2eb   : > { %v1663_v24 = vor.u32 4788187, %v1662_v30  ;;  %v6505_v19 = vand.u32 2147483647, %v6504_v62  ;;  %v1978_v51 = vcvt.s32.f32 %v1971_v38  ;;  %v2181_v63 = vadd.s32 127, %v2180_v26  ;;  %v6510_v38 = vld [vmem:[#allocation18_spill] sm:$0xff] }
 0x2ec   : > { %v1746_v4 = vadd.s32 1, %v5399_v22  ;;  %v1458_v55 = vcvt.s32.f32 %v1451_v49  ;;  %v1876_v42 = vxor.u32 2147483648, %v1875_v57  ;;  %v1548_v23 = vclz %v3379_v59 }
 0x2ed   : > { %vm5424_vm7 = vcmp.le.f32.partialorder %v6505_v19, 0.7853982  ;;  %v1743_v47 = vmul.u32 %v1736_v3, %v1727_v39  ;;  %vm1898_vm0 = vcmp.lt.s32.totalorder %v6508_v52, 0  ;;  %v1979_v27 = vmul.f32 %v1978_v51, %v1976_v43 }
 0x2ee   : > { %v2077_v53 = vadd.s32 127, %v2076_v56  ;;  %v2176_v35 = vsub.s32 32, %v5384_v58  ;;  %v1747_v30 = vsel %vm1745_vm2, %v1746_v4, %v5399_v22  ;;  %v1459_v1 = vmul.f32 %v1458_v55, %v1456_v12  ;;  %v6511_v22 = vld [vmem:[#allocation5_spill] sm:$0xff]  ;;  %v6512_v4 = vld [vmem:[#allocation6_spill] sm:$0xff] }
 0x2ef   : > { %v2072_v31 = vsub.s32 32, %v5389_v48  ;;  %v3380_v41 = vadd.s32 4294967294, %v1548_v23  ;;  %v1748_v44 = vadd.s32 %v1747_v30, %v1743_v47  ;;  %v1664_v13 = vand.u32 2147483647, %v1663_v24 }
 0x2f0   : > { %v1666_v5 = vcvt.s32.f32 %v1659_v9  ;;  %v2160_v11 = vadd.s32 %v5251_v7, %v5256_v54  ;;  %v2182_v8 = vshll.u32 %v2181_v63, 23  ;;  %v1877_v3 = vsel %vm1794_vm12, %v1876_v42, %v1875_v57 }
 0x2f1   : > { %v2056_v26 = vadd.s32 %v6510_v38, %v6509_v40  ;;  %vm3381_vm9 = vcmp.lt.s32.totalorder %v3380_v41, 0  ;;  %v1749_v20 = vadd.s32 536870912, %v1748_v44  ;;  %vm1378_vm5 = vcmp.lt.s32.totalorder %v6511_v22, 0 }
 0x2f2   : > { %v1980_v2 = vxor.u32 2147483648, %v1979_v27  ;;  %v2078_v14 = vshll.u32 %v2077_v53, 23  ;;  %v2178_v15 = vshrl.u32 %v2160_v11, %v2176_v35  ;;  %v1551_v49 = vsel %vm3381_vm9, 0, %v3380_v41 }
 0x2f3   : > { %v2074_v25 = vshrl.u32 %v2056_v26, %v2072_v31  ;;  %v1536_v10 = vadd.s32 %v5321_v6, %v5313_v29  ;;  %v1552_v7 = vsub.s32 32, %v1551_v49  ;;  %v1556_v54 = vsub.s32 4294967266, %v1551_v49 }
 0x2f4   : > { %v1667_v21 = vmul.f32 %v1666_v5, %v1664_v13  ;;  %v2177_v57 = vshll.u32 %v5336_v17, %v5384_v58  ;;  %v2183_v43 = vor.u32 4788187, %v2182_v8  ;;  %v5444_v56 = vshrl.u32 %v1749_v20, 30  ;;  %v6516_v8 = vld [vmem:[#allocation9_spill] sm:$0xff] }
 0x2f5   : > { %v1880_v39 = vsel %vm5424_vm7, %v6504_v62, %v1877_v3  ;;  %v2073_v12 = vshll.u32 %v5262_v33, %v5389_v48  ;;  %v1554_v9 = vshrl.u32 %v1536_v10, %v1552_v7  ;;  %v1557_v59 = vadd.s32 127, %v1556_v54 }
 0x2f6   : > { %v2079_v24 = vor.u32 4788187, %v2078_v14  ;;  %v2179_v29 = vor.u32 %v2178_v15, %v2177_v57  ;;  %v1553_v6 = vshll.u32 %v5391_v46, %v1551_v49  ;;  %v1751_v19 = vshll.u32 %v5444_v56, 30  ;;  %v6520_v15 = vld [vmem:[#allocation12_spill] sm:$0xff]  ;;  %v6521_v49 = vld [vmem:[#allocation7_spill] sm:$0xff] }
 0x2f7   : > { %v1460_v51 = vxor.u32 2147483648, %v1459_v1  ;;  %v1981_v17 = vsel %vm1898_vm0, %v1980_v2, %v1979_v27  ;;  %v2075_v58 = vor.u32 %v2074_v25, %v2073_v12  ;;  %v1558_v63 = vshll.u32 %v1557_v59, 23 }
 0x2f8   : > { %vm1586_vm8 = vcmp.lt.s32.totalorder %v6512_v4, 0  ;;  %v2184_v55 = vand.u32 2147483647, %v2183_v43  ;;  %v1555_v42 = vor.u32 %v1554_v9, %v1553_v6  ;;  %v5456_v23 = vsub.s32 %v1748_v44, %v1751_v19 }
 0x2f9   : > { %v1668_v33 = vxor.u32 2147483648, %v1667_v21  ;;  %3665 = vcosq.f32 %v1880_v39  ;;  %v6513_v48 = vand.u32 2147483647, %v6508_v52  ;;  %v1559_v47 = vor.u32 4788187, %v1558_v63  ;;  %v6532_v63 = vld [vmem:[#allocation13_spill] sm:$0xff] }
 0x2fa   : > { %v2080_v53 = vand.u32 2147483647, %v2079_v24  ;;  %v2186_v35 = vcvt.s32.f32 %v2179_v29  ;;  %v1754_v30 = vsub.s32 0, %v5456_v23  ;;  %v1461_v31 = vsel %vm1378_vm5, %v1460_v51, %v1459_v1 }
 0x2fb   : > { %vm5460_vm10 = vcmp.le.f32.partialorder %v6513_v48, 0.7853982  ;;  %3667 = vsinq.f32 %v1880_v39  ;;  %v2082_v41 = vcvt.s32.f32 %v2075_v58  ;;  %v1560_v44 = vand.u32 2147483647, %v1559_v47  ;;  %v6528_v39 = vld [vmem:[#allocation16_spill] sm:$0xff] }
 0x2fc   : > { %v1984_v27 = vsel %vm5460_vm10, %v6508_v52, %v1981_v17  ;;  %v2187_v13 = vmul.f32 %v2186_v35, %v2184_v55  ;;  %v1562_v5 = vcvt.s32.f32 %v1555_v42  ;;  %v3387_v11 = vmin.u32 %v1754_v30, %v5456_v23 }
 0x2fd   : > { %v1462_v3 = vsub.s32 4, %v6516_v8  ;;  %v1669_v40 = vsel %vm1586_vm8, %v1668_v33, %v1667_v21  ;;  %3669 = vcosq.f32 %v1984_v27  ;;  %v6517_v38 = vand.u32 2147483647, %v6511_v22 }
 0x2fe   : > { %v2083_v1 = vmul.f32 %v2082_v41, %v2080_v53  ;;  %v1563_v20 = vmul.f32 %v1562_v5, %v1560_v44  ;;  %v1756_v2 = vclz %v3387_v11  ;;  %3671 = vsinq.f32 %v1984_v27 }
 0x2ff   : > { %vm5476_vm11 = vcmp.le.f32.partialorder %v6517_v38, 0.7853982  ;;  %vm2002_vm3 = vcmp.lt.s32.totalorder %v6520_v15, 0  ;;  %v6522_v25 = vand.u32 2147483647, %v6521_v49  ;;  %vm1482_vm14 = vcmp.lt.s32.totalorder %v6521_v49, 0 }
 0x300   : > { %v1464_v14 = vsel %vm5476_vm11, %v6511_v22, %v1461_v31  ;;  %v2188_v7 = vxor.u32 2147483648, %v2187_v13  ;;  %v3388_v54 = vadd.s32 4294967294, %v1756_v2  ;;  %v1463_v21 = vsel %vm1378_vm5, %v1462_v3, %v6516_v8 }
 0x301   : > { %vm5486_vm13 = vcmp.le.f32.partialorder %v6522_v25, 0.7853982  ;;  %v6525_v57 = vand.u32 2147483647, %v6512_v4  ;;  %vm2106_vm1 = vcmp.lt.s32.totalorder %v6528_v39, 0  ;;  %v1566_v12 = vsub.s32 4, %v5372_v16 }
 0x302   : > { %3673 = vcosq.f32 %v1464_v14  ;;  %v6529_v59 = vand.u32 2147483647, %v6520_v15  ;;  %v2084_v29 = vxor.u32 2147483648, %v2083_v1  ;;  %v1564_v6 = vxor.u32 2147483648, %v1563_v20 }
 0x303   : > { %vm5496_vm15 = vcmp.le.f32.partialorder %v6525_v57, 0.7853982  ;;  %vm3389_vm2 = vcmp.lt.s32.totalorder %v3388_v54, 0  ;;  %3675 = vsinq.f32 %v1464_v14  ;;  %v5511_v19 = vpop.eup %3665  ;;  %v1744_v51 = vadd.s32 %v5398_v60, %v5387_v61 }
 0x304   : > { %v1672_v9 = vsel %vm5496_vm15, %v6512_v4, %v1669_v40  ;;  %vm5507_vm4 = vcmp.le.f32.partialorder %v6529_v59, 0.7853982  ;;  %v1759_v17 = vsel %vm3389_vm2, 0, %v3388_v54  ;;  %v1465_v58 = vsel %vm5476_vm11, 0, %v1463_v21  ;;  %v6536_v40 = vld [vmem:[#allocation17_spill] sm:$0xff] }
 0x305   : > { %v1670_v55 = vsub.s32 4, %v6532_v63  ;;  %v2189_v42 = vsel %vm2106_vm1, %v2188_v7, %v2187_v13  ;;  %v1760_v33 = vsub.s32 32, %v1759_v17  ;;  %v1764_v48 = vsub.s32 4294967266, %v1759_v17  ;;  %v5520_v47 = vpop.eup %3667 }
 0x306   : > { %3677 = vcosq.f32 %v1672_v9  ;;  %v6533_v27 = vand.u32 2147483647, %v6528_v39  ;;  %v1567_v61 = vsel %vm1482_vm14, %v1566_v12, %v5372_v16  ;;  %v1774_v60 = vsub.s32 4, %v5444_v56 }
 0x307   : > { %3679 = vsinq.f32 %v1672_v9  ;;  %v1565_v35 = vsel %vm1482_vm14, %v1564_v6, %v1563_v20  ;;  %v1761_v30 = vshll.u32 %v5456_v23, %v1759_v17  ;;  %v1762_v31 = vshrl.u32 %v1744_v51, %v1760_v33  ;;  %v5535_v44 = vpop.eup %3669 }
 0x308   : > { %vm5524_vm9 = vcmp.le.f32.partialorder %v6533_v27, 0.7853982  ;;  %v1765_v41 = vadd.s32 127, %v1764_v48  ;;  %v2085_v13 = vsel %vm2002_vm3, %v2084_v29, %v2083_v1  ;;  %v1469_v16 = vadd.s32 3, %v1465_v58  ;;  %v5548_v26 = vpop.eup %3671 }
 0x309   : > { %v2192_v5 = vsel %vm5524_vm9, %v6528_v39, %v2189_v42  ;;  %v1671_v11 = vsel %vm1586_vm8, %v1670_v55, %v6532_v63  ;;  %v1569_v8 = vsel %vm5486_vm13, 0, %v1567_v61  ;;  %v1763_v23 = vor.u32 %v1762_v31, %v1761_v30  ;;  %v6539_v61 = vld [vmem:[#allocation15_spill] sm:$0xff] }
 0x30a   : > { %v1766_v3 = vshll.u32 %v1765_v41, 23  ;;  %v1982_v38 = vsub.s32 4, %v6536_v40  ;;  %v1568_v1 = vsel %vm5486_vm13, %v6521_v49, %v1565_v35  ;;  %vm5555_vm5 = vcmp.le.f32.partialorder %v1688_v36, 0.7853982 }
 0x30b   : > { %vm1690_vm8 = vcmp.lt.s32.totalorder %v4895_v45, 0  ;;  %v2190_v2 = vsub.s32 4, %v5310_v28  ;;  %3681 = vcosq.f32 %v2192_v5  ;;  %v1673_v10 = vsel %vm5496_vm15, 0, %v1671_v11 }
 0x30c   : > { %v1767_v14 = vor.u32 4788187, %v1766_v3  ;;  %v1775_v25 = vsel %vm1690_vm8, %v1774_v60, %v5444_v56  ;;  %v3674_v7 = vpop.eup %3673  ;;  %v2088_v36 = vsel %vm5507_vm4, %v6520_v15, %v2085_v13  ;;  %3683 = vsinq.f32 %v2192_v5 }
 0x30d   : > { %v1573_v54 = vadd.s32 3, %v1569_v8  ;;  %v1470_v21 = vand.u32 3, %v1469_v16  ;;  %v3676_v57 = vpop.eup %3675  ;;  %3685 = vcosq.f32 %v1568_v1  ;;  %v1770_v9 = vcvt.s32.f32 %v1763_v23 }
 0x30e   : > { %v1768_v12 = vand.u32 2147483647, %v1767_v14  ;;  %v1983_v59 = vsel %vm1898_vm0, %v1982_v38, %v6536_v40  ;;  %3687 = vsinq.f32 %v1568_v1  ;;  %v1777_v56 = vsel %vm5555_vm5, 0, %v1775_v25 }
 0x30f   : > { %v1677_v43 = vadd.s32 3, %v1673_v10  ;;  %v2191_v29 = vsel %vm2106_vm1, %v2190_v2, %v5310_v28  ;;  %3689 = vcosq.f32 %v2088_v36  ;;  %v2086_v17 = vsub.s32 4, %v5241_v0 }
 0x310   : > { %v3678_v6 = vpop.eup %3677  ;;  %v1771_v51 = vmul.f32 %v1770_v9, %v1768_v12  ;;  %3691 = vsinq.f32 %v2088_v36  ;;  %v1473_v63 = vxor.u32 2147483648, %v3676_v57  ;;  %v1476_v55 = vxor.u32 2147483648, %v3674_v7 }
 0x311   : > { %v3680_v58 = vpop.eup %3679  ;;  %v1985_v42 = vsel %vm5460_vm10, 0, %v1983_v59  ;;  %v1781_v48 = vadd.s32 3, %v1777_v56  ;;  %v2193_v27 = vsel %vm5524_vm9, 0, %v2191_v29  ;;  %v1878_v60 = vsub.s32 4, %v6539_v61 }
 0x312   : > { %v1772_v33 = vxor.u32 2147483648, %v1771_v51  ;;  %v5583_v28 = vand.u32 3, %v1573_v54  ;;  %vm1475_vm0 = vcmp.eq.s32.totalorder %v1470_v21, 2  ;;  %v1678_v35 = vand.u32 3, %v1677_v43 }
 0x313   : > { %v1684_v30 = vxor.u32 2147483648, %v3678_v6  ;;  %v1681_v41 = vxor.u32 2147483648, %v3680_v58  ;;  %v1989_v13 = vadd.s32 3, %v1985_v42  ;;  %v2087_v46 = vsel %vm2002_vm3, %v2086_v17, %v5241_v0 }
 0x314   : > { %v1773_v31 = vsel %vm1690_vm8, %v1772_v33, %v1771_v51  ;;  %vm1472_vm10 = vcmp.eq.s32.totalorder %v1470_v21, 0  ;;  %v1477_v5 = vsel %vm1475_vm0, %v1476_v55, %v3676_v57  ;;  %vm1676_vm11 = vweird.f32 %v6512_v4 }
 0x315   : > { %v1776_v53 = vsel %vm5555_vm5, %v4895_v45, %v1773_v31  ;;  %v2197_v16 = vadd.s32 3, %v2193_v27  ;;  %v3682_v11 = vpop.eup %3681  ;;  %v5594_v8 = vand.u32 3, %v1781_v48  ;;  %v1474_v23 = vsel %vm1472_vm10, %v3674_v7, %v1473_v63 }
 0x316   : > { %3693 = vcosq.f32 %v1776_v53  ;;  %v1879_v3 = vsel %vm1794_vm12, %v1878_v60, %v6539_v61  ;;  %v3684_v40 = vpop.eup %3683  ;;  %vm1576_vm3 = vcmp.eq.s32.totalorder %v5583_v28, 0  ;;  %vm1579_vm13 = vcmp.eq.s32.totalorder %v5583_v28, 2 }
 0x317   : > { %3695 = vsinq.f32 %v1776_v53  ;;  %vm1680_vm14 = vcmp.eq.s32.totalorder %v1678_v35, 0  ;;  %vm1683_vm15 = vcmp.eq.s32.totalorder %v1678_v35, 2  ;;  %v2089_v0 = vsel %vm5507_vm4, 0, %v2087_v46  ;;  %v3686_v38 = vpop.eup %3685 }
 0x318   : > { %vm1471_vm1 = vcmp.lt.s32.totalorder %v1470_v21, 2  ;;  %v1682_v1 = vsel %vm1680_vm14, %v3678_v6, %v1681_v41  ;;  %v1685_v20 = vsel %vm1683_vm15, %v1684_v30, %v3680_v58  ;;  %v1990_v2 = vand.u32 3, %v1989_v13  ;;  %v3688_v14 = vpop.eup %3687 }
 0x319   : > { %v5603_v25 = vsel %vm1471_vm1, %v1474_v23, %v1477_v5  ;;  %v1993_v10 = vxor.u32 2147483648, %v5548_v26  ;;  %v2198_v7 = vand.u32 3, %v2197_v16  ;;  %v1881_v36 = vsel %vm5424_vm7, 0, %v1879_v3  ;;  %v3690_v54 = vpop.eup %3689 }
 0x31a   : > { %vm1575_vm12 = vcmp.lt.s32.totalorder %v5583_v28, 2  ;;  %vm1679_vm2 = vcmp.lt.s32.totalorder %v1678_v35, 2  ;;  %v2201_v24 = vxor.u32 2147483648, %v3684_v40  ;;  %v2204_v57 = vxor.u32 2147483648, %v3682_v11  ;;  %v3692_v21 = vpop.eup %3691 }
 0x31b   : > { %v2093_v12 = vadd.s32 3, %v2089_v0  ;;  %vm1787_vm9 = vcmp.eq.s32.totalorder %v5594_v8, 2  ;;  %v1686_v9 = vsel %vm1679_vm2, %v1682_v1, %v1685_v20  ;;  %v1996_v59 = vxor.u32 2147483648, %v5535_v44 }
 0x31c   : > { %vm2196_vm5 = vweird.f32 %v6528_v39  ;;  %v1577_v56 = vxor.u32 2147483648, %v3688_v14  ;;  %v1580_v32 = vxor.u32 2147483648, %v3686_v38  ;;  %vm1783_vm7 = vcmp.lt.s32.totalorder %v5594_v8, 2 }
 0x31d   : > { %vm1991_vm8 = vcmp.lt.s32.totalorder %v1990_v2, 2  ;;  %v1885_v43 = vadd.s32 3, %v1881_v36  ;;  %vm1572_vm0 = vweird.f32 %v6521_v49  ;;  %vm1780_vm10 = vweird.f32 %v4895_v45 }
 0x31e   : > { %vm1988_vm14 = vweird.f32 %v6508_v52  ;;  %vm1992_vm15 = vcmp.eq.s32.totalorder %v1990_v2, 0  ;;  %vm1995_vm1 = vcmp.eq.s32.totalorder %v1990_v2, 2  ;;  %vm2200_vm6 = vcmp.eq.s32.totalorder %v2198_v7, 0  ;;  %v3409_v2 = vld [vmem:[%s6375_s3 + $0x38] sm:$0xff] }
 0x31f   : > { %vm2203_vm2 = vcmp.eq.s32.totalorder %v2198_v7, 2  ;;  %v1687_v29 = vsel %vm1676_vm11, nan, %v1686_v9  ;;  %v2202_v6 = vsel %vm2200_vm6, %v3682_v11, %v2201_v24  ;;  %v2094_v17 = vand.u32 3, %v2093_v12 }
 0x320   : > { %v2205_v51 = vsel %vm2203_vm2, %v2204_v57, %v3684_v40  ;;  %v1994_v58 = vsel %vm1992_vm15, %v5535_v44, %v1993_v10  ;;  %v1997_v63 = vsel %vm1995_vm1, %v1996_v59, %v5548_v26  ;;  %v2097_v55 = vxor.u32 2147483648, %v3692_v21  ;;  %v3694_v33 = vpop.eup %3693  ;;  %v2226_v57 = vpop.permute.xlu1 %2225 }
 0x321   : > { %v2100_v42 = vxor.u32 2147483648, %v3690_v54  ;;  %v1578_v48 = vsel %vm1576_vm3, %v3686_v38, %v1577_v56  ;;  %v1581_v27 = vsel %vm1579_vm13, %v1580_v32, %v3688_v14  ;;  %vm2199_vm4 = vcmp.lt.s32.totalorder %v2198_v7, 2  ;;  %v3696_v4 = vpop.eup %3695  ;;  %v2221_v14 = vpop.permute.xlu0 %2220 }
 0x322   : > { %v1886_v61 = vand.u32 3, %v1885_v43  ;;  %v1788_v60 = vxor.u32 2147483648, %v3694_v33  ;;  %v2206_v35 = vsel %vm2199_vm4, %v2202_v6, %v2205_v51  ;;  %v1889_v30 = vxor.u32 2147483648, %v5520_v47 }
 0x323   : > { %v1892_v44 = vxor.u32 2147483648, %v5511_v19  ;;  %v1785_v31 = vxor.u32 2147483648, %v3696_v4  ;;  %v1998_v26 = vsel %vm1991_vm8, %v1994_v58, %v1997_v63  ;;  %vm2096_vm6 = vcmp.eq.s32.totalorder %v2094_v17, 0 }
 0x324   : > { %vm2099_vm11 = vcmp.eq.s32.totalorder %v2094_v17, 2  ;;  %v1582_v41 = vsel %vm1575_vm12, %v1578_v48, %v1581_v27  ;;  %v1789_v13 = vsel %vm1787_vm9, %v1788_v60, %v3696_v4  ;;  %v2098_v46 = vsel %vm2096_vm6, %v3690_v54, %v2097_v55 }
 0x325   : > { %v2101_v53 = vsel %vm2099_vm11, %v2100_v42, %v3692_v21  ;;  %vm6540_vm3 = vcmp.eq.s32.totalorder %v5594_v8, 0  ;;  %v2207_v16 = vsel %vm2196_vm5, nan, %v2206_v35  ;;  %vm1888_vm13 = vcmp.eq.s32.totalorder %v1886_v61, 0 }
 0x326   : > { %v1786_v5 = vsel %vm6540_vm3, %v3694_v33, %v1785_v31  ;;  %vm1891_vm4 = vcmp.eq.s32.totalorder %v1886_v61, 2  ;;  %v1890_v23 = vsel %vm1888_vm13, %v5511_v19, %v1889_v30  ;;  %vm2095_vm12 = vcmp.lt.s32.totalorder %v2094_v17, 2 }
 0x327   : > { %v1790_v11 = vsel %vm1783_vm7, %v1786_v5, %v1789_v13  ;;  %v1893_v28 = vsel %vm1891_vm4, %v1892_v44, %v5520_v47  ;;  %v1583_v3 = vsel %vm1572_vm0, nan, %v1582_v41  ;;  %v1999_v39 = vsel %vm1988_vm14, nan, %v1998_v26 }
 0x328   : > { %v1791_v40 = vsel %vm1780_vm10, nan, %v1790_v11  ;;  %v2102_v0 = vsel %vm2095_vm12, %v2098_v46, %v2101_v53  ;;  %vm6541_vm9 = vweird.f32 %v6511_v22  ;;  %v3469_v1 = vpack.c.bf16 %v2207_v16, %v1999_v39  ;;  %v3406_v22 = vld [vmem:[%s6375_s3 + $0x20] sm:$0xff] }
 0x329   : > { %v3465_v38 = vpack.c.bf16 %v1791_v40, %v1583_v3  ;;  %v1479_v8 = vsel %vm6541_vm9, nan, %v5603_v25  ;;  %vm1887_vm5 = vcmp.lt.s32.totalorder %v1886_v61, 2  ;;  %vm2092_vm7 = vweird.f32 %v6520_v15  ;;  %v3407_v15 = vld [vmem:[%s6375_s3 + $0x28] sm:$0xff] }
 0x32a   : > { %v3467_v19 = vpack.c.bf16 %v1687_v29, %v1479_v8  ;;  %v1894_v47 = vsel %vm1887_vm5, %v1890_v23, %v1893_v28  ;;  %v2103_v49 = vsel %vm2092_vm7, nan, %v2102_v0  ;;  %vm1884_vm8 = vweird.f32 %v6504_v62  ;;  %v3408_v62 = vld [vmem:[%s6375_s3 + $0x30] sm:$0xff] }
 0x32b   : > { %3466 = vmatprep.subr.bf16.mxu1 %v3465_v38  ;;  %v1895_v45 = vsel %vm1884_vm8, nan, %v1894_v47  ;;  %vm6542_vm0 = vcmask 261120   ;;  %v6543_v20 = vmov 0.0   ;;  %v6547_v0 = vmov 920167782  }
 0x32c   : > { %3468 = vmatpush1.bf16.msra.mxu1 %v3467_v19  ;;  %v3471_v52 = vpack.c.bf16 %v2103_v49, %v1895_v45  ;;  %vm6544_vm10 = vmmov %vm6542_vm0  ;;  %v6548_v45 = vmov 1326507024  }
 0x32d   : > { %3470 = vmatprep.subr.bf16.mxu1 %v3469_v1  ;;  %vm6545_vm14 = vmmov %vm6542_vm0 }
 0x32e   : > { %vm6546_vm15 = vmmov %vm6542_vm0 }
 0x330   : > { %3472 = vmatpush1.bf16.msra.mxu1 %v3471_v52 }
 0x333   : > { %3414 = vmatmul.mubr.msk.f32.vlgmr.msra.gmra.mrb[0].mxu1 %vm6542_vm0, %v3406_v22 }
 0x334   : > { %2320 = vmatprep.mubr.f32.mxu1 %v6543_v20 }
 0x337   : > { %3415 = vmatmul.mubr.msk.f32.gmra.mrb[2].mxu1 %vm6544_vm10, %v3407_v15 }
 0x338   : > { %2326 = vmatprep.mubr.f32.mxu1 %v6543_v20 }
 0x33b   : > { %3416 = vmatmul.mubr.msk.f32.gmra.mrb[4].mxu1 %vm6545_vm14, %v3408_v62 }
 0x33c   : > { %2332 = vmatprep.mubr.f32.mxu1 %v6543_v20 }
 0x33f   : > { %3417 = vmatmul.mubr.msk.f32.gmra.mrb[6].mxu1 %vm6546_vm15, %v3409_v2 }
 0x406   : > { %v2316_v25 = vpop.f32.mrb[0].mxu1 }
 0x407   : > { %v5671_v10 = vadd.f32 %v2316_v25, %v2221_v14  ;;  %v2318_v7 = vpop.f32.mrb[1].mxu1 }
 0x408   : > { %v5673_v36 = vadd.f32 %v2318_v7, %v2221_v14 }
 0x409   : > { %v2339_v54 = vand.u32 2147483647, %v5671_v10  ;;  %v2342_v24 = vand.u32 2139095040, %v5671_v10 }
 0x40a   : > { %v2443_v12 = vand.u32 2147483647, %v5673_v36  ;;  %v2446_v21 = vand.u32 2139095040, %v5673_v36  ;;  %v2322_v9 = vpop.f32.mrb[2].mxu1 }
 0x40b   : > { %v2343_v59 = vshrl.u32 %v2342_v24, 23  ;;  %v5679_v56 = vadd.f32 %v2322_v9, %v2226_v57  ;;  %v2324_v32 = vpop.f32.mrb[3].mxu1  ;;  %v2346_v43 = vand.u32 8388607, %v2339_v54 }
 0x40c   : > { %v2447_v29 = vshrl.u32 %v2446_v21, 23  ;;  %v2450_v6 = vand.u32 8388607, %v2443_v12  ;;  %v5692_v26 = vadd.f32 %v2324_v32, %v2226_v57 }
 0x40d   : > { %v3418_v51 = vadd.s32 4294967169, %v2343_v59  ;;  %v2550_v58 = vand.u32 2139095040, %v5679_v56  ;;  %v2347_v42 = vor.u32 8388608, %v2346_v43  ;;  %v6442_v5 = vand.u32 2147483647, %v5679_v56 }
 0x40e   : > { %v3422_v17 = vadd.s32 4294967169, %v2447_v29  ;;  %v5686_v63 = vpop.f32.mrb[4].mxu1  ;;  %v2451_v33 = vor.u32 8388608, %v2450_v6 }
 0x40f   : > { %v2349_v55 = vadd.s32 1, %v3418_v51  ;;  %v2551_v27 = vshrl.u32 %v2550_v58, 23  ;;  %v5688_v61 = vpop.f32.mrb[5].mxu1  ;;  %v5696_v13 = vshll.u32 %v2347_v42, 8 }
 0x410   : > { %v2453_v48 = vadd.s32 1, %v3422_v17  ;;  %v5700_v53 = vshll.u32 %v2451_v33, 8 }
 0x411   : > { %vm2350_vm1 = vcmp.gt.s32.totalorder %v2349_v55, 0  ;;  %v3426_v60 = vadd.s32 4294967169, %v2551_v27 }
 0x412   : > { %v2351_v4 = vsel %vm2350_vm1, %v2349_v55, 0  ;;  %vm2454_vm2 = vcmp.gt.s32.totalorder %v2453_v48, 0  ;;  %v5690_v35 = vpop.f32.mrb[6].mxu1 }
 0x413   : > { %v2352_v30 = vshrl.u32 %v2351_v4, 5  ;;  %v2353_v44 = vand.u32 31, %v2351_v4  ;;  %v2455_v31 = vsel %vm2454_vm2, %v2453_v48, 0  ;;  %v5694_v41 = vpop.f32.mrb[7].mxu1  ;;  %v5704_v28 = vadd.s32 1, %v3426_v60 }
 0x414   : > { %v5698_v46 = vshrl.u32 %v2455_v31, 5  ;;  %v2457_v23 = vand.u32 31, %v2455_v31 }
 0x415   : > { %v2354_v16 = vsub.s32 32, %v2353_v44  ;;  %v2356_v11 = vshll.u32 %v6445_v34, %v2353_v44  ;;  %v2359_v3 = vshll.u32 %v6446_v50, %v2353_v44  ;;  %v2362_v40 = vshll.u32 %v6482_v18, %v2353_v44 }
 0x416   : > { %v2365_v39 = vshll.u32 %v6447_v37, %v2353_v44  ;;  %v2368_v38 = vshll.u32 %v6547_v0, %v2353_v44  ;;  %vm2371_vm6 = vcmp.lt.s32.totalorder %v2352_v30, 1  ;;  %vm2372_vm11 = vcmp.lt.s32.totalorder %v2352_v30, 2 }
 0x417   : > { %v2357_v8 = vshrl.u32 %v6446_v50, %v2354_v16  ;;  %v2360_v1 = vshrl.u32 %v6482_v18, %v2354_v16  ;;  %v2363_v19 = vshrl.u32 %v6447_v37, %v2354_v16  ;;  %v2355_v47 = vshrl.u32 %v6445_v34, %v2354_v16 }
 0x418   : > { %v2366_v49 = vshrl.u32 %v6547_v0, %v2354_v16  ;;  %v2369_v52 = vshrl.u32 %v6548_v45, %v2354_v16  ;;  %v2458_v62 = vsub.s32 32, %v2457_v23  ;;  %vm2373_vm3 = vcmp.lt.s32.totalorder %v2352_v30, 3 }
 0x419   : > { %v2358_v22 = vor.u32 %v2357_v8, %v2356_v11  ;;  %v2361_v20 = vor.u32 %v2360_v1, %v2359_v3  ;;  %v2364_v15 = vor.u32 %v2363_v19, %v2362_v40  ;;  %vm2374_vm13 = vcmp.lt.s32.totalorder %v2352_v30, 4 }
 0x41a   : > { %v2367_v2 = vor.u32 %v2366_v49, %v2365_v39  ;;  %v2370_v14 = vor.u32 %v2369_v52, %v2368_v38  ;;  %v2460_v32 = vshll.u32 %v6445_v34, %v2457_v23  ;;  %v2461_v6 = vshrl.u32 %v6446_v50, %v2458_v62 }
 0x41b   : > { %v2375_v25 = vsel %vm2371_vm6, %v2355_v47, %v2358_v22  ;;  %v2376_v7 = vsel %vm2374_vm13, %v2364_v15, 2102212464  ;;  %v2379_v24 = vsel %vm2371_vm6, %v2358_v22, %v2361_v20  ;;  %v2383_v57 = vsel %vm2371_vm6, %v2361_v20, %v2364_v15 }
 0x41c   : > { %v2377_v21 = vsel %vm2373_vm3, %v2361_v20, %v2376_v7  ;;  %v2380_v9 = vsel %vm2374_vm13, %v2367_v2, 920167782  ;;  %v2384_v59 = vsel %vm2374_vm13, %v2370_v14, 1326507024  ;;  %v2463_v51 = vshll.u32 %v6446_v50, %v2457_v23 }
 0x41d   : > { %v2381_v43 = vsel %vm2373_vm3, %v2364_v15, %v2380_v9  ;;  %v2385_v29 = vsel %vm2373_vm3, %v2367_v2, %v2384_v59  ;;  %v2378_v17 = vsel %vm2372_vm11, %v2375_v25, %v2377_v21  ;;  %v2464_v42 = vshrl.u32 %v6482_v18, %v2458_v62 }
 0x41e   : > { %v2382_v58 = vsel %vm2372_vm11, %v2379_v24, %v2381_v43  ;;  %v2386_v55 = vsel %vm2372_vm11, %v2383_v57, %v2385_v29  ;;  %v2462_v60 = vor.u32 %v2461_v6, %v2460_v32  ;;  %v2466_v31 = vshll.u32 %v6482_v18, %v2457_v23 }
 0x41f   : > { %v5727_v33 = vmul.u32.u64.low %v5696_v13, %v2386_v55  ;;  %v5728_v48 = vmul.u32.u64.high %v5696_v13, %v2386_v55, %v5727_v33  ;;  %v5731_v27 = vmul.u32.u64.low %v5696_v13, %v2382_v58  ;;  %v5732_v4 = vmul.u32.u64.high %v5696_v13, %v2382_v58, %v5731_v27 }
 0x420   : > { %v2465_v44 = vor.u32 %v2464_v42, %v2463_v51  ;;  %v2467_v16 = vshrl.u32 %v6447_v37, %v2458_v62  ;;  %v2459_v30 = vshrl.u32 %v6445_v34, %v2458_v62  ;;  %v2469_v11 = vshll.u32 %v6447_v37, %v2457_v23 }
 0x421   : > { %v2470_v3 = vshrl.u32 %v6547_v0, %v2458_v62  ;;  %v2473_v40 = vshrl.u32 %v6548_v45, %v2458_v62  ;;  %v2394_v39 = vmul.u32 %v5696_v13, %v2378_v17  ;;  %v2472_v8 = vshll.u32 %v6547_v0, %v2457_v23 }
 0x422   : > { %v2468_v38 = vor.u32 %v2467_v16, %v2466_v31  ;;  %vm2475_vm4 = vcmp.lt.s32.totalorder %v5698_v46, 1  ;;  %vm2396_vm12 = vc.u32 %v5728_v48, %v5731_v27  ;;  %v2397_v1 = vadd.s32 1, %v5732_v4 }
 0x423   : > { %v2471_v19 = vor.u32 %v2470_v3, %v2469_v11  ;;  %vm2476_vm9 = vcmp.lt.s32.totalorder %v5698_v46, 2  ;;  %v2474_v47 = vor.u32 %v2473_v40, %v2472_v8  ;;  %vm2477_vm5 = vcmp.lt.s32.totalorder %v5698_v46, 3 }
 0x424   : > { %vm2478_vm7 = vcmp.lt.s32.totalorder %v5698_v46, 4  ;;  %v2483_v49 = vsel %vm2475_vm4, %v2462_v60, %v2465_v44  ;;  %v2398_v13 = vsel %vm2396_vm12, %v2397_v1, %v5732_v4  ;;  %v2487_v22 = vsel %vm2475_vm4, %v2465_v44, %v2468_v38 }
 0x425   : > { %v2480_v52 = vsel %vm2478_vm7, %v2468_v38, 2102212464  ;;  %v2484_v23 = vsel %vm2478_vm7, %v2471_v19, 920167782  ;;  %v2399_v20 = vadd.s32 %v2398_v13, %v2394_v39  ;;  %v2479_v15 = vsel %vm2475_vm4, %v2459_v30, %v2462_v60 }
 0x426   : > { %v2485_v62 = vsel %vm2477_vm5, %v2468_v38, %v2484_v23  ;;  %v2488_v2 = vsel %vm2478_vm7, %v2474_v47, 1326507024  ;;  %v2481_v14 = vsel %vm2477_vm5, %v2465_v44, %v2480_v52  ;;  %vm2558_vm8 = vcmp.gt.s32.totalorder %v5704_v28, 0 }
 0x427   : > { %v2486_v25 = vsel %vm2476_vm9, %v2483_v49, %v2485_v62  ;;  %v2489_v7 = vsel %vm2477_vm5, %v2471_v19, %v2488_v2  ;;  %v2400_v24 = vadd.s32 536870912, %v2399_v20  ;;  %v2554_v43 = vand.u32 8388607, %v6442_v5 }
 0x428   : > { %v2490_v57 = vsel %vm2476_vm9, %v2487_v22, %v2489_v7  ;;  %v5757_v21 = vmul.u32.u64.low %v5700_v53, %v2486_v25  ;;  %v5758_v9 = vmul.u32.u64.high %v5700_v53, %v2486_v25, %v5757_v21  ;;  %v2559_v29 = vsel %vm2558_vm8, %v5704_v28, 0 }
 0x429   : > { %v5762_v59 = vmul.u32.u64.low %v5700_v53, %v2490_v57  ;;  %v5763_v32 = vmul.u32.u64.high %v5700_v53, %v2490_v57, %v5762_v59  ;;  %v5768_v6 = vshrl.u32 %v2400_v24, 30  ;;  %v2482_v51 = vsel %vm2476_vm9, %v2479_v15, %v2481_v14 }
 0x42a   : > { %v2561_v17 = vand.u32 31, %v2559_v29  ;;  %v2654_v58 = vand.u32 2139095040, %v5692_v26  ;;  %v2501_v42 = vadd.s32 1, %v5758_v9  ;;  %v2498_v4 = vmul.u32 %v5700_v53, %v2482_v51 }
 0x42b   : > { %v2402_v55 = vshll.u32 %v5768_v6, 30  ;;  %vm2500_vm0 = vc.u32 %v5763_v32, %v5757_v21  ;;  %v2555_v60 = vor.u32 8388608, %v2554_v43  ;;  %v2560_v40 = vshrl.u32 %v2559_v29, 5 }
 0x42c   : > { %v2562_v33 = vsub.s32 32, %v2561_v17  ;;  %v2502_v44 = vsel %vm2500_vm0, %v2501_v42, %v5758_v9  ;;  %v2655_v46 = vshrl.u32 %v2654_v58, 23  ;;  %v2564_v16 = vshll.u32 %v6445_v34, %v2561_v17 }
 0x42d   : > { %v5778_v28 = vsub.s32 %v2399_v20, %v2402_v55  ;;  %v2503_v31 = vadd.s32 %v2502_v44, %v2498_v4  ;;  %v2567_v53 = vshll.u32 %v6446_v50, %v2561_v17  ;;  %v2570_v1 = vshll.u32 %v6482_v18, %v2561_v17 }
 0x42e   : > { %v2565_v30 = vshrl.u32 %v6446_v50, %v2562_v33  ;;  %v2568_v11 = vshrl.u32 %v6482_v18, %v2562_v33  ;;  %v2571_v39 = vshrl.u32 %v6447_v37, %v2562_v33  ;;  %v2595_v19 = vshll.u32 %v2555_v60, 8 }
 0x42f   : > { %v2405_v3 = vsub.s32 0, %v5778_v28  ;;  %v2504_v38 = vadd.s32 536870912, %v2503_v31  ;;  %v2573_v13 = vshll.u32 %v6447_v37, %v2561_v17  ;;  %v2574_v52 = vshrl.u32 %v6547_v0, %v2562_v33 }
 0x430   : > { %v2566_v8 = vor.u32 %v2565_v30, %v2564_v16  ;;  %v2569_v49 = vor.u32 %v2568_v11, %v2567_v53  ;;  %v2572_v22 = vor.u32 %v2571_v39, %v2570_v1  ;;  %v2576_v20 = vshll.u32 %v6547_v0, %v2561_v17 }
 0x431   : > { %v3419_v47 = vmin.u32 %v2405_v3, %v5778_v28  ;;  %v5791_v23 = vshrl.u32 %v2504_v38, 30  ;;  %v2577_v15 = vshrl.u32 %v6548_v45, %v2562_v33  ;;  %v2575_v2 = vor.u32 %v2574_v52, %v2573_v13 }
 0x432   : > { %vm2579_vm10 = vcmp.lt.s32.totalorder %v2560_v40, 1  ;;  %v3430_v14 = vadd.s32 4294967169, %v2655_v46  ;;  %vm2580_vm14 = vcmp.lt.s32.totalorder %v2560_v40, 2  ;;  %vm2582_vm15 = vcmp.lt.s32.totalorder %v2560_v40, 4 }
 0x433   : > { %v2407_v62 = vclz %v3419_v47  ;;  %v2506_v25 = vshll.u32 %v5791_v23, 30  ;;  %v2578_v7 = vor.u32 %v2577_v15, %v2576_v20  ;;  %vm2581_vm1 = vcmp.lt.s32.totalorder %v2560_v40, 3 }
 0x434   : > { %v2587_v57 = vsel %vm2579_vm10, %v2566_v8, %v2569_v49  ;;  %v2588_v9 = vsel %vm2582_vm15, %v2575_v2, 920167782  ;;  %v2584_v43 = vsel %vm2582_vm15, %v2572_v22, 2102212464  ;;  %v2591_v51 = vsel %vm2579_vm10, %v2569_v49, %v2572_v22 }
 0x435   : > { %v3420_v24 = vadd.s32 4294967294, %v2407_v62  ;;  %v5797_v59 = vsub.s32 %v2503_v31, %v2506_v25  ;;  %v2589_v29 = vsel %vm2581_vm1, %v2572_v22, %v2588_v9  ;;  %v2563_v17 = vshrl.u32 %v6445_v34, %v2562_v33 }
 0x436   : > { %v2590_v58 = vsel %vm2580_vm14, %v2587_v57, %v2589_v29  ;;  %v2592_v55 = vsel %vm2582_vm15, %v2578_v7, 1326507024  ;;  %v2661_v44 = vadd.s32 1, %v3430_v14  ;;  %v2585_v16 = vsel %vm2581_vm1, %v2569_v49, %v2584_v43  ;;  %v2231_v57 = vpop.permute.xlu0 %2230 }
 0x437   : > { %vm3421_vm2 = vcmp.lt.s32.totalorder %v3420_v24, 0  ;;  %v2509_v4 = vsub.s32 0, %v5797_v59  ;;  %v2593_v60 = vsel %vm2581_vm1, %v2575_v2, %v2592_v55  ;;  %v2583_v31 = vsel %vm2579_vm10, %v2563_v17, %v2566_v8 }
 0x438   : > { %v2410_v42 = vsel %vm3421_vm2, 0, %v3420_v24  ;;  %v2594_v30 = vsel %vm2580_vm14, %v2591_v51, %v2593_v60  ;;  %vm2662_vm6 = vcmp.gt.s32.totalorder %v2661_v44, 0  ;;  %v6441_v1 = vand.u32 2147483647, %v5692_v26 }
 0x439   : > { %v2415_v46 = vsub.s32 4294967266, %v2410_v42  ;;  %v3423_v11 = vmin.u32 %v2509_v4, %v5797_v59  ;;  %v5809_v3 = vmul.u32.u64.low %v2595_v19, %v2594_v30  ;;  %v5810_v33 = vmul.u32.u64.high %v2595_v19, %v2594_v30, %v5809_v3 }
 0x43a   : > { %v5812_v53 = vmul.u32.u64.low %v2595_v19, %v2590_v58  ;;  %v5813_v39 = vmul.u32.u64.high %v2595_v19, %v2590_v58, %v5812_v53  ;;  %v2663_v47 = vsel %vm2662_vm6, %v2661_v44, 0  ;;  %v2411_v13 = vsub.s32 32, %v2410_v42 }
 0x43b   : > { %v2511_v38 = vclz %v3423_v11  ;;  %v2416_v8 = vadd.s32 127, %v2415_v46  ;;  %v2586_v49 = vsel %vm2580_vm14, %v2583_v31, %v2585_v16  ;;  %v2665_v52 = vand.u32 31, %v2663_v47 }
 0x43c   : > { %vm2604_vm11 = vc.u32 %v5810_v33, %v5812_v53  ;;  %v2395_v20 = vadd.s32 %v5731_v27, %v5728_v48  ;;  %v2605_v15 = vadd.s32 1, %v5813_v39  ;;  %v2602_v62 = vmul.u32 %v2595_v19, %v2586_v49 }
 0x43d   : > { %v3424_v22 = vadd.s32 4294967294, %v2511_v38  ;;  %v2658_v2 = vand.u32 8388607, %v6441_v1  ;;  %v2417_v25 = vshll.u32 %v2416_v8, 23  ;;  %v2666_v7 = vsub.s32 32, %v2665_v52 }
 0x43e   : > { %v2413_v14 = vshrl.u32 %v2395_v20, %v2411_v13  ;;  %v2606_v40 = vsel %vm2604_vm11, %v2605_v15, %v5813_v39  ;;  %v2412_v9 = vshll.u32 %v5778_v28, %v2410_v42  ;;  %v5828_v48 = vadd.f32 %v5686_v63, %v2231_v57 }
 0x43f   : > { %vm3425_vm3 = vcmp.lt.s32.totalorder %v3424_v22, 0  ;;  %v2607_v24 = vadd.s32 %v2606_v40, %v2602_v62  ;;  %v2659_v51 = vor.u32 8388608, %v2658_v2  ;;  %v2418_v19 = vor.u32 4788187, %v2417_v25 }
 0x440   : > { %v2514_v43 = vsel %vm3425_vm3, 0, %v3424_v22  ;;  %v2414_v27 = vor.u32 %v2413_v14, %v2412_v9  ;;  %v2669_v17 = vshrl.u32 %v6446_v50, %v2666_v7  ;;  %v2672_v58 = vshrl.u32 %v6482_v18, %v2666_v7 }
 0x441   : > { %v2608_v29 = vadd.s32 536870912, %v2607_v24  ;;  %v2519_v55 = vsub.s32 4294967266, %v2514_v43  ;;  %v2675_v60 = vshrl.u32 %v6447_v37, %v2666_v7  ;;  %v2678_v44 = vshrl.u32 %v6547_v0, %v2666_v7 }
 0x442   : > { %v2668_v28 = vshll.u32 %v6445_v34, %v2665_v52  ;;  %v2671_v42 = vshll.u32 %v6446_v50, %v2665_v52  ;;  %v2677_v63 = vshll.u32 %v6447_v37, %v2665_v52  ;;  %v2681_v46 = vshrl.u32 %v6548_v45, %v2666_v7 }
 0x443   : > { %v5832_v4 = vshrl.u32 %v2608_v29, 30  ;;  %v2664_v16 = vshrl.u32 %v2663_v47, 5  ;;  %v2674_v30 = vshll.u32 %v6482_v18, %v2665_v52  ;;  %v5843_v11 = vadd.f32 %v5688_v61, %v2231_v57 }
 0x444   : > { %v2670_v3 = vor.u32 %v2669_v17, %v2668_v28  ;;  %v2673_v39 = vor.u32 %v2672_v58, %v2671_v42  ;;  %v2679_v38 = vor.u32 %v2678_v44, %v2677_v63  ;;  %v2680_v13 = vshll.u32 %v6547_v0, %v2665_v52 }
 0x445   : > { %v2610_v31 = vshll.u32 %v5832_v4, 30  ;;  %v2499_v8 = vadd.s32 %v5757_v21, %v5763_v32  ;;  %v2520_v49 = vadd.s32 127, %v2519_v55  ;;  %v2676_v20 = vor.u32 %v2675_v60, %v2674_v30 }
 0x446   : > { %v2419_v15 = vand.u32 2147483647, %v2418_v19  ;;  %v2421_v62 = vcvt.s32.f32 %v2414_v27  ;;  %v2682_v47 = vor.u32 %v2681_v46, %v2680_v13  ;;  %v2699_v2 = vshll.u32 %v2659_v51, 8 }
 0x447   : > { %v5848_v22 = vsub.s32 %v2607_v24, %v2610_v31  ;;  %v2515_v14 = vsub.s32 32, %v2514_v43  ;;  %vm2683_vm13 = vcmp.lt.s32.totalorder %v2664_v16, 1  ;;  %vm2686_vm4 = vcmp.lt.s32.totalorder %v2664_v16, 4 }
 0x448   : > { %v2667_v25 = vshrl.u32 %v6445_v34, %v2666_v7  ;;  %vm2685_vm12 = vcmp.lt.s32.totalorder %v2664_v16, 3  ;;  %v2691_v52 = vsel %vm2683_vm13, %v2670_v3, %v2673_v39  ;;  %v2692_v40 = vsel %vm2686_vm4, %v2679_v38, 920167782 }
 0x449   : > { %v2613_v61 = vsub.s32 0, %v5848_v22  ;;  %v2521_v21 = vshll.u32 %v2520_v49, 23  ;;  %vm2684_vm9 = vcmp.lt.s32.totalorder %v2664_v16, 2  ;;  %v2688_v32 = vsel %vm2686_vm4, %v2676_v20, 2102212464 }
 0x44a   : > { %v2693_v24 = vsel %vm2685_vm12, %v2676_v20, %v2692_v40  ;;  %v2695_v29 = vsel %vm2683_vm13, %v2673_v39, %v2676_v20  ;;  %v2696_v51 = vsel %vm2686_vm4, %v2682_v47, 1326507024  ;;  %v2516_v27 = vshll.u32 %v5797_v59, %v2514_v43 }
 0x44b   : > { %v3427_v57 = vmin.u32 %v2613_v61, %v5848_v22  ;;  %v2694_v9 = vsel %vm2684_vm9, %v2691_v52, %v2693_v24  ;;  %v2517_v19 = vshrl.u32 %v2499_v8, %v2515_v14  ;;  %v2687_v7 = vsel %vm2683_vm13, %v2667_v25, %v2670_v3  ;;  %v5883_v24 = vpop.permute.xlu1 %2235 }
 0x44c   : > { %v2697_v17 = vsel %vm2685_vm12, %v2679_v38, %v2696_v51  ;;  %v2689_v58 = vsel %vm2685_vm12, %v2673_v39, %v2688_v32  ;;  %v5859_v60 = vmul.u32.u64.low %v2699_v2, %v2694_v9  ;;  %v5860_v44 = vmul.u32.u64.high %v2699_v2, %v2694_v9, %v5859_v60 }
 0x44d   : > { %v2698_v55 = vsel %vm2684_vm9, %v2695_v29, %v2697_v17  ;;  %v2422_v28 = vmul.f32 %v2421_v62, %v2419_v15  ;;  %v2522_v42 = vor.u32 4788187, %v2521_v21  ;;  %v2615_v31 = vclz %v3427_v57 }
 0x44e   : > { %v5863_v63 = vmul.u32.u64.low %v2699_v2, %v2698_v55  ;;  %v5864_v46 = vmul.u32.u64.high %v2699_v2, %v2698_v55, %v5863_v63  ;;  %v2758_v30 = vand.u32 2139095040, %v5828_v48  ;;  %v2518_v59 = vor.u32 %v2517_v19, %v2516_v27 }
 0x44f   : > { %v2690_v43 = vsel %vm2684_vm9, %v2687_v7, %v2689_v58  ;;  %v2862_v3 = vand.u32 2139095040, %v5843_v11  ;;  %v2709_v39 = vadd.s32 1, %v5860_v44  ;;  %v2423_v13 = vxor.u32 2147483648, %v2422_v28 }
 0x450   : > { %v2759_v38 = vshrl.u32 %v2758_v30, 23  ;;  %v2425_v8 = vsub.s32 4, %v5768_v6  ;;  %v2523_v49 = vand.u32 2147483647, %v2522_v42  ;;  %v6440_v20 = vand.u32 2147483647, %v5828_v48 }
 0x451   : > { %v3428_v15 = vadd.s32 4294967294, %v2615_v31  ;;  %v2706_v62 = vmul.u32 %v2699_v2, %v2690_v43  ;;  %vm2708_vm5 = vc.u32 %v5864_v46, %v5859_v60  ;;  %v2525_v14 = vcvt.s32.f32 %v2518_v59 }
 0x452   : > { %v3434_v47 = vadd.s32 4294967169, %v2759_v38  ;;  %v2710_v16 = vsel %vm2708_vm5, %v2709_v39, %v5860_v44  ;;  %v2863_v61 = vshrl.u32 %v2862_v3, 23  ;;  %vm2341_vm7 = vcmp.lt.s32.totalorder %v5671_v10, 0 }
 0x453   : > { %v2711_v25 = vadd.s32 %v2710_v16, %v2706_v62  ;;  %v2424_v40 = vsel %vm2341_vm7, %v2423_v13, %v2422_v28  ;;  %v5877_v21 = vsel %vm2341_vm7, %v2425_v8, %v5768_v6  ;;  %v5879_v32 = vmul.f32 %v2525_v14, %v2523_v49 }
 0x454   : > { %v2765_v52 = vadd.s32 1, %v3434_v47  ;;  %v2762_v2 = vand.u32 8388607, %v6440_v20  ;;  %vm3429_vm8 = vcmp.lt.s32.totalorder %v3428_v15, 0  ;;  %v3438_v9 = vadd.s32 4294967169, %v2863_v61 }
 0x455   : > { %v2712_v57 = vadd.s32 536870912, %v2711_v25  ;;  %vm5887_vm10 = vcmp.le.f32.partialorder %v2339_v54, 0.7853982  ;;  %v5893_v6 = vadd.f32 %v5690_v35, %v5883_v24  ;;  %v5900_v19 = vadd.s32 %v5812_v53, %v5810_v33 }
 0x456   : > { %vm2766_vm0 = vcmp.gt.s32.totalorder %v2765_v52, 0  ;;  %v5907_v54 = vsel %vm5887_vm10, %v5671_v10, %v2424_v40  ;;  %v2527_v58 = vxor.u32 2147483648, %v5879_v32  ;;  %v5910_v35 = vsel %vm3429_vm8, 0, %v3428_v15 }
 0x457   : > { %v2767_v51 = vsel %vm2766_vm0, %v2765_v52, 0  ;;  %v5902_v7 = vshrl.u32 %v2712_v57, 30  ;;  %v2763_v28 = vor.u32 8388608, %v2762_v2  ;;  %v2869_v33 = vadd.s32 1, %v3438_v9 }
 0x458   : > { %v2769_v17 = vand.u32 31, %v2767_v51  ;;  %v2768_v53 = vshrl.u32 %v2767_v51, 5  ;;  %v6439_v14 = vand.u32 2147483647, %v5843_v11  ;;  %vm2445_vm14 = vcmp.lt.s32.totalorder %v5673_v36, 0 }
 0x459   : > { %v2714_v44 = vshll.u32 %v5902_v7, 30  ;;  %v2623_v16 = vsub.s32 4294967266, %v5910_v35  ;;  %v2803_v2 = vshll.u32 %v2763_v28, 8  ;;  %vm2870_vm1 = vcmp.gt.s32.totalorder %v2869_v33, 0 }
 0x45a   : > { %v2770_v42 = vsub.s32 32, %v2769_v17  ;;  %v2772_v63 = vshll.u32 %v6445_v34, %v2769_v17  ;;  %v2775_v31 = vshll.u32 %v6446_v50, %v2769_v17  ;;  %v2778_v30 = vshll.u32 %v6482_v18, %v2769_v17 }
 0x45b   : > { %v5917_v59 = vsub.s32 %v2711_v25, %v2714_v44  ;;  %v2781_v39 = vshll.u32 %v6447_v37, %v2769_v17  ;;  %v2784_v8 = vshll.u32 %v6547_v0, %v2769_v17  ;;  %vm2787_vm15 = vcmp.lt.s32.totalorder %v2768_v53, 1 }
 0x45c   : > { %v2773_v43 = vshrl.u32 %v6446_v50, %v2770_v42  ;;  %v2776_v3 = vshrl.u32 %v6482_v18, %v2770_v42  ;;  %v2779_v38 = vshrl.u32 %v6447_v37, %v2770_v42  ;;  %v2782_v13 = vshrl.u32 %v6547_v0, %v2770_v42 }
 0x45d   : > { %v2785_v49 = vshrl.u32 %v6548_v45, %v2770_v42  ;;  %v2717_v15 = vsub.s32 0, %v5917_v59  ;;  %v2771_v57 = vshrl.u32 %v6445_v34, %v2770_v42  ;;  %vm2788_vm2 = vcmp.lt.s32.totalorder %v2768_v53, 2 }
 0x45e   : > { %v2774_v62 = vor.u32 %v2773_v43, %v2772_v63  ;;  %v2777_v47 = vor.u32 %v2776_v3, %v2775_v31  ;;  %v2780_v61 = vor.u32 %v2779_v38, %v2778_v30  ;;  %v2783_v25 = vor.u32 %v2782_v13, %v2781_v39 }
 0x45f   : > { %v2786_v52 = vor.u32 %v2785_v49, %v2784_v8  ;;  %v3431_v40 = vmin.u32 %v2717_v15, %v5917_v59  ;;  %vm2790_vm6 = vcmp.lt.s32.totalorder %v2768_v53, 4  ;;  %vm2789_vm11 = vcmp.lt.s32.totalorder %v2768_v53, 3 }
 0x460   : > { %v2795_v9 = vsel %vm2787_vm15, %v2774_v62, %v2777_v47  ;;  %v2792_v17 = vsel %vm2790_vm6, %v2780_v61, 2102212464  ;;  %v2796_v44 = vsel %vm2790_vm6, %v2783_v25, 920167782  ;;  %v2791_v63 = vsel %vm2787_vm15, %v2771_v57, %v2774_v62 }
 0x461   : > { %v2719_v51 = vclz %v3431_v40  ;;  %v2797_v31 = vsel %vm2789_vm11, %v2780_v61, %v2796_v44  ;;  %v2799_v43 = vsel %vm2787_vm15, %v2777_v47, %v2780_v61  ;;  %v2800_v30 = vsel %vm2790_vm6, %v2786_v52, 1326507024 }
 0x462   : > { %v2793_v39 = vsel %vm2789_vm11, %v2777_v47, %v2792_v17  ;;  %v2798_v38 = vsel %vm2788_vm2, %v2795_v9, %v2797_v31  ;;  %v2801_v13 = vsel %vm2789_vm11, %v2783_v25, %v2800_v30  ;;  %v2624_v28 = vadd.s32 127, %v2623_v16 }
 0x463   : > { %v3432_v3 = vadd.s32 4294967294, %v2719_v51  ;;  %v2802_v8 = vsel %vm2788_vm2, %v2799_v43, %v2801_v13  ;;  %v5934_v42 = vmul.u32.u64.low %v2803_v2, %v2798_v38  ;;  %v5935_v49 = vmul.u32.u64.high %v2803_v2, %v2798_v38, %v5934_v42 }
 0x464   : > { %v5938_v15 = vmul.u32.u64.low %v2803_v2, %v2802_v8  ;;  %v5939_v40 = vmul.u32.u64.high %v2803_v2, %v2802_v8, %v5938_v15  ;;  %v2871_v62 = vsel %vm2870_vm1, %v2869_v33, 0  ;;  %v2794_v47 = vsel %vm2788_vm2, %v2791_v63, %v2793_v39 }
 0x465   : > { %vm3433_vm3 = vcmp.lt.s32.totalorder %v3432_v3, 0  ;;  %v2866_v25 = vand.u32 8388607, %v6439_v14  ;;  %v2873_v16 = vand.u32 31, %v2871_v62  ;;  %v5950_v52 = vsel %vm2445_vm14, %v2527_v58, %v5879_v32 }
 0x466   : > { %v5942_v61 = vsel %vm3433_vm3, 0, %v3432_v3  ;;  %v2619_v57 = vsub.s32 32, %v5910_v35  ;;  %v2966_v51 = vand.u32 2139095040, %v5893_v6  ;;  %v2813_v17 = vadd.s32 1, %v5935_v49 }
 0x467   : > { %v2727_v53 = vsub.s32 4294967266, %v5942_v61  ;;  %v2874_v44 = vsub.s32 32, %v2873_v16  ;;  %v2625_v63 = vshll.u32 %v2624_v28, 23  ;;  %v2707_v31 = vadd.s32 %v5859_v60, %v5864_v46 }
 0x468   : > { %v2810_v32 = vmul.u32 %v2803_v2, %v2794_v47  ;;  %vm2812_vm13 = vc.u32 %v5939_v40, %v5934_v42  ;;  %v2867_v43 = vor.u32 8388608, %v2866_v25  ;;  %v2723_v39 = vsub.s32 32, %v5942_v61 }
 0x469   : > { %v2814_v58 = vsel %vm2812_vm13, %v2813_v17, %v5935_v49  ;;  %v2877_v30 = vshrl.u32 %v6446_v50, %v2874_v44  ;;  %v2880_v3 = vshrl.u32 %v6482_v18, %v2874_v44  ;;  %v2872_v13 = vshrl.u32 %v2871_v62, 5 }
 0x46a   : > { %v2815_v38 = vadd.s32 %v2814_v58, %v2810_v32  ;;  %v2967_v8 = vshrl.u32 %v2966_v51, 23  ;;  %v2728_v28 = vadd.s32 127, %v2727_v53  ;;  %v2876_v15 = vshll.u32 %v6445_v34, %v2873_v16 }
 0x46b   : > { %v2879_v60 = vshll.u32 %v6446_v50, %v2873_v16  ;;  %v2883_v46 = vshrl.u32 %v6447_v37, %v2874_v44  ;;  %v2882_v49 = vshll.u32 %v6482_v18, %v2873_v16  ;;  %v2885_v47 = vshll.u32 %v6447_v37, %v2873_v16 }
 0x46c   : > { %v2816_v2 = vadd.s32 536870912, %v2815_v38  ;;  %v2886_v25 = vshrl.u32 %v6547_v0, %v2874_v44  ;;  %vm5975_vm4 = vcmp.le.f32.partialorder %v2443_v12, 0.7853982  ;;  %v2878_v62 = vor.u32 %v2877_v30, %v2876_v15 }
 0x46d   : > { %v2881_v51 = vor.u32 %v2880_v3, %v2879_v60  ;;  %v2888_v53 = vshll.u32 %v6547_v0, %v2873_v16  ;;  %v2889_v32 = vshrl.u32 %v6548_v45, %v2874_v44  ;;  %v2621_v58 = vshrl.u32 %v5900_v19, %v2619_v57 }
 0x46e   : > { %v5982_v14 = vshrl.u32 %v2816_v2, 30  ;;  %v2884_v20 = vor.u32 %v2883_v46, %v2882_v49  ;;  %v2887_v27 = vor.u32 %v2886_v25, %v2885_v47  ;;  %v2626_v1 = vor.u32 4788187, %v2625_v63 }
 0x46f   : > { %v2890_v5 = vor.u32 %v2889_v32, %v2888_v53  ;;  %v2907_v55 = vshll.u32 %v2867_v43, 8  ;;  %v3442_v9 = vadd.s32 4294967169, %v2967_v8  ;;  %v2729_v12 = vshll.u32 %v2728_v28, 23 }
 0x470   : > { %v2818_v33 = vshll.u32 %v5982_v14, 30  ;;  %vm2891_vm12 = vcmp.lt.s32.totalorder %v2872_v13, 1  ;;  %vm2894_vm9 = vcmp.lt.s32.totalorder %v2872_v13, 4  ;;  %vm2549_vm5 = vcmp.lt.s32.totalorder %v5679_v56, 0 }
 0x471   : > { %v2724_v16 = vshll.u32 %v5917_v59, %v5942_v61  ;;  %v2725_v30 = vshrl.u32 %v2707_v31, %v2723_v39  ;;  %v2899_v19 = vsel %vm2891_vm12, %v2878_v62, %v2881_v51  ;;  %v2900_v57 = vsel %vm2894_vm9, %v2887_v27, 920167782 }
 0x472   : > { %v5989_v3 = vsub.s32 %v2815_v38, %v2818_v33  ;;  %v2875_v63 = vshrl.u32 %v6445_v34, %v2874_v44  ;;  %vm2893_vm7 = vcmp.lt.s32.totalorder %v2872_v13, 3  ;;  %v2896_v43 = vsel %vm2894_vm9, %v2884_v20, 2102212464 }
 0x473   : > { %vm2892_vm8 = vcmp.lt.s32.totalorder %v2872_v13, 2  ;;  %v2901_v8 = vsel %vm2893_vm7, %v2884_v20, %v2900_v57  ;;  %v2903_v28 = vsel %vm2891_vm12, %v2881_v51, %v2884_v20  ;;  %v2904_v15 = vsel %vm2894_vm9, %v2890_v5, 1326507024 }
 0x474   : > { %v2730_v60 = vor.u32 4788187, %v2729_v12  ;;  %v2821_v46 = vsub.s32 0, %v5989_v3  ;;  %v2895_v59 = vsel %vm2891_vm12, %v2875_v63, %v2878_v62  ;;  %v2902_v61 = vsel %vm2892_vm8, %v2899_v19, %v2901_v8 }
 0x475   : > { %v2897_v31 = vsel %vm2893_vm7, %v2881_v51, %v2896_v43  ;;  %v2905_v39 = vsel %vm2893_vm7, %v2887_v27, %v2904_v15  ;;  %v5996_v33 = vmul.u32.u64.low %v2907_v55, %v2902_v61  ;;  %v5997_v38 = vmul.u32.u64.high %v2907_v55, %v2902_v61, %v5996_v33 }
 0x476   : > { %v2531_v44 = vsel %vm5975_vm4, %v5673_v36, %v5950_v52  ;;  %v3435_v5 = vmin.u32 %v2821_v46, %v5989_v3  ;;  %v2906_v20 = vsel %vm2892_vm8, %v2903_v28, %v2905_v39  ;;  %v2973_v2 = vadd.s32 1, %v3442_v9 }
 0x477   : > { %v6553_v49 = vshll.u32 %v5848_v22, %v5910_v35  ;;  %v2726_v25 = vor.u32 %v2725_v30, %v2724_v16  ;;  %v6009_v27 = vmul.u32.u64.low %v2907_v55, %v2906_v20  ;;  %v6010_v62 = vmul.u32.u64.high %v2907_v55, %v2906_v20, %v6009_v27 }
 0x478   : > { %v2627_v51 = vand.u32 2147483647, %v2626_v1  ;;  %v2823_v53 = vclz %v3435_v5  ;;  %v2898_v32 = vsel %vm2892_vm8, %v2895_v59, %v2897_v31  ;;  %vm2974_vm0 = vcmp.gt.s32.totalorder %v2973_v2, 0 }
 0x479   : > { %v2622_v47 = vor.u32 %v2621_v58, %v6553_v49  ;;  %v2731_v12 = vand.u32 2147483647, %v2730_v60  ;;  %v2917_v52 = vadd.s32 1, %v5997_v38  ;;  %v6554_v19 = vand.u32 2147483647, %v5893_v6 }
 0x47a   : > { %v2975_v9 = vsel %vm2974_vm0, %v2973_v2, 0  ;;  %3697 = vcosq.f32 %v2531_v44  ;;  %v6555_v22 = vsub.s32 4, %v5832_v4  ;;  %v3436_v1 = vadd.s32 4294967294, %v2823_v53 }
 0x47b   : > { %v2970_v57 = vand.u32 8388607, %v6554_v19  ;;  %v2977_v58 = vand.u32 31, %v2975_v9  ;;  %v2629_v13 = vcvt.s32.f32 %v2622_v47  ;;  %v2733_v16 = vcvt.s32.f32 %v2726_v25 }
 0x47c   : > { %v6021_v35 = vsel %vm2549_vm5, %v6555_v22, %v5832_v4  ;;  %v2914_v30 = vmul.u32 %v2907_v55, %v2898_v32  ;;  %vm2916_vm15 = vc.u32 %v6010_v62, %v5996_v33  ;;  %3699 = vsinq.f32 %v2531_v44 }
 0x47d   : > { %vm3437_vm1 = vcmp.lt.s32.totalorder %v3436_v1, 0  ;;  %v2918_v63 = vsel %vm2916_vm15, %v2917_v52, %v5997_v38  ;;  %v2978_v43 = vsub.s32 32, %v2977_v58  ;;  %v2630_v8 = vmul.f32 %v2629_v13, %v2627_v51 }
 0x47e   : > { %v6026_v28 = vmul.f32 %v2733_v16, %v2731_v12  ;;  %v2919_v15 = vadd.s32 %v2918_v63, %v2914_v30  ;;  %v2971_v60 = vor.u32 8388608, %v2970_v57  ;;  %v6028_v4 = vsel %vm3437_vm1, 0, %v3436_v1 }
 0x47f   : > { %v6030_v46 = vshrl.u32 %v2975_v9, 5  ;;  %v2986_v59 = vshll.u32 %v6482_v18, %v2977_v58  ;;  %v6035_v55 = vadd.f32 %v5694_v41, %v5883_v24  ;;  %v2981_v31 = vshrl.u32 %v6446_v50, %v2978_v43 }
 0x480   : > { %v2920_v61 = vadd.s32 536870912, %v2919_v15  ;;  %v2984_v39 = vshrl.u32 %v6482_v18, %v2978_v43  ;;  %v2987_v38 = vshrl.u32 %v6447_v37, %v2978_v43  ;;  %v2980_v44 = vshll.u32 %v6445_v34, %v2977_v58 }
 0x481   : > { %v2983_v5 = vshll.u32 %v6446_v50, %v2977_v58  ;;  %v2989_v20 = vshll.u32 %v6447_v37, %v2977_v58  ;;  %v2990_v2 = vshrl.u32 %v6547_v0, %v2978_v43  ;;  %v2631_v49 = vxor.u32 2147483648, %v2630_v8 }
 0x482   : > { %v2735_v47 = vxor.u32 2147483648, %v6026_v28  ;;  %v6045_v41 = vshrl.u32 %v2920_v61, 30  ;;  %v2988_v24 = vor.u32 %v2987_v38, %v2986_v59  ;;  %v2831_v25 = vsub.s32 4294967266, %v6028_v4 }
 0x483   : > { %v2982_v27 = vor.u32 %v2981_v31, %v2980_v44  ;;  %v2985_v51 = vor.u32 %v2984_v39, %v2983_v5  ;;  %v2991_v53 = vor.u32 %v2990_v2, %v2989_v20  ;;  %v6556_v32 = vand.u32 2147483647, %v5679_v56 }
 0x484   : > { %v2922_v52 = vshll.u32 %v6045_v41, 30  ;;  %v2992_v19 = vshll.u32 %v6547_v0, %v2977_v58  ;;  %v2993_v57 = vshrl.u32 %v6548_v45, %v2978_v43  ;;  %v3011_v9 = vshll.u32 %v2971_v60, 8  ;;  %v6057_v22 = vpop.eup %3697 }
 0x485   : > { %vm6050_vm2 = vcmp.le.f32.partialorder %v6556_v32, 0.7853982  ;;  %vm2653_vm6 = vcmp.lt.s32.totalorder %v5692_v26, 0  ;;  %v2827_v1 = vsub.s32 32, %v6028_v4  ;;  %v2979_v13 = vshrl.u32 %v6445_v34, %v2978_v43 }
 0x486   : > { %vm2998_vm11 = vcmp.lt.s32.totalorder %v6030_v46, 4  ;;  %v3070_v16 = vand.u32 2139095040, %v6035_v55  ;;  %v6064_v30 = vsub.s32 %v2919_v15, %v2922_v52  ;;  %v2994_v63 = vor.u32 %v2993_v57, %v2992_v19  ;;  %v6069_v60 = vpop.eup %3699 }
 0x487   : > { %vm2995_vm3 = vcmp.lt.s32.totalorder %v6030_v46, 1  ;;  %v3000_v58 = vsel %vm2998_vm11, %v2988_v24, 2102212464  ;;  %v2832_v59 = vadd.s32 127, %v2831_v25  ;;  %vm2997_vm13 = vcmp.lt.s32.totalorder %v6030_v46, 3 }
 0x488   : > { %v3003_v61 = vsel %vm2995_vm3, %v2982_v27, %v2985_v51  ;;  %v3004_v43 = vsel %vm2998_vm11, %v2991_v53, 920167782  ;;  %v6559_v31 = vand.u32 2147483647, %v5692_v26  ;;  %v2925_v39 = vsub.s32 0, %v6064_v30 }
 0x489   : > { %vm2996_vm9 = vcmp.lt.s32.totalorder %v6030_v46, 2  ;;  %v3005_v38 = vsel %vm2997_vm13, %v2988_v24, %v3004_v43  ;;  %v3007_v44 = vsel %vm2995_vm3, %v2985_v51, %v2988_v24  ;;  %v2999_v5 = vsel %vm2995_vm3, %v2979_v13, %v2982_v27 }
 0x48a   : > { %vm6076_vm12 = vcmp.le.f32.partialorder %v6559_v31, 0.7853982  ;;  %v3001_v20 = vsel %vm2997_vm13, %v2985_v51, %v3000_v58  ;;  %v3006_v2 = vsel %vm2996_vm9, %v3003_v61, %v3005_v38  ;;  %v3008_v25 = vsel %vm2998_vm11, %v2994_v63, 1326507024 }
 0x48b   : > { %v3439_v32 = vmin.u32 %v2925_v39, %v6064_v30  ;;  %v3009_v52 = vsel %vm2997_vm13, %v2991_v53, %v3008_v25  ;;  %v6087_v19 = vmul.u32.u64.low %v3011_v9, %v3006_v2  ;;  %v6088_v57 = vmul.u32.u64.high %v3011_v9, %v3006_v2, %v6087_v19 }
 0x48c   : > { %v6562_v31 = vsel %vm5887_vm10, 0, %v5877_v21  ;;  %v2632_v24 = vsel %vm2549_vm5, %v2631_v49, %v2630_v8  ;;  %v3010_v27 = vsel %vm2996_vm9, %v3007_v44, %v3009_v52  ;;  %v3071_v51 = vshrl.u32 %v3070_v16, 23 }
 0x48d   : > { %v6094_v43 = vadd.s32 3, %v6562_v31  ;;  %v2811_v13 = vadd.s32 %v5934_v42, %v5939_v40  ;;  %v2927_v53 = vclz %v3439_v32  ;;  %3701 = vcosq.f32 %v5907_v54 }
 0x48e   : > { %v6102_v63 = vmul.u32.u64.low %v3011_v9, %v3010_v27  ;;  %v6103_v58 = vmul.u32.u64.high %v3011_v9, %v3010_v27, %v6102_v63  ;;  %v2636_v21 = vsel %vm6050_vm2, 0, %v6021_v35  ;;  %v3002_v29 = vsel %vm2996_vm9, %v2999_v5, %v3001_v20 }
 0x48f   : > { %v3446_v8 = vadd.s32 4294967169, %v3071_v51  ;;  %v2736_v49 = vsel %vm2653_vm6, %v2735_v47, %v6026_v28  ;;  %v2829_v16 = vshrl.u32 %v2811_v13, %v2827_v1  ;;  %v2833_v42 = vshll.u32 %v2832_v59, 23 }
 0x490   : > { %v3021_v40 = vadd.s32 1, %v6088_v57  ;;  %v2635_v61 = vsel %vm6050_vm2, %v5679_v56, %v2632_v24  ;;  %v3067_v39 = vand.u32 2147483647, %v6035_v55  ;;  %v2529_v35 = vsub.s32 4, %v5791_v23 }
 0x491   : > { %v3077_v38 = vadd.s32 1, %v3446_v8  ;;  %v2828_v46 = vshll.u32 %v5989_v3, %v6028_v4  ;;  %v3440_v44 = vadd.s32 4294967294, %v2927_v53  ;;  %v3018_v5 = vmul.u32 %v3011_v9, %v3002_v29 }
 0x492   : > { %vm3020_vm10 = vc.u32 %v6103_v58, %v6087_v19  ;;  %3703 = vsinq.f32 %v5907_v54  ;;  %v2739_v28 = vsel %vm6076_vm12, %v5692_v26, %v2736_v49  ;;  %v6130_v1 = vor.u32 4788187, %v2833_v42 }
 0x493   : > { %v3022_v47 = vsel %vm3020_vm10, %v3021_v40, %v6088_v57  ;;  %vm3078_vm5 = vcmp.gt.s32.totalorder %v3077_v38, 0  ;;  %3705 = vcosq.f32 %v2635_v61  ;;  %v6128_v12 = vor.u32 %v2829_v16, %v2828_v46 }
 0x494   : > { %v3023_v59 = vadd.s32 %v3022_v47, %v3018_v5  ;;  %3707 = vsinq.f32 %v2635_v61  ;;  %v6132_v3 = vadd.s32 3, %v2636_v21  ;;  %v3074_v4 = vand.u32 8388607, %v3067_v39 }
 0x495   : > { %v3079_v54 = vsel %vm3078_vm5, %v3077_v38, 0  ;;  %3709 = vcosq.f32 %v2739_v28  ;;  %vm3441_vm7 = vcmp.lt.s32.totalorder %v3440_v44, 0  ;;  %v2530_v20 = vsel %vm2445_vm14, %v2529_v35, %v5791_v23 }
 0x496   : > { %v3024_v9 = vadd.s32 536870912, %v3023_v59  ;;  %3711 = vsinq.f32 %v2739_v28  ;;  %v6141_v2 = vadd.s32 %v5996_v33, %v6010_v62  ;;  %v3081_v25 = vand.u32 31, %v3079_v54 }
 0x497   : > { %v2540_v32 = vxor.u32 2147483648, %v6069_v60  ;;  %v2835_v52 = vand.u32 2147483647, %v6130_v1  ;;  %v2837_v57 = vcvt.s32.f32 %v6128_v12  ;;  %v2543_v24 = vxor.u32 2147483648, %v6057_v22  ;;  %v6149_v27 = vpop.eup %3701 }
 0x498   : > { %v6146_v31 = vshrl.u32 %v3024_v9, 30  ;;  %v6151_v51 = vsel %vm3441_vm7, 0, %v3440_v44  ;;  %v3075_v23 = vor.u32 8388608, %v3074_v4  ;;  %v3082_v13 = vsub.s32 32, %v3081_v25 }
 0x499   : > { %v2532_v33 = vsel %vm5975_vm4, 0, %v2530_v20  ;;  %v6156_v62 = vadd.s32 %v6087_v19, %v6103_v58  ;;  %v3084_v63 = vshll.u32 %v6445_v34, %v3081_v25  ;;  %v2737_v21 = vsub.s32 4, %v5902_v7 }
 0x49a   : > { %v3026_v53 = vshll.u32 %v6146_v31, 30  ;;  %v3085_v29 = vshrl.u32 %v6446_v50, %v3082_v13  ;;  %v3087_v8 = vshll.u32 %v6446_v50, %v3081_v25  ;;  %v3088_v49 = vshrl.u32 %v6482_v18, %v3082_v13 }
 0x49b   : > { %v3091_v16 = vshrl.u32 %v6447_v37, %v3082_v13  ;;  %v2935_v17 = vsub.s32 4294967266, %v6151_v51  ;;  %v3080_v19 = vshrl.u32 %v3079_v54, 5  ;;  %v3090_v58 = vshll.u32 %v6482_v18, %v3081_v25 }
 0x49c   : > { %v6166_v42 = vsub.s32 %v3023_v59, %v3026_v53  ;;  %v6169_v40 = vpop.eup %3703  ;;  %v2931_v61 = vsub.s32 32, %v6151_v51  ;;  %v3086_v38 = vor.u32 %v3085_v29, %v3084_v63  ;;  %v3089_v35 = vor.u32 %v3088_v49, %v3087_v8 }
 0x49d   : > { %v6172_v46 = vshll.u32 %v3075_v23, 8  ;;  %v6174_v50 = vpop.eup %3705  ;;  %v3092_v5 = vor.u32 %v3091_v16, %v3090_v58  ;;  %v3093_v28 = vshll.u32 %v6447_v37, %v3081_v25  ;;  %v3094_v47 = vshrl.u32 %v6547_v0, %v3082_v13 }
 0x49e   : > { %v3029_v44 = vsub.s32 0, %v6166_v42  ;;  %v6179_v59 = vpop.eup %3707  ;;  %v3096_v18 = vshll.u32 %v6547_v0, %v3081_v25  ;;  %v3097_v4 = vshrl.u32 %v6548_v45, %v3082_v13  ;;  %v2536_v54 = vadd.s32 3, %v2532_v33 }
 0x49f   : > { %v2738_v9 = vsel %vm2653_vm6, %v2737_v21, %v5902_v7  ;;  %v6186_v20 = vpop.eup %3709  ;;  %v2936_v23 = vadd.s32 127, %v2935_v17  ;;  %v3095_v63 = vor.u32 %v3094_v47, %v3093_v28  ;;  %vm3099_vm14 = vcmp.lt.s32.totalorder %v3080_v19, 1 }
 0x4a0   : > { %v3443_v53 = vmin.u32 %v3029_v44, %v6166_v42  ;;  %v3712_v37 = vpop.eup %3711  ;;  %v3083_v29 = vshrl.u32 %v6445_v34, %v3082_v13  ;;  %v3098_v8 = vor.u32 %v3097_v4, %v3096_v18  ;;  %vm3102_vm4 = vcmp.lt.s32.totalorder %v3080_v19, 4 }
 0x4a1   : > { %v3107_v0 = vsel %vm3099_vm14, %v3086_v38, %v3089_v35  ;;  %vm3101_vm8 = vcmp.lt.s32.totalorder %v3080_v19, 3  ;;  %v3104_v45 = vsel %vm3102_vm4, %v3092_v5, 2102212464  ;;  %v3108_v33 = vsel %vm3102_vm4, %v3095_v63, 920167782 }
 0x4a2   : > { %v3031_v25 = vclz %v3443_v53  ;;  %vm3100_vm0 = vcmp.lt.s32.totalorder %v3080_v19, 2  ;;  %v3109_v49 = vsel %vm3101_vm8, %v3092_v5, %v3108_v33  ;;  %v3111_v7 = vsel %vm3099_vm14, %v3089_v35, %v3092_v5 }
 0x4a3   : > { %v2537_v21 = vand.u32 3, %v2536_v54  ;;  %v3103_v17 = vsel %vm3099_vm14, %v3083_v29, %v3086_v38  ;;  %v3110_v58 = vsel %vm3100_vm0, %v3107_v0, %v3109_v49  ;;  %v3112_v44 = vsel %vm3102_vm4, %v3098_v8, 1326507024 }
 0x4a4   : > { %v3444_v16 = vadd.s32 4294967294, %v3031_v25  ;;  %v3105_v28 = vsel %vm3101_vm8, %v3089_v35, %v3104_v45  ;;  %v3113_v47 = vsel %vm3101_vm8, %v3095_v63, %v3112_v44  ;;  %v2932_v18 = vshll.u32 %v6064_v30, %v6151_v51 }
 0x4a5   : > { %v6192_v34 = vmul.u32.u64.low %v6172_v46, %v3110_v58  ;;  %v6193_v13 = vmul.u32.u64.high %v6172_v46, %v3110_v58, %v6192_v34  ;;  %v3114_v4 = vsel %vm3100_vm0, %v3111_v7, %v3113_v47  ;;  %v2740_v5 = vsel %vm6076_vm12, 0, %v2738_v9 }
 0x4a6   : > { %vm3445_vm15 = vcmp.lt.s32.totalorder %v3444_v16, 0  ;;  %v2933_v38 = vshrl.u32 %v6141_v2, %v2931_v61  ;;  %v6203_v35 = vmul.u32.u64.low %v6172_v46, %v3114_v4  ;;  %v6204_v53 = vmul.u32.u64.high %v6172_v46, %v3114_v4, %v6203_v35 }
 0x4a7   : > { %v3034_v54 = vsel %vm3445_vm15, 0, %v3444_v16  ;;  %vm2535_vm1 = vweird.f32 %v5673_v36  ;;  %vm2743_vm2 = vweird.f32 %v5692_v26  ;;  %v2937_v63 = vshll.u32 %v2936_v23, 23 }
 0x4a8   : > { %v3039_v29 = vsub.s32 4294967266, %v3034_v54  ;;  %v3106_v30 = vsel %vm3100_vm0, %v3103_v17, %v3105_v28  ;;  %v2748_v51 = vxor.u32 2147483648, %v3712_v37  ;;  %v3125_v8 = vadd.s32 1, %v6193_v13 }
 0x4a9   : > { %vm2539_vm6 = vcmp.eq.s32.totalorder %v2537_v21, 0  ;;  %vm2542_vm11 = vcmp.eq.s32.totalorder %v2537_v21, 2  ;;  %v2744_v15 = vadd.s32 3, %v2740_v5  ;;  %v2751_v23 = vxor.u32 2147483648, %v6186_v20 }
 0x4aa   : > { %v3040_v2 = vadd.s32 127, %v3039_v29  ;;  %v2541_v61 = vsel %vm2539_vm6, %v6057_v22, %v2540_v32  ;;  %v2544_v9 = vsel %vm2542_vm11, %v2543_v24, %v6069_v60  ;;  %v2934_v0 = vor.u32 %v2933_v38, %v2932_v18 }
 0x4ab   : > { %v3122_v19 = vmul.u32 %v6172_v46, %v3106_v30  ;;  %vm3124_vm3 = vc.u32 %v6204_v53, %v6192_v34  ;;  %v2745_v25 = vand.u32 3, %v2744_v15  ;;  %v2938_v45 = vor.u32 4788187, %v2937_v63 }
 0x4ac   : > { %v3035_v33 = vsub.s32 32, %v3034_v54  ;;  %v3126_v49 = vsel %vm3124_vm3, %v3125_v8, %v6193_v13  ;;  %vm2538_vm13 = vcmp.lt.s32.totalorder %v2537_v21, 2  ;;  %v3041_v22 = vshll.u32 %v3040_v2, 23 }
 0x4ad   : > { %v3127_v7 = vadd.s32 %v3126_v49, %v3122_v19  ;;  %v2545_v32 = vsel %vm2538_vm13, %v2541_v61, %v2544_v9  ;;  %vm2747_vm12 = vcmp.eq.s32.totalorder %v2745_v25, 0  ;;  %vm2750_vm9 = vcmp.eq.s32.totalorder %v2745_v25, 2 }
 0x4ae   : > { %vm2746_vm10 = vcmp.lt.s32.totalorder %v2745_v25, 2  ;;  %v2749_v60 = vsel %vm2747_vm12, %v6186_v20, %v2748_v51  ;;  %v2752_v24 = vsel %vm2750_vm9, %v2751_v23, %v3712_v37  ;;  %v2433_v17 = vand.u32 3, %v6094_v43 }
 0x4af   : > { %v3128_v16 = vadd.s32 536870912, %v3127_v7  ;;  %v2753_v46 = vsel %vm2746_vm10, %v2749_v60, %v2752_v24  ;;  %v2436_v58 = vxor.u32 2147483648, %v6169_v40  ;;  %v3037_v44 = vshrl.u32 %v6156_v62, %v3035_v33 }
 0x4b0   : > { %v2546_v21 = vsel %vm2535_vm1, nan, %v2545_v32  ;;  %v2754_v28 = vsel %vm2743_vm2, nan, %v2753_v46  ;;  %v2439_v47 = vxor.u32 2147483648, %v6149_v27  ;;  %v3036_v13 = vshll.u32 %v6166_v42, %v3034_v54 }
 0x4b1   : > { %v6231_v20 = vshrl.u32 %v3128_v16, 30  ;;  %v3473_v37 = vpack.c.bf16 %v2754_v28, %v2546_v21  ;;  %vm2435_vm5 = vcmp.eq.s32.totalorder %v2433_v17, 0  ;;  %v3042_v18 = vor.u32 4788187, %v3041_v22 }
 0x4b2   : > { %v2437_v43 = vsel %vm2435_vm5, %v6149_v27, %v2436_v58  ;;  %vm2438_vm7 = vcmp.eq.s32.totalorder %v2433_v17, 2  ;;  %v2641_v62 = vand.u32 3, %v6132_v3  ;;  %v2644_v4 = vxor.u32 2147483648, %v6179_v59 }
 0x4b3   : > { %v3130_v36 = vshll.u32 %v6231_v20, 30  ;;  %3474 = vmatprep.subr.bf16.mxu0 %v3473_v37  ;;  %v2440_v26 = vsel %vm2438_vm7, %v2439_v47, %v6169_v40  ;;  %v2647_v5 = vxor.u32 2147483648, %v6174_v50  ;;  %v2939_v42 = vand.u32 2147483647, %v2938_v45 }
 0x4b4   : > { %v3038_v38 = vor.u32 %v3037_v44, %v3036_v13  ;;  %vm2434_vm14 = vcmp.lt.s32.totalorder %v2433_v17, 2  ;;  %vm2643_vm4 = vcmp.eq.s32.totalorder %v2641_v62, 0  ;;  %vm2646_vm8 = vcmp.eq.s32.totalorder %v2641_v62, 2 }
 0x4b5   : > { %v3131_v54 = vsub.s32 %v3127_v7, %v3130_v36  ;;  %v2441_v35 = vsel %vm2434_vm14, %v2437_v43, %v2440_v26  ;;  %v2645_v27 = vsel %vm2643_vm4, %v6174_v50, %v2644_v4  ;;  %v2941_v63 = vcvt.s32.f32 %v2934_v0 }
 0x4b6   : > { %v3043_v3 = vand.u32 2147483647, %v3042_v18  ;;  %vm2642_vm0 = vcmp.lt.s32.totalorder %v2641_v62, 2  ;;  %v2648_v29 = vsel %vm2646_vm8, %v2647_v5, %v6179_v59  ;;  %vm2431_vm15 = vweird.f32 %v5671_v10 }
 0x4b7   : > { %v3133_v30 = vsub.s32 0, %v3131_v54  ;;  %vm2639_vm1 = vweird.f32 %v5679_v56  ;;  %v2649_v40 = vsel %vm2642_vm0, %v2645_v27, %v2648_v29  ;;  %v2838_v51 = vmul.f32 %v2837_v57, %v2835_v52 }
 0x4b8   : > { %v3045_v8 = vcvt.s32.f32 %v3038_v38  ;;  %v2442_v15 = vsel %vm2431_vm15, nan, %v2441_v35  ;;  %v2650_v50 = vsel %vm2639_vm1, nan, %v2649_v40  ;;  %v2942_v2 = vmul.f32 %v2941_v63, %v2939_v42 }
 0x4b9   : > { %v3447_v61 = vmin.u32 %v3133_v30, %v3131_v54  ;;  %v3475_v9 = vpack.c.bf16 %v2650_v50, %v2442_v15  ;;  %v2839_v59 = vxor.u32 2147483648, %v2838_v51  ;;  %vm2757_vm2 = vcmp.lt.s32.totalorder %v5828_v48, 0 }
 0x4ba   : > { %v3046_v23 = vmul.f32 %v3045_v8, %v3043_v3  ;;  %v2943_v19 = vxor.u32 2147483648, %v2942_v2  ;;  %vm2861_vm11 = vcmp.lt.s32.totalorder %v5843_v11, 0  ;;  %vm2965_vm3 = vcmp.lt.s32.totalorder %v5893_v6, 0 }
 0x4bb   : > { %v3135_v0 = vclz %v3447_v61  ;;  %3476 = vmatpush1.bf16.msra.mxu0 %v3475_v9  ;;  %v2840_v56 = vsel %vm2757_vm2, %v2839_v59, %v2838_v51  ;;  %v3123_v52 = vadd.s32 %v6192_v34, %v6204_v53  ;;  %v6563_v33 = vand.u32 2147483647, %v5828_v48 }
 0x4bc   : > { %v3047_v25 = vxor.u32 2147483648, %v3046_v23  ;;  %v2944_v1 = vsel %vm2861_vm11, %v2943_v19, %v2942_v2  ;;  %v6566_v7 = vand.u32 2147483647, %v5843_v11  ;;  %v6569_v46 = vand.u32 2147483647, %v5893_v6 }
 0x4bd   : > { %v3448_v10 = vadd.s32 4294967294, %v3135_v0  ;;  %vm6258_vm13 = vcmp.le.f32.partialorder %v6563_v33, 0.7853982  ;;  %v3049_v28 = vsub.s32 4, %v6146_v31  ;;  %v2945_v13 = vsub.s32 4, %v6045_v41 }
 0x4be   : > { %vm6264_vm12 = vcmp.le.f32.partialorder %v6566_v7, 0.7853982  ;;  %v3048_v22 = vsel %vm2965_vm3, %v3047_v25, %v3046_v23  ;;  %v2843_v34 = vsel %vm6258_vm13, %v5828_v48, %v2840_v56  ;;  %vm6278_vm9 = vcmp.le.f32.partialorder %v6569_v46, 0.7853982 }
 0x4bf   : > { %vm3449_vm6 = vcmp.lt.s32.totalorder %v3448_v10, 0  ;;  %v2947_v16 = vsel %vm6264_vm12, %v5843_v11, %v2944_v1  ;;  %v3051_v58 = vsel %vm6278_vm9, %v5893_v6, %v3048_v22  ;;  %3713 = vcosq.f32 %v2843_v34 }
 0x4c0   : > { %v3138_v12 = vsel %vm3449_vm6, 0, %v3448_v10  ;;  %3715 = vcosq.f32 %v2947_v16  ;;  %v2841_v37 = vsub.s32 4, %v5982_v14  ;;  %v3050_v62 = vsel %vm2965_vm3, %v3049_v28, %v6146_v31 }
 0x4c1   : > { %v3139_v57 = vsub.s32 32, %v3138_v12  ;;  %v3143_v45 = vsub.s32 4294967266, %v3138_v12  ;;  %v3140_v53 = vshll.u32 %v3131_v54, %v3138_v12  ;;  %3717 = vcosq.f32 %v3051_v58 }
 0x4c2   : > { %3719 = vsinq.f32 %v3051_v58  ;;  %v3153_v26 = vsub.s32 4, %v6231_v20  ;;  %v2946_v4 = vsel %vm2861_vm11, %v2945_v13, %v6045_v41  ;;  %v2842_v5 = vsel %vm2757_vm2, %v2841_v37, %v5982_v14 }
 0x4c3   : > { %v3141_v60 = vshrl.u32 %v3123_v52, %v3139_v57  ;;  %v3144_v24 = vadd.s32 127, %v3143_v45  ;;  %3721 = vsinq.f32 %v2947_v16  ;;  %v3052_v38 = vsel %vm6278_vm9, 0, %v3050_v62 }
 0x4c4   : > { %3723 = vsinq.f32 %v2843_v34  ;;  %vm3069_vm10 = vcmp.lt.s32.totalorder %v6035_v55, 0  ;;  %vm6303_vm5 = vcmp.le.f32.partialorder %v3067_v39, 0.7853982  ;;  %v2948_v41 = vsel %vm6264_vm12, 0, %v2946_v4 }
 0x4c5   : > { %v3142_v44 = vor.u32 %v3141_v60, %v3140_v53  ;;  %v3145_v21 = vshll.u32 %v3144_v24, 23  ;;  %v3154_v35 = vsel %vm3069_vm10, %v3153_v26, %v6231_v20  ;;  %v2844_v14 = vsel %vm6258_vm13, 0, %v2842_v5 }
 0x4c6   : > { %v3056_v29 = vadd.s32 3, %v3052_v38  ;;  %v2952_v30 = vadd.s32 3, %v2948_v41  ;;  %v3156_v40 = vsel %vm6303_vm5, 0, %v3154_v35  ;;  %v2848_v8 = vadd.s32 3, %v2844_v14 }
 0x4c7   : > { %v3146_v47 = vor.u32 4788187, %v3145_v21  ;;  %v3149_v43 = vcvt.s32.f32 %v3142_v44  ;;  %v3160_v50 = vadd.s32 3, %v3156_v40  ;;  %vm3055_vm12 = vweird.f32 %v5893_v6  ;;  %v3171_v6 = vld [vmem:[%s6377_s5] sm:$0x7] }
 0x4c8   : > { %v3057_v2 = vand.u32 3, %v3056_v29  ;;  %v2953_v61 = vand.u32 3, %v2952_v30  ;;  %v2849_v19 = vand.u32 3, %v2848_v8  ;;  %vm2951_vm9 = vweird.f32 %v5843_v11  ;;  %v3176_v11 = vpop.permute.xlu0 %3175 }
 0x4c9   : > { %v3147_v18 = vand.u32 2147483647, %v3146_v47  ;;  %v3714_v27 = vpop.eup %3713  ;;  %v3161_v56 = vand.u32 3, %v3160_v50 }
 0x4ca   : > { %v3716_v3 = vpop.eup %3715  ;;  %v2855_v25 = vxor.u32 2147483648, %v3714_v27  ;;  %vm3059_vm7 = vcmp.eq.s32.totalorder %v3057_v2, 0  ;;  %vm3062_vm14 = vcmp.eq.s32.totalorder %v3057_v2, 2  ;;  %vm2955_vm4 = vcmp.eq.s32.totalorder %v2953_v61, 0 }
 0x4cb   : > { %v3150_v36 = vmul.f32 %v3149_v43, %v3147_v18  ;;  %v3718_v39 = vpop.eup %3717  ;;  %v2959_v59 = vxor.u32 2147483648, %v3716_v3  ;;  %vm2958_vm8 = vcmp.eq.s32.totalorder %v2953_v61, 2  ;;  %vm2851_vm0 = vcmp.eq.s32.totalorder %v2849_v19, 0 }
 0x4cc   : > { %v3720_v51 = vpop.eup %3719  ;;  %v3063_v23 = vxor.u32 2147483648, %v3718_v39  ;;  %vm2854_vm15 = vcmp.eq.s32.totalorder %v2849_v19, 2  ;;  %vm3058_vm1 = vcmp.lt.s32.totalorder %v3057_v2, 2  ;;  %vm2954_vm2 = vcmp.lt.s32.totalorder %v2953_v61, 2 }
 0x4cd   : > { %v3151_v42 = vxor.u32 2147483648, %v3150_v36  ;;  %v3722_v20 = vpop.eup %3721  ;;  %v3060_v9 = vxor.u32 2147483648, %v3720_v51  ;;  %vm3166_vm6 = vcmp.eq.s32.totalorder %v3161_v56, 2  ;;  %vm3163_vm11 = vcmp.eq.s32.totalorder %v3161_v56, 0 }
 0x4ce   : > { %v3724_v15 = vpop.eup %3723  ;;  %v2956_v0 = vxor.u32 2147483648, %v3722_v20  ;;  %v3064_v1 = vsel %vm3062_vm14, %v3063_v23, %v3720_v51  ;;  %v2960_v45 = vsel %vm2958_vm8, %v2959_v59, %v3722_v20  ;;  %vm2850_vm3 = vcmp.lt.s32.totalorder %v2849_v19, 2 }
 0x4cf   : > { %v3152_v54 = vsel %vm3069_vm10, %v3151_v42, %v3150_v36  ;;  %v2852_v10 = vxor.u32 2147483648, %v3724_v15  ;;  %v3061_v12 = vsel %vm3059_vm7, %v3718_v39, %v3060_v9  ;;  %v2856_v32 = vsel %vm2854_vm15, %v2855_v25, %v3724_v15 }
 0x4d0   : > { %v3155_v63 = vsel %vm6303_vm5, %v6035_v55, %v3152_v54  ;;  %v2957_v57 = vsel %vm2955_vm4, %v3716_v3, %v2956_v0  ;;  %v3065_v34 = vsel %vm3058_vm1, %v3061_v12, %v3064_v1  ;;  %vm3162_vm13 = vcmp.lt.s32.totalorder %v3161_v56, 2 }
 0x4d1   : > { %3725 = vcosq.f32 %v3155_v63  ;;  %v2853_v7 = vsel %vm2851_vm0, %v3714_v27, %v2852_v10  ;;  %v2961_v53 = vsel %vm2954_vm2, %v2957_v57, %v2960_v45  ;;  %vm3159_vm10 = vweird.f32 %v6035_v55 }
 0x4d2   : > { %3727 = vsinq.f32 %v3155_v63  ;;  %v2857_v16 = vsel %vm2850_vm3, %v2853_v7, %v2856_v32  ;;  %v3066_v17 = vsel %vm3055_vm12, nan, %v3065_v34  ;;  %v2962_v58 = vsel %vm2951_vm9, nan, %v2961_v53 }
 0x4d3   : > { %vm2847_vm5 = vweird.f32 %v5828_v48  ;;  %vm6574_vm7 = vcmask 261120  }
 0x4d4   : > { %v2858_v28 = vsel %vm2847_vm5, nan, %v2857_v16 }
 0x4d5   : > { %v3479_v47 = vpack.c.bf16 %v3066_v17, %v2858_v28 }
 0x4db   : > { %v3726_v52 = vpop.eup %3725 }
 0x4dc   : > { %v3728_v33 = vpop.eup %3727  ;;  %v3167_v49 = vxor.u32 2147483648, %v3726_v52 }
 0x4dd   : > { %v3164_v22 = vxor.u32 2147483648, %v3728_v33 }
 0x4de   : > { %v3168_v60 = vsel %vm3166_vm6, %v3167_v49, %v3728_v33 }
 0x4df   : > { %v3165_v24 = vsel %vm3163_vm11, %v3726_v52, %v3164_v22 }
 0x4e0   : > { %v3169_v46 = vsel %vm3162_vm13, %v3165_v24, %v3168_v60 }
 0x4e1   : > { %v3170_v44 = vsel %vm3159_vm10, nan, %v3169_v46 }
 0x4e2   : > { %v3477_v21 = vpack.c.bf16 %v3170_v44, %v2962_v58 }
 0x4e4   : > { %3478 = vmatprep.subr.bf16.mxu0 %v3477_v21 }
 0x4e5   : > { %3480 = vmatpush1.bf16.msra.mxu0 %v3479_v47 }
 0x4e8   : > { %3450 = vmatmul.mubr.msk.f32.vlgmr.msra.gmra.mrb[8].mxu0 %vm6574_vm7, %v3171_v6 }
 0x5bb   : > { %v3247_v55 = vpop.f32.mrb[8].mxu0 }
 0x5bc   : > { %v3248_v13 = vadd.f32 %v3247_v55, %v3176_v11  ;;  %v3249_v37 = vpop.f32.mrb[9].mxu0 }
 0x5bd   : > { %v3250_v48 = vadd.f32 %v3249_v37, %v3176_v11 }
 0x5bf   : > { %v3254_v18 = vcombine.low %v3248_v13, %v3250_v48 }
 0x5c1   : > { %3256 = vst [vmem:[%s272_s17] sm:$0x77] %v3254_v18 }
 0x5c2   : > { %3742 = shalt.err (!%p3739_p3)
}
 0x5c3   : > { %s3743_s9 = scalar_lea.hbm %s6330_s21, 128  ;;  %s3747_s15 = scalar_lea.hbm %s6379_s7, 512 }
 0x5c4   : > { %p3744_p4 = scmp.ne.s32.totalorder %s6330_s21, %s3743_s9  ;;  %p3748_p9 = scmp.lt.u32.totalorder %s6330_s21, %s6379_s7 }
 0x5c5   : > { %p3749_p10 = scmp.lt.u32.totalorder %s3747_s15, %s3743_s9  ;;  %p3751_p12 = scmp.lt.u32.totalorder %s3743_s9, %s6330_s21 }
 0x5c6   : > { %p3745_p7 = pnand %p3744_p4, %p3881_p5 }
 0x5c7   : > { %p3750_p11 = por %p3749_p10, %p3748_p9 }
 0x5c8   : > { %p3746_p8 = pneg %p3745_p7 }
 0x5c9   : > { %p3752_p13 = por %p3751_p12, %p3750_p11 }
 0x5cb   : > { %p3753_p0 = pnand %p3752_p13, %p3746_p8 }
 0x5cd   : > { %3756 = shalt.err (!%p3753_p0)
}
 0x5ce   : > { %3577 = dma.vmem_to_hbm [thread:$0]  (%p3881_p5), %s6332_s18, 128, %s6330_s21, %s3258_s22  }
 0x5cf PF: > { %p3583_p1 = scmp.ge.s32.totalorder %s3791_s27, 2  ;;  %s3284_s19 = sand.u32 1, %s3779_s24  }
 0x5d0   : > { %s3285_s20 = scalar_lea.sflag [#allocation3], %s3284_s19 }
 0x5d1   : > { %p3580_p2 = pnand %p3583_p1, %p3885_p6 }
 0x5d3   : > { %3774 = dma.done.wait (!%p3580_p2), %s3285_s20, 128  }
 0x5d4   : > { %3776 = vsyncadd (!%p3580_p2), %s3285_s20, 4294967168  ;;  %p17_p3 = scmp.ge.s32.totalorder %s3868_s30, 6   ;;  %s6575_s24 = smov %s3783_s25 }
 0x5d5   : > { %s6576_s25 = smov %s3787_s26  ;;  %s6577_s26 = smov %s3879_s10 }
 0x5d6   : > { %s6578_s27 = smov %s3868_s30  ;;  %19 = sbr.rel (!%p17_p3) target bundleno = 3 (0x3), region = 85 }
 0x5dd   :  { %3290 = vsyncpa [#allocation3], 1 }
 0x5de   :  { %3292 = vsyncpa [#allocation3 + $0x1], 1 }

</bundles_post_ra>
